<compile_context>
chip_gen: v7x
topology: tpu7x:2x2x1
jax: 0.10.0
libtpu: 0.0.40
codegen_flags: <defaults>
</compile_context>

<pallas_src>
import functools
import math

import jax
import jax.numpy as jnp
from jax import lax
from jax.experimental import pallas as pl
from jax.experimental.pallas import tpu as pltpu

NEG_INF = -1e9
LN_EPS = 1e-5
FF_CHUNK = 512          # d_ff chunk size for the feed-forward accumulation
MAX_TILE_Q = 256        # query-row tile size (second grid axis)

_PARAM_ORDER = (
    "wq1", "bq1", "wk1", "bk1", "wv1", "bv1", "wo1", "bo1",   # self-attention
    "wq2", "bq2", "wk2", "bk2", "wv2", "bv2", "wo2", "bo2",   # cross-attention
    "wf1", "bf1", "wf2", "bf2",                               # feed-forward
    "g1", "be1", "g2", "be2", "g3", "be3",                    # layer norms
)
_MATMUL_WEIGHTS = frozenset(
    {"wq1", "wk1", "wv1", "wo1", "wq2", "wk2", "wv2", "wo2", "wf1", "wf2"})


# ---------------------------------------------------------------------------
# In-kernel helpers.
# ---------------------------------------------------------------------------
def _layer_norm(x, gamma, beta):
    mu = jnp.mean(x, axis=-1, keepdims=True)
    var = jnp.mean(jnp.square(x - mu), axis=-1, keepdims=True)
    return (x - mu) * lax.rsqrt(var + LN_EPS) * gamma + beta


def _mha(xq_f32, k_bf16, v_bf16, mask, wq_ref, bq_ref, wo_ref, bo_ref,
         num_heads):
    """Multi-head attention for one query-row tile.

    xq_f32 : (TQ, D) f32 query-side input
    k_bf16 : (Sk, D) bf16 pre-projected keys   (VMEM scratch, whole sequence)
    v_bf16 : (Sk, D) bf16 pre-projected values (VMEM scratch, whole sequence)
    mask   : (TQ, Sk) f32, 0 == masked
    """
    d_model = wq_ref.shape[0]
    d_out = wo_ref.shape[1]
    d_head = d_model // num_heads
    scale = 1.0 / math.sqrt(d_head)

    # Q projection: bf16 MXU operands, f32 accumulation.  Fold 1/sqrt(d_head)
    # into Q (cheaper than scaling the (TQ, Sk) score matrix).
    q = jnp.dot(xq_f32.astype(jnp.bfloat16), wq_ref[...],
                preferred_element_type=jnp.float32) + bq_ref[...]
    q = q * scale

    # Additive mask bias, computed once per call (not once per head).
    bias = jnp.where(mask == 0.0, NEG_INF, 0.0).astype(jnp.float32)

    # Per-head attention, accumulating straight into the output projection
    # (no lane-axis concat, shorter live ranges, same FLOPs).
    acc = jnp.zeros((xq_f32.shape[0], d_out), jnp.float32)
    for h in range(num_heads):                      # static unroll, static slices
        lo = h * d_head
        hi = lo + d_head
        qh = q[:, lo:hi].astype(jnp.bfloat16)
        kh = k_bf16[:, lo:hi]
        vh = v_bf16[:, lo:hi]
        # Contract last dim of Q against last dim of K: no materialized K^T.
        s = lax.dot_general(qh, kh, (((1,), (1,)), ((), ())),
                            preferred_element_type=jnp.float32)
        s = s + bias
        s = s - jnp.max(s, axis=-1, keepdims=True)
        p = jnp.exp(s)
        p = p * pl.reciprocal(jnp.sum(p, axis=-1, keepdims=True), approx=True)
        ctx = jnp.dot(p.astype(jnp.bfloat16), vh,
                      preferred_element_type=jnp.float32)
        acc = acc + jnp.dot(ctx.astype(jnp.bfloat16), wo_ref[lo:hi, :],
                            preferred_element_type=jnp.float32)
    return acc + bo_ref[...]


# ---------------------------------------------------------------------------
# Fused decoder-layer kernel.  Grid = (batch, query-row tiles).
# ---------------------------------------------------------------------------
def _decoder_layer_kernel(num_heads, tile_q, ff_chunk, *refs):
    (x_ref, enc_ref, tmask_ref, smask_ref,
     wq1, bq1, wk1, bk1, wv1, bv1, wo1, bo1,
     wq2, bq2, wk2, bk2, wv2, bv2, wo2, bo2,
     wf1, bf1, wf2, bf2,
     g1, be1, g2, be2, g3, be3,
     o_ref,
     k1_scr, v1_scr, k2_scr, v2_scr) = refs

    qt = pl.program_id(1)

    # Once per batch element (first query tile): project K/V for the FULL key
    # sequences into bf16 VMEM scratch.  Later query-row tiles of this batch
    # reuse them (grid axis 1 is "arbitrary" == sequential, so this carried
    # state is safe).
    @pl.when(qt == 0)
    def _():
        x_full = x_ref[...].astype(jnp.bfloat16)       # (S, D)
        enc = enc_ref[...].astype(jnp.bfloat16)        # (S_enc, D)
        k1_scr[...] = (jnp.dot(x_full, wk1[...], preferred_element_type=jnp.float32)
                       + bk1[...]).astype(jnp.bfloat16)
        v1_scr[...] = (jnp.dot(x_full, wv1[...], preferred_element_type=jnp.float32)
                       + bv1[...]).astype(jnp.bfloat16)
        k2_scr[...] = (jnp.dot(enc, wk2[...], preferred_element_type=jnp.float32)
                       + bk2[...]).astype(jnp.bfloat16)
        v2_scr[...] = (jnp.dot(enc, wv2[...], preferred_element_type=jnp.float32)
                       + bv2[...]).astype(jnp.bfloat16)

    row0 = pl.multiple_of(qt * tile_q, tile_q)
    x = x_ref[pl.ds(row0, tile_q), :].astype(jnp.float32)      # (TQ, D)

    # --- self attention + residual + norm1 (dropout = identity, eval mode) ---
    sa = _mha(x, k1_scr[...], v1_scr[...], tmask_ref[...],
              wq1, bq1, wo1, bo1, num_heads)
    x = _layer_norm(x + sa, g1[...], be1[...])

    # --- cross attention + residual + norm2 ---
    ca = _mha(x, k2_scr[...], v2_scr[...], smask_ref[...],
              wq2, bq2, wo2, bo2, num_heads)
    x = _layer_norm(x + ca, g2[...], be2[...])

    # --- position-wise feed forward (chunked over d_ff) + residual + norm3 ---
    d_ff = wf1.shape[1]
    x_bf = x.astype(jnp.bfloat16)
    ff = jnp.zeros_like(x)
    for c0 in range(0, d_ff, ff_chunk):               # static unroll
        c1 = min(c0 + ff_chunk, d_ff)
        h = jnp.dot(x_bf, wf1[:, c0:c1],
                    preferred_element_type=jnp.float32) + bf1[:, c0:c1]
        h = jnp.maximum(h, 0.0)
        ff = ff + jnp.dot(h.astype(jnp.bfloat16), wf2[c0:c1, :],
                          preferred_element_type=jnp.float32)
    ff = ff + bf2[...]
    x = _layer_norm(x + ff, g3[...], be3[...])

    o_ref[...] = x.astype(o_ref.dtype)


# ---------------------------------------------------------------------------
# Wrapper.
# ---------------------------------------------------------------------------
def _pick_tile_q(seq_len):
    if seq_len <= MAX_TILE_Q:
        return seq_len
    for t in (256, 128, 64, 32, 16, 8):
        if seq_len % t == 0:
            return t
    return seq_len


def decoder_layer(x, enc_output, params, *, num_heads,
                  tgt_mask=None, src_mask=None):
    """x: (B, S, D); enc_output: (B, S_enc, D); masks: (S, S) / (S, S_enc)."""
    B, S, D = x.shape
    _, S_enc, _ = enc_output.shape
    assert D % num_heads == 0, "d_model must be divisible by num_heads"

    if tgt_mask is None:
        tgt_mask = jnp.ones((S, S), jnp.float32)
    if src_mask is None:
        src_mask = jnp.ones((S, S_enc), jnp.float32)
    tgt_mask = tgt_mask.astype(jnp.float32)
    src_mask = src_mask.astype(jnp.float32)

    # Matmul weights resident in bf16; biases / LN params stay f32.
    weights = [params[n].astype(jnp.bfloat16) if n in _MATMUL_WEIGHTS
               else params[n].astype(jnp.float32) for n in _PARAM_ORDER]

    tile_q = _pick_tile_q(S)
    n_q_tiles = S // tile_q
    d_ff = params["wf1"].shape[1]
    ff_chunk = min(d_ff, FF_CHUNK)

    in_arrays = [x, enc_output, tgt_mask, src_mask] + weights

    def _run(single_buffer_resident):
        def per_batch(shape):
            # Full (seq, D) block per batch element, resident across q tiles.
            return pl.BlockSpec((pl.Squeezed(),) + tuple(shape[1:]),
                                lambda b, q: (b, 0, 0))

        def resident(arr):
            nd = arr.ndim
            if single_buffer_resident:
                return pl.BlockSpec(arr.shape,
                                    lambda b, q, _nd=nd: (0,) * _nd,
                                    pipeline_mode=pl.Buffered(1))
            return pl.BlockSpec(arr.shape, lambda b, q, _nd=nd: (0,) * _nd)

        in_specs = (
            [per_batch(x.shape), per_batch(enc_output.shape),
             pl.BlockSpec((tile_q, S), lambda b, q: (q, 0)),
             pl.BlockSpec((tile_q, S_enc), lambda b, q: (q, 0))]
            + [resident(w) for w in weights])
        out_spec = pl.BlockSpec((pl.Squeezed(), tile_q, D),
                                lambda b, q: (b, q, 0))

        scratch = [pltpu.VMEM((S, D), jnp.bfloat16),       # self-attn K
                   pltpu.VMEM((S, D), jnp.bfloat16),       # self-attn V
                   pltpu.VMEM((S_enc, D), jnp.bfloat16),   # cross-attn K
                   pltpu.VMEM((S_enc, D), jnp.bfloat16)]   # cross-attn V

        # Explicit scoped-VMEM budget: resident weights + per-tile blocks
        # (double buffered) + K/V scratch, with headroom.
        itemsize = x.dtype.itemsize
        est = (sum(int(w.size) * w.dtype.itemsize for w in weights)
               + 2 * (S * D + S_enc * D) * itemsize
               + 2 * tile_q * (S + S_enc) * 4
               + 2 * tile_q * D * itemsize
               + 2 * (S + S_enc) * D * 2)
        vmem_limit = int(min(max(4 * est, 16 * 2**20), 64 * 2**20))

        kernel = functools.partial(_decoder_layer_kernel,
                                   num_heads, tile_q, ff_chunk)

        return pl.pallas_call(
            kernel,
            out_shape=jax.ShapeDtypeStruct((B, S, D), x.dtype),
            grid_spec=pltpu.PrefetchScalarGridSpec(
                num_scalar_prefetch=0,
                grid=(B, n_q_tiles),
                in_specs=in_specs,
                out_specs=out_spec,
                scratch_shapes=scratch,
            ),
            compiler_params=pltpu.CompilerParams(
                dimension_semantics=("parallel", "arbitrary"),
                vmem_limit_bytes=vmem_limit,
            ),
        )(*in_arrays)

    try:
        return _run(single_buffer_resident=True)
    except Exception:
        # Fallback for Pallas builds that reject pl.Buffered(1) on pallas_call
        # BlockSpecs; identical semantics with default (double) buffering.
        return _run(single_buffer_resident=False)


# ---------------------------------------------------------------------------
# Parameter init + pure-JAX reference (mirrors the PyTorch module, eval mode).
# ---------------------------------------------------------------------------
def init_decoder_params(key, d_model, d_ff):
    def linear(k, din, dout):
        kw, kb = jax.random.split(k)
        w = jax.random.normal(kw, (din, dout), jnp.float32) / math.sqrt(din)
        b = 0.02 * jax.random.normal(kb, (1, dout), jnp.float32)
        return w, b

    keys = jax.random.split(key, 11)
    p = {}
    p["wq1"], p["bq1"] = linear(keys[0], d_model, d_model)
    p["wk1"], p["bk1"] = linear(keys[1], d_model, d_model)
    p["wv1"], p["bv1"] = linear(keys[2], d_model, d_model)
    p["wo1"], p["bo1"] = linear(keys[3], d_model, d_model)
    p["wq2"], p["bq2"] = linear(keys[4], d_model, d_model)
    p["wk2"], p["bk2"] = linear(keys[5], d_model, d_model)
    p["wv2"], p["bv2"] = linear(keys[6], d_model, d_model)
    p["wo2"], p["bo2"] = linear(keys[7], d_model, d_model)
    p["wf1"], p["bf1"] = linear(keys[8], d_model, d_ff)
    p["wf2"], p["bf2"] = linear(keys[9], d_ff, d_model)
    kg = jax.random.split(keys[10], 6)
    p["g1"] = 1.0 + 0.05 * jax.random.normal(kg[0], (1, d_model), jnp.float32)
    p["be1"] = 0.05 * jax.random.normal(kg[1], (1, d_model), jnp.float32)
    p["g2"] = 1.0 + 0.05 * jax.random.normal(kg[2], (1, d_model), jnp.float32)
    p["be2"] = 0.05 * jax.random.normal(kg[3], (1, d_model), jnp.float32)
    p["g3"] = 1.0 + 0.05 * jax.random.normal(kg[4], (1, d_model), jnp.float32)
    p["be3"] = 0.05 * jax.random.normal(kg[5], (1, d_model), jnp.float32)
    return p


def _mha_ref(xq, xkv, mask, wq, bq, wk, bk, wv, bv, wo, bo, num_heads):
    B, Sq, D = xq.shape
    Sk = xkv.shape[1]
    dh = D // num_heads
    q = (xq @ wq + bq).reshape(B, Sq, num_heads, dh).transpose(0, 2, 1, 3)
    k = (xkv @ wk + bk).reshape(B, Sk, num_heads, dh).transpose(0, 2, 1, 3)
    v = (xkv @ wv + bv).reshape(B, Sk, num_heads, dh).transpose(0, 2, 1, 3)
    s = jnp.einsum("bhqd,bhkd->bhqk", q, k) / math.sqrt(dh)
    s = jnp.where(mask[None, None, :, :] == 0.0, NEG_INF, s)
    p = jax.nn.softmax(s, axis=-1)
    o = jnp.einsum("bhqk,bhkd->bhqd", p, v).transpose(0, 2, 1, 3).reshape(B, Sq, D)
    return o @ wo + bo


def _reference(x, enc, params, num_heads, tgt_mask, src_mask):
    p = params

    def ln(t, g, b):
        mu = t.mean(-1, keepdims=True)
        var = ((t - mu) ** 2).mean(-1, keepdims=True)
        return (t - mu) / jnp.sqrt(var + LN_EPS) * g + b

    sa = _mha_ref(x, x, tgt_mask, p["wq1"], p["bq1"], p["wk1"], p["bk1"],
                  p["wv1"], p["bv1"], p["wo1"], p["bo1"], num_heads)
    x = ln(x + sa, p["g1"], p["be1"])
    ca = _mha_ref(x, enc, src_mask, p["wq2"], p["bq2"], p["wk2"], p["bk2"],
                  p["wv2"], p["bv2"], p["wo2"], p["bo2"], num_heads)
    x = ln(x + ca, p["g2"], p["be2"])
    h = jnp.maximum(x @ p["wf1"] + p["bf1"], 0.0)
    ff = h @ p["wf2"] + p["bf2"]
    return ln(x + ff, p["g3"], p["be3"])


if __name__ == "__main__":
    B, S, S_ENC = 2, 8, 16
    D_MODEL, NUM_HEADS, D_FF = 32, 4, 64

    root = jax.random.PRNGKey(0)
    kx, kenc, kp = jax.random.split(root, 3)
    x = jax.random.normal(kx, (B, S, D_MODEL), jnp.float32)
    enc = jax.random.normal(kenc, (B, S_ENC, D_MODEL), jnp.float32)
    params = init_decoder_params(kp, D_MODEL, D_FF)

    # causal mask for decoder self-attention; full (== None) source mask.
    tgt_mask = jnp.tril(jnp.ones((S, S), jnp.float32))
    src_mask = jnp.ones((S, S_ENC), jnp.float32)

    # TODO(synk): nn.Dropout is treated as identity (eval/inference mode);
    # training-mode dropout would need pltpu.prng_seed / stateful_bernoulli.
    out = decoder_layer(x, enc, params, num_heads=NUM_HEADS,
                        tgt_mask=tgt_mask, src_mask=src_mask)
    out = jax.block_until_ready(out)

    with jax.default_matmul_precision("highest"):
        ref = _reference(x, enc, params, NUM_HEADS, tgt_mask, src_mask)

    assert out.shape == (B, S, D_MODEL)
    assert out.dtype == x.dtype
    max_err = float(jnp.max(jnp.abs(out - ref)))
    # bf16 MXU operands in the kernel vs f32 reference -> relaxed tolerance.
    assert jnp.allclose(out, ref, atol=5e-2, rtol=5e-2), (
        f"mismatch vs reference (max abs err = {max_err:.4e})")

    print("KERNEL_OK")
</pallas_src>

<mosaic_0001>
module attributes {stable_mosaic.version = 11 : i64} {
  func.func @_decoder_layer_kernel(%arg0: i32, %arg1: i32, %arg2: memref<1x8x32xf32, #tpu.memory_space<vmem>>, %arg3: memref<1x16x32xf32, #tpu.memory_space<vmem>>, %arg4: memref<8x8xf32, #tpu.memory_space<vmem>>, %arg5: memref<8x16xf32, #tpu.memory_space<vmem>>, %arg6: memref<32x32xbf16, #tpu.memory_space<vmem>>, %arg7: memref<1x32xf32, #tpu.memory_space<vmem>>, %arg8: memref<32x32xbf16, #tpu.memory_space<vmem>>, %arg9: memref<1x32xf32, #tpu.memory_space<vmem>>, %arg10: memref<32x32xbf16, #tpu.memory_space<vmem>>, %arg11: memref<1x32xf32, #tpu.memory_space<vmem>>, %arg12: memref<32x32xbf16, #tpu.memory_space<vmem>>, %arg13: memref<1x32xf32, #tpu.memory_space<vmem>>, %arg14: memref<32x32xbf16, #tpu.memory_space<vmem>>, %arg15: memref<1x32xf32, #tpu.memory_space<vmem>>, %arg16: memref<32x32xbf16, #tpu.memory_space<vmem>>, %arg17: memref<1x32xf32, #tpu.memory_space<vmem>>, %arg18: memref<32x32xbf16, #tpu.memory_space<vmem>>, %arg19: memref<1x32xf32, #tpu.memory_space<vmem>>, %arg20: memref<32x32xbf16, #tpu.memory_space<vmem>>, %arg21: memref<1x32xf32, #tpu.memory_space<vmem>>, %arg22: memref<32x64xbf16, #tpu.memory_space<vmem>>, %arg23: memref<1x64xf32, #tpu.memory_space<vmem>>, %arg24: memref<64x32xbf16, #tpu.memory_space<vmem>>, %arg25: memref<1x32xf32, #tpu.memory_space<vmem>>, %arg26: memref<1x32xf32, #tpu.memory_space<vmem>>, %arg27: memref<1x32xf32, #tpu.memory_space<vmem>>, %arg28: memref<1x32xf32, #tpu.memory_space<vmem>>, %arg29: memref<1x32xf32, #tpu.memory_space<vmem>>, %arg30: memref<1x32xf32, #tpu.memory_space<vmem>>, %arg31: memref<1x32xf32, #tpu.memory_space<vmem>>, %arg32: memref<1x8x32xf32, #tpu.memory_space<vmem>>, %arg33: memref<8x32xbf16, #tpu.memory_space<vmem>>, %arg34: memref<8x32xbf16, #tpu.memory_space<vmem>>, %arg35: memref<16x32xbf16, #tpu.memory_space<vmem>>, %arg36: memref<16x32xbf16, #tpu.memory_space<vmem>>) attributes {dimension_semantics = [#tpu.dimension_semantics<parallel>, #tpu.dimension_semantics<arbitrary>], iteration_bounds = array<i64: 2, 1>, scalar_prefetch = 0 : i64, scratch_operands = 4 : i64, tpu.core_type = #tpu.core_type<tc>, window_params = [{transform_indices = @transform_0, window_bounds = array<i64: 1, 8, 32>}, {transform_indices = @transform_1, window_bounds = array<i64: 1, 16, 32>}, {transform_indices = @transform_2, window_bounds = array<i64: 8, 8>}, {transform_indices = @transform_3, window_bounds = array<i64: 8, 16>}, {pipeline_mode = #tpu.pipeline_mode<synchronous>, transform_indices = @transform_4, window_bounds = array<i64: 32, 32>}, {pipeline_mode = #tpu.pipeline_mode<synchronous>, transform_indices = @transform_5, window_bounds = array<i64: 1, 32>}, {pipeline_mode = #tpu.pipeline_mode<synchronous>, transform_indices = @transform_6, window_bounds = array<i64: 32, 32>}, {pipeline_mode = #tpu.pipeline_mode<synchronous>, transform_indices = @transform_7, window_bounds = array<i64: 1, 32>}, {pipeline_mode = #tpu.pipeline_mode<synchronous>, transform_indices = @transform_8, window_bounds = array<i64: 32, 32>}, {pipeline_mode = #tpu.pipeline_mode<synchronous>, transform_indices = @transform_9, window_bounds = array<i64: 1, 32>}, {pipeline_mode = #tpu.pipeline_mode<synchronous>, transform_indices = @transform_10, window_bounds = array<i64: 32, 32>}, {pipeline_mode = #tpu.pipeline_mode<synchronous>, transform_indices = @transform_11, window_bounds = array<i64: 1, 32>}, {pipeline_mode = #tpu.pipeline_mode<synchronous>, transform_indices = @transform_12, window_bounds = array<i64: 32, 32>}, {pipeline_mode = #tpu.pipeline_mode<synchronous>, transform_indices = @transform_13, window_bounds = array<i64: 1, 32>}, {pipeline_mode = #tpu.pipeline_mode<synchronous>, transform_indices = @transform_14, window_bounds = array<i64: 32, 32>}, {pipeline_mode = #tpu.pipeline_mode<synchronous>, transform_indices = @transform_15, window_bounds = array<i64: 1, 32>}, {pipeline_mode = #tpu.pipeline_mode<synchronous>, transform_indices = @transform_16, window_bounds = array<i64: 32, 32>}, {pipeline_mode = #tpu.pipeline_mode<synchronous>, transform_indices = @transform_17, window_bounds = array<i64: 1, 32>}, {pipeline_mode = #tpu.pipeline_mode<synchronous>, transform_indices = @transform_18, window_bounds = array<i64: 32, 32>}, {pipeline_mode = #tpu.pipeline_mode<synchronous>, transform_indices = @transform_19, window_bounds = array<i64: 1, 32>}, {pipeline_mode = #tpu.pipeline_mode<synchronous>, transform_indices = @transform_20, window_bounds = array<i64: 32, 64>}, {pipeline_mode = #tpu.pipeline_mode<synchronous>, transform_indices = @transform_21, window_bounds = array<i64: 1, 64>}, {pipeline_mode = #tpu.pipeline_mode<synchronous>, transform_indices = @transform_22, window_bounds = array<i64: 64, 32>}, {pipeline_mode = #tpu.pipeline_mode<synchronous>, transform_indices = @transform_23, window_bounds = array<i64: 1, 32>}, {pipeline_mode = #tpu.pipeline_mode<synchronous>, transform_indices = @transform_24, window_bounds = array<i64: 1, 32>}, {pipeline_mode = #tpu.pipeline_mode<synchronous>, transform_indices = @transform_25, window_bounds = array<i64: 1, 32>}, {pipeline_mode = #tpu.pipeline_mode<synchronous>, transform_indices = @transform_26, window_bounds = array<i64: 1, 32>}, {pipeline_mode = #tpu.pipeline_mode<synchronous>, transform_indices = @transform_27, window_bounds = array<i64: 1, 32>}, {pipeline_mode = #tpu.pipeline_mode<synchronous>, transform_indices = @transform_28, window_bounds = array<i64: 1, 32>}, {pipeline_mode = #tpu.pipeline_mode<synchronous>, transform_indices = @transform_29, window_bounds = array<i64: 1, 32>}, {transform_indices = @transform_30, window_bounds = array<i64: 1, 8, 32>}]} {
    %c0_i32 = arith.constant 0 : i32
    %0 = arith.cmpi eq, %arg1, %c0_i32 : i32
    %1 = arith.extui %0 : i1 to i32
    %c0_i32_0 = arith.constant 0 : i32
    %2 = arith.cmpi ne, %1, %c0_i32_0 : i32
    scf.if %2 {
      %c0_132 = arith.constant 0 : index
      %c0_133 = arith.constant 0 : index
      %c0_134 = arith.constant 0 : index
      %318 = vector.load %arg2[%c0_132, %c0_133, %c0_134] : memref<1x8x32xf32, #tpu.memory_space<vmem>>, vector<1x8x32xf32>
      %319 = vector.shape_cast %318 : vector<1x8x32xf32> to vector<8x32xf32>
      %320 = arith.truncf %319 : vector<8x32xf32> to vector<8x32xbf16>
      %c0_135 = arith.constant 0 : index
      %c0_136 = arith.constant 0 : index
      %c0_137 = arith.constant 0 : index
      %321 = vector.load %arg3[%c0_135, %c0_136, %c0_137] : memref<1x16x32xf32, #tpu.memory_space<vmem>>, vector<1x16x32xf32>
      %322 = vector.shape_cast %321 : vector<1x16x32xf32> to vector<16x32xf32>
      %323 = arith.truncf %322 : vector<16x32xf32> to vector<16x32xbf16>
      %c0_138 = arith.constant 0 : index
      %c0_139 = arith.constant 0 : index
      %324 = vector.load %arg8[%c0_138, %c0_139] : memref<32x32xbf16, #tpu.memory_space<vmem>>, vector<32x32xbf16>
      %cst_140 = arith.constant dense<0.000000e+00> : vector<8x32xf32>
      %325 = tpu.matmul %320, %324, %cst_140 {dimension_numbers = #tpu.dot_dimension_numbers<[1], [0], [0], [1], [0, 0, 1, 1], [], []>} : vector<8x32xbf16>, vector<32x32xbf16>, vector<8x32xf32> -> vector<8x32xf32>
      %c0_141 = arith.constant 0 : index
      %c0_142 = arith.constant 0 : index
      %326 = vector.load %arg9[%c0_141, %c0_142] : memref<1x32xf32, #tpu.memory_space<vmem>>, vector<1x32xf32>
      %327 = vector.broadcast %326 : vector<1x32xf32> to vector<8x32xf32>
      %328 = arith.addf %325, %327 : vector<8x32xf32>
      %329 = arith.truncf %328 : vector<8x32xf32> to vector<8x32xbf16>
      %c0_143 = arith.constant 0 : index
      %c0_144 = arith.constant 0 : index
      %330 = vector.load %arg33[%c0_143, %c0_144] : memref<8x32xbf16, #tpu.memory_space<vmem>>, vector<8x32xbf16>
      tpu.vector_store %arg33[%c0_143, %c0_144], %329 {strides = array<i32>} : memref<8x32xbf16, #tpu.memory_space<vmem>>, vector<8x32xbf16>,
      %c0_145 = arith.constant 0 : index
      %c0_146 = arith.constant 0 : index
      %331 = vector.load %arg10[%c0_145, %c0_146] : memref<32x32xbf16, #tpu.memory_space<vmem>>, vector<32x32xbf16>
      %cst_147 = arith.constant dense<0.000000e+00> : vector<8x32xf32>
      %332 = tpu.matmul %320, %331, %cst_147 {dimension_numbers = #tpu.dot_dimension_numbers<[1], [0], [0], [1], [0, 0, 1, 1], [], []>} : vector<8x32xbf16>, vector<32x32xbf16>, vector<8x32xf32> -> vector<8x32xf32>
      %c0_148 = arith.constant 0 : index
      %c0_149 = arith.constant 0 : index
      %333 = vector.load %arg11[%c0_148, %c0_149] : memref<1x32xf32, #tpu.memory_space<vmem>>, vector<1x32xf32>
      %334 = vector.broadcast %333 : vector<1x32xf32> to vector<8x32xf32>
      %335 = arith.addf %332, %334 : vector<8x32xf32>
      %336 = arith.truncf %335 : vector<8x32xf32> to vector<8x32xbf16>
      %c0_150 = arith.constant 0 : index
      %c0_151 = arith.constant 0 : index
      %337 = vector.load %arg34[%c0_150, %c0_151] : memref<8x32xbf16, #tpu.memory_space<vmem>>, vector<8x32xbf16>
      tpu.vector_store %arg34[%c0_150, %c0_151], %336 {strides = array<i32>} : memref<8x32xbf16, #tpu.memory_space<vmem>>, vector<8x32xbf16>,
      %c0_152 = arith.constant 0 : index
      %c0_153 = arith.constant 0 : index
      %338 = vector.load %arg16[%c0_152, %c0_153] : memref<32x32xbf16, #tpu.memory_space<vmem>>, vector<32x32xbf16>
      %cst_154 = arith.constant dense<0.000000e+00> : vector<16x32xf32>
      %339 = tpu.matmul %323, %338, %cst_154 {dimension_numbers = #tpu.dot_dimension_numbers<[1], [0], [0], [1], [0, 0, 1, 1], [], []>} : vector<16x32xbf16>, vector<32x32xbf16>, vector<16x32xf32> -> vector<16x32xf32>
      %c0_155 = arith.constant 0 : index
      %c0_156 = arith.constant 0 : index
      %340 = vector.load %arg17[%c0_155, %c0_156] : memref<1x32xf32, #tpu.memory_space<vmem>>, vector<1x32xf32>
      %341 = vector.broadcast %340 : vector<1x32xf32> to vector<16x32xf32>
      %342 = arith.addf %339, %341 : vector<16x32xf32>
      %343 = arith.truncf %342 : vector<16x32xf32> to vector<16x32xbf16>
      %c0_157 = arith.constant 0 : index
      %c0_158 = arith.constant 0 : index
      %344 = vector.load %arg35[%c0_157, %c0_158] : memref<16x32xbf16, #tpu.memory_space<vmem>>, vector<16x32xbf16>
      tpu.vector_store %arg35[%c0_157, %c0_158], %343 {strides = array<i32>} : memref<16x32xbf16, #tpu.memory_space<vmem>>, vector<16x32xbf16>,
      %c0_159 = arith.constant 0 : index
      %c0_160 = arith.constant 0 : index
      %345 = vector.load %arg18[%c0_159, %c0_160] : memref<32x32xbf16, #tpu.memory_space<vmem>>, vector<32x32xbf16>
      %cst_161 = arith.constant dense<0.000000e+00> : vector<16x32xf32>
      %346 = tpu.matmul %323, %345, %cst_161 {dimension_numbers = #tpu.dot_dimension_numbers<[1], [0], [0], [1], [0, 0, 1, 1], [], []>} : vector<16x32xbf16>, vector<32x32xbf16>, vector<16x32xf32> -> vector<16x32xf32>
      %c0_162 = arith.constant 0 : index
      %c0_163 = arith.constant 0 : index
      %347 = vector.load %arg19[%c0_162, %c0_163] : memref<1x32xf32, #tpu.memory_space<vmem>>, vector<1x32xf32>
      %348 = vector.broadcast %347 : vector<1x32xf32> to vector<16x32xf32>
      %349 = arith.addf %346, %348 : vector<16x32xf32>
      %350 = arith.truncf %349 : vector<16x32xf32> to vector<16x32xbf16>
      %c0_164 = arith.constant 0 : index
      %c0_165 = arith.constant 0 : index
      %351 = vector.load %arg36[%c0_164, %c0_165] : memref<16x32xbf16, #tpu.memory_space<vmem>>, vector<16x32xbf16>
      tpu.vector_store %arg36[%c0_164, %c0_165], %350 {strides = array<i32>} : memref<16x32xbf16, #tpu.memory_space<vmem>>, vector<16x32xbf16>,
    } else {
    }
    %c8_i32 = arith.constant 8 : i32
    %3 = arith.muli %arg1, %c8_i32 : i32
    %4 = tpu.assume_multiple %3, 8 : i32
    %c0 = arith.constant 0 : index
    %5 = arith.index_cast %4 : i32 to index
    %c0_1 = arith.constant 0 : index
    %6 = vector.load %arg2[%c0, %5, %c0_1] : memref<1x8x32xf32, #tpu.memory_space<vmem>>, vector<1x8x32xf32>
    %7 = vector.shape_cast %6 : vector<1x8x32xf32> to vector<8x32xf32>
    %c0_2 = arith.constant 0 : index
    %c0_3 = arith.constant 0 : index
    %8 = vector.load %arg33[%c0_2, %c0_3] : memref<8x32xbf16, #tpu.memory_space<vmem>>, vector<8x32xbf16>
    %c0_4 = arith.constant 0 : index
    %c0_5 = arith.constant 0 : index
    %9 = vector.load %arg34[%c0_4, %c0_5] : memref<8x32xbf16, #tpu.memory_space<vmem>>, vector<8x32xbf16>
    %c0_6 = arith.constant 0 : index
    %c0_7 = arith.constant 0 : index
    %10 = vector.load %arg4[%c0_6, %c0_7] : memref<8x8xf32, #tpu.memory_space<vmem>>, vector<8x8xf32>
    %11 = arith.truncf %7 : vector<8x32xf32> to vector<8x32xbf16>
    %c0_8 = arith.constant 0 : index
    %c0_9 = arith.constant 0 : index
    %12 = vector.load %arg6[%c0_8, %c0_9] : memref<32x32xbf16, #tpu.memory_space<vmem>>, vector<32x32xbf16>
    %cst = arith.constant dense<0.000000e+00> : vector<8x32xf32>
    %13 = tpu.matmul %11, %12, %cst {dimension_numbers = #tpu.dot_dimension_numbers<[1], [0], [0], [1], [0, 0, 1, 1], [], []>} : vector<8x32xbf16>, vector<32x32xbf16>, vector<8x32xf32> -> vector<8x32xf32>
    %c0_10 = arith.constant 0 : index
    %c0_11 = arith.constant 0 : index
    %14 = vector.load %arg7[%c0_10, %c0_11] : memref<1x32xf32, #tpu.memory_space<vmem>>, vector<1x32xf32>
    %15 = vector.broadcast %14 : vector<1x32xf32> to vector<8x32xf32>
    %16 = arith.addf %13, %15 : vector<8x32xf32>
    %cst_12 = arith.constant 0.353553385 : f32
    %17 = vector.broadcast %cst_12 : f32 to vector<8x32xf32>
    %18 = arith.mulf %16, %17 : vector<8x32xf32>
    %cst_13 = arith.constant 0.000000e+00 : f32
    %19 = vector.broadcast %cst_13 : f32 to vector<8x8xf32>
    %20 = arith.cmpf oeq, %10, %19 : vector<8x8xf32>
    %cst_14 = arith.constant -1.000000e+09 : f32
    %cst_15 = arith.constant 0.000000e+00 : f32
    %21 = vector.broadcast %cst_14 : f32 to vector<8x8xf32>
    %22 = vector.broadcast %cst_15 : f32 to vector<8x8xf32>
    %23 = arith.select %20, %21, %22 : vector<8x8xi1>, vector<8x8xf32>
    %cst_16 = arith.constant 0.000000e+00 : f32
    %24 = vector.broadcast %cst_16 : f32 to vector<8x32xf32>
    %25 = vector.extract_strided_slice %18 {offsets = [0, 0], sizes = [8, 8], strides = [1, 1]} : vector<8x32xf32> to vector<8x8xf32>
    %26 = arith.truncf %25 : vector<8x8xf32> to vector<8x8xbf16>
    %27 = vector.extract_strided_slice %8 {offsets = [0, 0], sizes = [8, 8], strides = [1, 1]} : vector<8x32xbf16> to vector<8x8xbf16>
    %28 = vector.extract_strided_slice %9 {offsets = [0, 0], sizes = [8, 8], strides = [1, 1]} : vector<8x32xbf16> to vector<8x8xbf16>
    %cst_17 = arith.constant dense<0.000000e+00> : vector<8x8xf32>
    %29 = tpu.matmul %26, %27, %cst_17 {dimension_numbers = #tpu.dot_dimension_numbers<[1], [1], [0], [0], [0, 0, 1, 0], [], []>} : vector<8x8xbf16>, vector<8x8xbf16>, vector<8x8xf32> -> vector<8x8xf32>
    %30 = arith.addf %29, %23 : vector<8x8xf32>
    %cst_18 = arith.constant dense<0xFF800000> : vector<8xf32>
    %31 = vector.multi_reduction <maximumf>, %30, %cst_18 [1] : vector<8x8xf32> to vector<8xf32>
    %32 = vector.shape_cast %31 : vector<8xf32> to vector<8x1xf32>
    %33 = vector.broadcast %32 : vector<8x1xf32> to vector<8x8xf32>
    %34 = arith.subf %30, %33 : vector<8x8xf32>
    %35 = math.exp %34 : vector<8x8xf32>
    %cst_19 = arith.constant dense<0.000000e+00> : vector<8xf32>
    %36 = vector.multi_reduction <add>, %35, %cst_19 [1] : vector<8x8xf32> to vector<8xf32>
    %37 = vector.shape_cast %36 : vector<8xf32> to vector<8x1xf32>
    %38 = tpu.reciprocal %37 {approx = true} : vector<8x1xf32> -> vector<8x1xf32>
    %39 = vector.broadcast %38 : vector<8x1xf32> to vector<8x8xf32>
    %40 = arith.mulf %35, %39 : vector<8x8xf32>
    %41 = arith.truncf %40 : vector<8x8xf32> to vector<8x8xbf16>
    %cst_20 = arith.constant dense<0.000000e+00> : vector<8x8xf32>
    %42 = tpu.matmul %41, %28, %cst_20 {dimension_numbers = #tpu.dot_dimension_numbers<[1], [0], [0], [1], [0, 0, 1, 1], [], []>} : vector<8x8xbf16>, vector<8x8xbf16>, vector<8x8xf32> -> vector<8x8xf32>
    %43 = arith.truncf %42 : vector<8x8xf32> to vector<8x8xbf16>
    %c0_21 = arith.constant 0 : index
    %c0_22 = arith.constant 0 : index
    %44 = vector.load %arg12[%c0_21, %c0_22] : memref<32x32xbf16, #tpu.memory_space<vmem>>, vector<8x32xbf16>
    %cst_23 = arith.constant dense<0.000000e+00> : vector<8x32xf32>
    %45 = tpu.matmul %43, %44, %cst_23 {dimension_numbers = #tpu.dot_dimension_numbers<[1], [0], [0], [1], [0, 0, 1, 1], [], []>} : vector<8x8xbf16>, vector<8x32xbf16>, vector<8x32xf32> -> vector<8x32xf32>
    %46 = arith.addf %24, %45 : vector<8x32xf32>
    %47 = vector.extract_strided_slice %18 {offsets = [0, 8], sizes = [8, 8], strides = [1, 1]} : vector<8x32xf32> to vector<8x8xf32>
    %48 = arith.truncf %47 : vector<8x8xf32> to vector<8x8xbf16>
    %49 = vector.extract_strided_slice %8 {offsets = [0, 8], sizes = [8, 8], strides = [1, 1]} : vector<8x32xbf16> to vector<8x8xbf16>
    %50 = vector.extract_strided_slice %9 {offsets = [0, 8], sizes = [8, 8], strides = [1, 1]} : vector<8x32xbf16> to vector<8x8xbf16>
    %cst_24 = arith.constant dense<0.000000e+00> : vector<8x8xf32>
    %51 = tpu.matmul %48, %49, %cst_24 {dimension_numbers = #tpu.dot_dimension_numbers<[1], [1], [0], [0], [0, 0, 1, 0], [], []>} : vector<8x8xbf16>, vector<8x8xbf16>, vector<8x8xf32> -> vector<8x8xf32>
    %52 = arith.addf %51, %23 : vector<8x8xf32>
    %cst_25 = arith.constant dense<0xFF800000> : vector<8xf32>
    %53 = vector.multi_reduction <maximumf>, %52, %cst_25 [1] : vector<8x8xf32> to vector<8xf32>
    %54 = vector.shape_cast %53 : vector<8xf32> to vector<8x1xf32>
    %55 = vector.broadcast %54 : vector<8x1xf32> to vector<8x8xf32>
    %56 = arith.subf %52, %55 : vector<8x8xf32>
    %57 = math.exp %56 : vector<8x8xf32>
    %cst_26 = arith.constant dense<0.000000e+00> : vector<8xf32>
    %58 = vector.multi_reduction <add>, %57, %cst_26 [1] : vector<8x8xf32> to vector<8xf32>
    %59 = vector.shape_cast %58 : vector<8xf32> to vector<8x1xf32>
    %60 = tpu.reciprocal %59 {approx = true} : vector<8x1xf32> -> vector<8x1xf32>
    %61 = vector.broadcast %60 : vector<8x1xf32> to vector<8x8xf32>
    %62 = arith.mulf %57, %61 : vector<8x8xf32>
    %63 = arith.truncf %62 : vector<8x8xf32> to vector<8x8xbf16>
    %cst_27 = arith.constant dense<0.000000e+00> : vector<8x8xf32>
    %64 = tpu.matmul %63, %50, %cst_27 {dimension_numbers = #tpu.dot_dimension_numbers<[1], [0], [0], [1], [0, 0, 1, 1], [], []>} : vector<8x8xbf16>, vector<8x8xbf16>, vector<8x8xf32> -> vector<8x8xf32>
    %65 = arith.truncf %64 : vector<8x8xf32> to vector<8x8xbf16>
    %c8 = arith.constant 8 : index
    %c0_28 = arith.constant 0 : index
    %66 = vector.load %arg12[%c8, %c0_28] : memref<32x32xbf16, #tpu.memory_space<vmem>>, vector<8x32xbf16>
    %cst_29 = arith.constant dense<0.000000e+00> : vector<8x32xf32>
    %67 = tpu.matmul %65, %66, %cst_29 {dimension_numbers = #tpu.dot_dimension_numbers<[1], [0], [0], [1], [0, 0, 1, 1], [], []>} : vector<8x8xbf16>, vector<8x32xbf16>, vector<8x32xf32> -> vector<8x32xf32>
    %68 = arith.addf %46, %67 : vector<8x32xf32>
    %69 = vector.extract_strided_slice %18 {offsets = [0, 16], sizes = [8, 8], strides = [1, 1]} : vector<8x32xf32> to vector<8x8xf32>
    %70 = arith.truncf %69 : vector<8x8xf32> to vector<8x8xbf16>
    %71 = vector.extract_strided_slice %8 {offsets = [0, 16], sizes = [8, 8], strides = [1, 1]} : vector<8x32xbf16> to vector<8x8xbf16>
    %72 = vector.extract_strided_slice %9 {offsets = [0, 16], sizes = [8, 8], strides = [1, 1]} : vector<8x32xbf16> to vector<8x8xbf16>
    %cst_30 = arith.constant dense<0.000000e+00> : vector<8x8xf32>
    %73 = tpu.matmul %70, %71, %cst_30 {dimension_numbers = #tpu.dot_dimension_numbers<[1], [1], [0], [0], [0, 0, 1, 0], [], []>} : vector<8x8xbf16>, vector<8x8xbf16>, vector<8x8xf32> -> vector<8x8xf32>
    %74 = arith.addf %73, %23 : vector<8x8xf32>
    %cst_31 = arith.constant dense<0xFF800000> : vector<8xf32>
    %75 = vector.multi_reduction <maximumf>, %74, %cst_31 [1] : vector<8x8xf32> to vector<8xf32>
    %76 = vector.shape_cast %75 : vector<8xf32> to vector<8x1xf32>
    %77 = vector.broadcast %76 : vector<8x1xf32> to vector<8x8xf32>
    %78 = arith.subf %74, %77 : vector<8x8xf32>
    %79 = math.exp %78 : vector<8x8xf32>
    %cst_32 = arith.constant dense<0.000000e+00> : vector<8xf32>
    %80 = vector.multi_reduction <add>, %79, %cst_32 [1] : vector<8x8xf32> to vector<8xf32>
    %81 = vector.shape_cast %80 : vector<8xf32> to vector<8x1xf32>
    %82 = tpu.reciprocal %81 {approx = true} : vector<8x1xf32> -> vector<8x1xf32>
    %83 = vector.broadcast %82 : vector<8x1xf32> to vector<8x8xf32>
    %84 = arith.mulf %79, %83 : vector<8x8xf32>
    %85 = arith.truncf %84 : vector<8x8xf32> to vector<8x8xbf16>
    %cst_33 = arith.constant dense<0.000000e+00> : vector<8x8xf32>
    %86 = tpu.matmul %85, %72, %cst_33 {dimension_numbers = #tpu.dot_dimension_numbers<[1], [0], [0], [1], [0, 0, 1, 1], [], []>} : vector<8x8xbf16>, vector<8x8xbf16>, vector<8x8xf32> -> vector<8x8xf32>
    %87 = arith.truncf %86 : vector<8x8xf32> to vector<8x8xbf16>
    %c16 = arith.constant 16 : index
    %c0_34 = arith.constant 0 : index
    %88 = vector.load %arg12[%c16, %c0_34] : memref<32x32xbf16, #tpu.memory_space<vmem>>, vector<8x32xbf16>
    %cst_35 = arith.constant dense<0.000000e+00> : vector<8x32xf32>
    %89 = tpu.matmul %87, %88, %cst_35 {dimension_numbers = #tpu.dot_dimension_numbers<[1], [0], [0], [1], [0, 0, 1, 1], [], []>} : vector<8x8xbf16>, vector<8x32xbf16>, vector<8x32xf32> -> vector<8x32xf32>
    %90 = arith.addf %68, %89 : vector<8x32xf32>
    %91 = vector.extract_strided_slice %18 {offsets = [0, 24], sizes = [8, 8], strides = [1, 1]} : vector<8x32xf32> to vector<8x8xf32>
    %92 = arith.truncf %91 : vector<8x8xf32> to vector<8x8xbf16>
    %93 = vector.extract_strided_slice %8 {offsets = [0, 24], sizes = [8, 8], strides = [1, 1]} : vector<8x32xbf16> to vector<8x8xbf16>
    %94 = vector.extract_strided_slice %9 {offsets = [0, 24], sizes = [8, 8], strides = [1, 1]} : vector<8x32xbf16> to vector<8x8xbf16>
    %cst_36 = arith.constant dense<0.000000e+00> : vector<8x8xf32>
    %95 = tpu.matmul %92, %93, %cst_36 {dimension_numbers = #tpu.dot_dimension_numbers<[1], [1], [0], [0], [0, 0, 1, 0], [], []>} : vector<8x8xbf16>, vector<8x8xbf16>, vector<8x8xf32> -> vector<8x8xf32>
    %96 = arith.addf %95, %23 : vector<8x8xf32>
    %cst_37 = arith.constant dense<0xFF800000> : vector<8xf32>
    %97 = vector.multi_reduction <maximumf>, %96, %cst_37 [1] : vector<8x8xf32> to vector<8xf32>
    %98 = vector.shape_cast %97 : vector<8xf32> to vector<8x1xf32>
    %99 = vector.broadcast %98 : vector<8x1xf32> to vector<8x8xf32>
    %100 = arith.subf %96, %99 : vector<8x8xf32>
    %101 = math.exp %100 : vector<8x8xf32>
    %cst_38 = arith.constant dense<0.000000e+00> : vector<8xf32>
    %102 = vector.multi_reduction <add>, %101, %cst_38 [1] : vector<8x8xf32> to vector<8xf32>
    %103 = vector.shape_cast %102 : vector<8xf32> to vector<8x1xf32>
    %104 = tpu.reciprocal %103 {approx = true} : vector<8x1xf32> -> vector<8x1xf32>
    %105 = vector.broadcast %104 : vector<8x1xf32> to vector<8x8xf32>
    %106 = arith.mulf %101, %105 : vector<8x8xf32>
    %107 = arith.truncf %106 : vector<8x8xf32> to vector<8x8xbf16>
    %cst_39 = arith.constant dense<0.000000e+00> : vector<8x8xf32>
    %108 = tpu.matmul %107, %94, %cst_39 {dimension_numbers = #tpu.dot_dimension_numbers<[1], [0], [0], [1], [0, 0, 1, 1], [], []>} : vector<8x8xbf16>, vector<8x8xbf16>, vector<8x8xf32> -> vector<8x8xf32>
    %109 = arith.truncf %108 : vector<8x8xf32> to vector<8x8xbf16>
    %c24 = arith.constant 24 : index
    %c0_40 = arith.constant 0 : index
    %110 = vector.load %arg12[%c24, %c0_40] : memref<32x32xbf16, #tpu.memory_space<vmem>>, vector<8x32xbf16>
    %cst_41 = arith.constant dense<0.000000e+00> : vector<8x32xf32>
    %111 = tpu.matmul %109, %110, %cst_41 {dimension_numbers = #tpu.dot_dimension_numbers<[1], [0], [0], [1], [0, 0, 1, 1], [], []>} : vector<8x8xbf16>, vector<8x32xbf16>, vector<8x32xf32> -> vector<8x32xf32>
    %112 = arith.addf %90, %111 : vector<8x32xf32>
    %c0_42 = arith.constant 0 : index
    %c0_43 = arith.constant 0 : index
    %113 = vector.load %arg13[%c0_42, %c0_43] : memref<1x32xf32, #tpu.memory_space<vmem>>, vector<1x32xf32>
    %114 = vector.broadcast %113 : vector<1x32xf32> to vector<8x32xf32>
    %115 = arith.addf %112, %114 : vector<8x32xf32>
    %116 = arith.addf %7, %115 : vector<8x32xf32>
    %c0_44 = arith.constant 0 : index
    %c0_45 = arith.constant 0 : index
    %117 = vector.load %arg26[%c0_44, %c0_45] : memref<1x32xf32, #tpu.memory_space<vmem>>, vector<1x32xf32>
    %c0_46 = arith.constant 0 : index
    %c0_47 = arith.constant 0 : index
    %118 = vector.load %arg27[%c0_46, %c0_47] : memref<1x32xf32, #tpu.memory_space<vmem>>, vector<1x32xf32>
    %cst_48 = arith.constant dense<0.000000e+00> : vector<8xf32>
    %119 = vector.multi_reduction <add>, %116, %cst_48 [1] : vector<8x32xf32> to vector<8xf32>
    %120 = vector.shape_cast %119 : vector<8xf32> to vector<8x1xf32>
    %cst_49 = arith.constant 3.200000e+01 : f32
    %121 = vector.broadcast %cst_49 : f32 to vector<8x1xf32>
    %122 = arith.divf %120, %121 : vector<8x1xf32>
    %123 = vector.broadcast %122 : vector<8x1xf32> to vector<8x32xf32>
    %124 = arith.subf %116, %123 : vector<8x32xf32>
    %125 = arith.mulf %124, %124 : vector<8x32xf32>
    %cst_50 = arith.constant dense<0.000000e+00> : vector<8xf32>
    %126 = vector.multi_reduction <add>, %125, %cst_50 [1] : vector<8x32xf32> to vector<8xf32>
    %127 = vector.shape_cast %126 : vector<8xf32> to vector<8x1xf32>
    %cst_51 = arith.constant 3.200000e+01 : f32
    %128 = vector.broadcast %cst_51 : f32 to vector<8x1xf32>
    %129 = arith.divf %127, %128 : vector<8x1xf32>
    %130 = vector.broadcast %122 : vector<8x1xf32> to vector<8x32xf32>
    %131 = arith.subf %116, %130 : vector<8x32xf32>
    %cst_52 = arith.constant 9.99999974E-6 : f32
    %132 = vector.broadcast %cst_52 : f32 to vector<8x1xf32>
    %133 = arith.addf %129, %132 : vector<8x1xf32>
    %134 = math.rsqrt %133 : vector<8x1xf32>
    %135 = vector.broadcast %134 : vector<8x1xf32> to vector<8x32xf32>
    %136 = arith.mulf %131, %135 : vector<8x32xf32>
    %137 = vector.broadcast %117 : vector<1x32xf32> to vector<8x32xf32>
    %138 = arith.mulf %136, %137 : vector<8x32xf32>
    %139 = vector.broadcast %118 : vector<1x32xf32> to vector<8x32xf32>
    %140 = arith.addf %138, %139 : vector<8x32xf32>
    %c0_53 = arith.constant 0 : index
    %c0_54 = arith.constant 0 : index
    %141 = vector.load %arg35[%c0_53, %c0_54] : memref<16x32xbf16, #tpu.memory_space<vmem>>, vector<16x32xbf16>
    %c0_55 = arith.constant 0 : index
    %c0_56 = arith.constant 0 : index
    %142 = vector.load %arg36[%c0_55, %c0_56] : memref<16x32xbf16, #tpu.memory_space<vmem>>, vector<16x32xbf16>
    %c0_57 = arith.constant 0 : index
    %c0_58 = arith.constant 0 : index
    %143 = vector.load %arg5[%c0_57, %c0_58] : memref<8x16xf32, #tpu.memory_space<vmem>>, vector<8x16xf32>
    %144 = arith.truncf %140 : vector<8x32xf32> to vector<8x32xbf16>
    %c0_59 = arith.constant 0 : index
    %c0_60 = arith.constant 0 : index
    %145 = vector.load %arg14[%c0_59, %c0_60] : memref<32x32xbf16, #tpu.memory_space<vmem>>, vector<32x32xbf16>
    %cst_61 = arith.constant dense<0.000000e+00> : vector<8x32xf32>
    %146 = tpu.matmul %144, %145, %cst_61 {dimension_numbers = #tpu.dot_dimension_numbers<[1], [0], [0], [1], [0, 0, 1, 1], [], []>} : vector<8x32xbf16>, vector<32x32xbf16>, vector<8x32xf32> -> vector<8x32xf32>
    %c0_62 = arith.constant 0 : index
    %c0_63 = arith.constant 0 : index
    %147 = vector.load %arg15[%c0_62, %c0_63] : memref<1x32xf32, #tpu.memory_space<vmem>>, vector<1x32xf32>
    %148 = vector.broadcast %147 : vector<1x32xf32> to vector<8x32xf32>
    %149 = arith.addf %146, %148 : vector<8x32xf32>
    %cst_64 = arith.constant 0.353553385 : f32
    %150 = vector.broadcast %cst_64 : f32 to vector<8x32xf32>
    %151 = arith.mulf %149, %150 : vector<8x32xf32>
    %cst_65 = arith.constant 0.000000e+00 : f32
    %152 = vector.broadcast %cst_65 : f32 to vector<8x16xf32>
    %153 = arith.cmpf oeq, %143, %152 : vector<8x16xf32>
    %cst_66 = arith.constant -1.000000e+09 : f32
    %cst_67 = arith.constant 0.000000e+00 : f32
    %154 = vector.broadcast %cst_66 : f32 to vector<8x16xf32>
    %155 = vector.broadcast %cst_67 : f32 to vector<8x16xf32>
    %156 = arith.select %153, %154, %155 : vector<8x16xi1>, vector<8x16xf32>
    %cst_68 = arith.constant 0.000000e+00 : f32
    %157 = vector.broadcast %cst_68 : f32 to vector<8x32xf32>
    %158 = vector.extract_strided_slice %151 {offsets = [0, 0], sizes = [8, 8], strides = [1, 1]} : vector<8x32xf32> to vector<8x8xf32>
    %159 = arith.truncf %158 : vector<8x8xf32> to vector<8x8xbf16>
    %160 = vector.extract_strided_slice %141 {offsets = [0, 0], sizes = [16, 8], strides = [1, 1]} : vector<16x32xbf16> to vector<16x8xbf16>
    %161 = vector.extract_strided_slice %142 {offsets = [0, 0], sizes = [16, 8], strides = [1, 1]} : vector<16x32xbf16> to vector<16x8xbf16>
    %cst_69 = arith.constant dense<0.000000e+00> : vector<8x16xf32>
    %162 = tpu.matmul %159, %160, %cst_69 {dimension_numbers = #tpu.dot_dimension_numbers<[1], [1], [0], [0], [0, 0, 1, 0], [], []>} : vector<8x8xbf16>, vector<16x8xbf16>, vector<8x16xf32> -> vector<8x16xf32>
    %163 = arith.addf %162, %156 : vector<8x16xf32>
    %cst_70 = arith.constant dense<0xFF800000> : vector<8xf32>
    %164 = vector.multi_reduction <maximumf>, %163, %cst_70 [1] : vector<8x16xf32> to vector<8xf32>
    %165 = vector.shape_cast %164 : vector<8xf32> to vector<8x1xf32>
    %166 = vector.broadcast %165 : vector<8x1xf32> to vector<8x16xf32>
    %167 = arith.subf %163, %166 : vector<8x16xf32>
    %168 = math.exp %167 : vector<8x16xf32>
    %cst_71 = arith.constant dense<0.000000e+00> : vector<8xf32>
    %169 = vector.multi_reduction <add>, %168, %cst_71 [1] : vector<8x16xf32> to vector<8xf32>
    %170 = vector.shape_cast %169 : vector<8xf32> to vector<8x1xf32>
    %171 = tpu.reciprocal %170 {approx = true} : vector<8x1xf32> -> vector<8x1xf32>
    %172 = vector.broadcast %171 : vector<8x1xf32> to vector<8x16xf32>
    %173 = arith.mulf %168, %172 : vector<8x16xf32>
    %174 = arith.truncf %173 : vector<8x16xf32> to vector<8x16xbf16>
    %cst_72 = arith.constant dense<0.000000e+00> : vector<8x8xf32>
    %175 = tpu.matmul %174, %161, %cst_72 {dimension_numbers = #tpu.dot_dimension_numbers<[1], [0], [0], [1], [0, 0, 1, 1], [], []>} : vector<8x16xbf16>, vector<16x8xbf16>, vector<8x8xf32> -> vector<8x8xf32>
    %176 = arith.truncf %175 : vector<8x8xf32> to vector<8x8xbf16>
    %c0_73 = arith.constant 0 : index
    %c0_74 = arith.constant 0 : index
    %177 = vector.load %arg20[%c0_73, %c0_74] : memref<32x32xbf16, #tpu.memory_space<vmem>>, vector<8x32xbf16>
    %cst_75 = arith.constant dense<0.000000e+00> : vector<8x32xf32>
    %178 = tpu.matmul %176, %177, %cst_75 {dimension_numbers = #tpu.dot_dimension_numbers<[1], [0], [0], [1], [0, 0, 1, 1], [], []>} : vector<8x8xbf16>, vector<8x32xbf16>, vector<8x32xf32> -> vector<8x32xf32>
    %179 = arith.addf %157, %178 : vector<8x32xf32>
    %180 = vector.extract_strided_slice %151 {offsets = [0, 8], sizes = [8, 8], strides = [1, 1]} : vector<8x32xf32> to vector<8x8xf32>
    %181 = arith.truncf %180 : vector<8x8xf32> to vector<8x8xbf16>
    %182 = vector.extract_strided_slice %141 {offsets = [0, 8], sizes = [16, 8], strides = [1, 1]} : vector<16x32xbf16> to vector<16x8xbf16>
    %183 = vector.extract_strided_slice %142 {offsets = [0, 8], sizes = [16, 8], strides = [1, 1]} : vector<16x32xbf16> to vector<16x8xbf16>
    %cst_76 = arith.constant dense<0.000000e+00> : vector<8x16xf32>
    %184 = tpu.matmul %181, %182, %cst_76 {dimension_numbers = #tpu.dot_dimension_numbers<[1], [1], [0], [0], [0, 0, 1, 0], [], []>} : vector<8x8xbf16>, vector<16x8xbf16>, vector<8x16xf32> -> vector<8x16xf32>
    %185 = arith.addf %184, %156 : vector<8x16xf32>
    %cst_77 = arith.constant dense<0xFF800000> : vector<8xf32>
    %186 = vector.multi_reduction <maximumf>, %185, %cst_77 [1] : vector<8x16xf32> to vector<8xf32>
    %187 = vector.shape_cast %186 : vector<8xf32> to vector<8x1xf32>
    %188 = vector.broadcast %187 : vector<8x1xf32> to vector<8x16xf32>
    %189 = arith.subf %185, %188 : vector<8x16xf32>
    %190 = math.exp %189 : vector<8x16xf32>
    %cst_78 = arith.constant dense<0.000000e+00> : vector<8xf32>
    %191 = vector.multi_reduction <add>, %190, %cst_78 [1] : vector<8x16xf32> to vector<8xf32>
    %192 = vector.shape_cast %191 : vector<8xf32> to vector<8x1xf32>
    %193 = tpu.reciprocal %192 {approx = true} : vector<8x1xf32> -> vector<8x1xf32>
    %194 = vector.broadcast %193 : vector<8x1xf32> to vector<8x16xf32>
    %195 = arith.mulf %190, %194 : vector<8x16xf32>
    %196 = arith.truncf %195 : vector<8x16xf32> to vector<8x16xbf16>
    %cst_79 = arith.constant dense<0.000000e+00> : vector<8x8xf32>
    %197 = tpu.matmul %196, %183, %cst_79 {dimension_numbers = #tpu.dot_dimension_numbers<[1], [0], [0], [1], [0, 0, 1, 1], [], []>} : vector<8x16xbf16>, vector<16x8xbf16>, vector<8x8xf32> -> vector<8x8xf32>
    %198 = arith.truncf %197 : vector<8x8xf32> to vector<8x8xbf16>
    %c8_80 = arith.constant 8 : index
    %c0_81 = arith.constant 0 : index
    %199 = vector.load %arg20[%c8_80, %c0_81] : memref<32x32xbf16, #tpu.memory_space<vmem>>, vector<8x32xbf16>
    %cst_82 = arith.constant dense<0.000000e+00> : vector<8x32xf32>
    %200 = tpu.matmul %198, %199, %cst_82 {dimension_numbers = #tpu.dot_dimension_numbers<[1], [0], [0], [1], [0, 0, 1, 1], [], []>} : vector<8x8xbf16>, vector<8x32xbf16>, vector<8x32xf32> -> vector<8x32xf32>
    %201 = arith.addf %179, %200 : vector<8x32xf32>
    %202 = vector.extract_strided_slice %151 {offsets = [0, 16], sizes = [8, 8], strides = [1, 1]} : vector<8x32xf32> to vector<8x8xf32>
    %203 = arith.truncf %202 : vector<8x8xf32> to vector<8x8xbf16>
    %204 = vector.extract_strided_slice %141 {offsets = [0, 16], sizes = [16, 8], strides = [1, 1]} : vector<16x32xbf16> to vector<16x8xbf16>
    %205 = vector.extract_strided_slice %142 {offsets = [0, 16], sizes = [16, 8], strides = [1, 1]} : vector<16x32xbf16> to vector<16x8xbf16>
    %cst_83 = arith.constant dense<0.000000e+00> : vector<8x16xf32>
    %206 = tpu.matmul %203, %204, %cst_83 {dimension_numbers = #tpu.dot_dimension_numbers<[1], [1], [0], [0], [0, 0, 1, 0], [], []>} : vector<8x8xbf16>, vector<16x8xbf16>, vector<8x16xf32> -> vector<8x16xf32>
    %207 = arith.addf %206, %156 : vector<8x16xf32>
    %cst_84 = arith.constant dense<0xFF800000> : vector<8xf32>
    %208 = vector.multi_reduction <maximumf>, %207, %cst_84 [1] : vector<8x16xf32> to vector<8xf32>
    %209 = vector.shape_cast %208 : vector<8xf32> to vector<8x1xf32>
    %210 = vector.broadcast %209 : vector<8x1xf32> to vector<8x16xf32>
    %211 = arith.subf %207, %210 : vector<8x16xf32>
    %212 = math.exp %211 : vector<8x16xf32>
    %cst_85 = arith.constant dense<0.000000e+00> : vector<8xf32>
    %213 = vector.multi_reduction <add>, %212, %cst_85 [1] : vector<8x16xf32> to vector<8xf32>
    %214 = vector.shape_cast %213 : vector<8xf32> to vector<8x1xf32>
    %215 = tpu.reciprocal %214 {approx = true} : vector<8x1xf32> -> vector<8x1xf32>
    %216 = vector.broadcast %215 : vector<8x1xf32> to vector<8x16xf32>
    %217 = arith.mulf %212, %216 : vector<8x16xf32>
    %218 = arith.truncf %217 : vector<8x16xf32> to vector<8x16xbf16>
    %cst_86 = arith.constant dense<0.000000e+00> : vector<8x8xf32>
    %219 = tpu.matmul %218, %205, %cst_86 {dimension_numbers = #tpu.dot_dimension_numbers<[1], [0], [0], [1], [0, 0, 1, 1], [], []>} : vector<8x16xbf16>, vector<16x8xbf16>, vector<8x8xf32> -> vector<8x8xf32>
    %220 = arith.truncf %219 : vector<8x8xf32> to vector<8x8xbf16>
    %c16_87 = arith.constant 16 : index
    %c0_88 = arith.constant 0 : index
    %221 = vector.load %arg20[%c16_87, %c0_88] : memref<32x32xbf16, #tpu.memory_space<vmem>>, vector<8x32xbf16>
    %cst_89 = arith.constant dense<0.000000e+00> : vector<8x32xf32>
    %222 = tpu.matmul %220, %221, %cst_89 {dimension_numbers = #tpu.dot_dimension_numbers<[1], [0], [0], [1], [0, 0, 1, 1], [], []>} : vector<8x8xbf16>, vector<8x32xbf16>, vector<8x32xf32> -> vector<8x32xf32>
    %223 = arith.addf %201, %222 : vector<8x32xf32>
    %224 = vector.extract_strided_slice %151 {offsets = [0, 24], sizes = [8, 8], strides = [1, 1]} : vector<8x32xf32> to vector<8x8xf32>
    %225 = arith.truncf %224 : vector<8x8xf32> to vector<8x8xbf16>
    %226 = vector.extract_strided_slice %141 {offsets = [0, 24], sizes = [16, 8], strides = [1, 1]} : vector<16x32xbf16> to vector<16x8xbf16>
    %227 = vector.extract_strided_slice %142 {offsets = [0, 24], sizes = [16, 8], strides = [1, 1]} : vector<16x32xbf16> to vector<16x8xbf16>
    %cst_90 = arith.constant dense<0.000000e+00> : vector<8x16xf32>
    %228 = tpu.matmul %225, %226, %cst_90 {dimension_numbers = #tpu.dot_dimension_numbers<[1], [1], [0], [0], [0, 0, 1, 0], [], []>} : vector<8x8xbf16>, vector<16x8xbf16>, vector<8x16xf32> -> vector<8x16xf32>
    %229 = arith.addf %228, %156 : vector<8x16xf32>
    %cst_91 = arith.constant dense<0xFF800000> : vector<8xf32>
    %230 = vector.multi_reduction <maximumf>, %229, %cst_91 [1] : vector<8x16xf32> to vector<8xf32>
    %231 = vector.shape_cast %230 : vector<8xf32> to vector<8x1xf32>
    %232 = vector.broadcast %231 : vector<8x1xf32> to vector<8x16xf32>
    %233 = arith.subf %229, %232 : vector<8x16xf32>
    %234 = math.exp %233 : vector<8x16xf32>
    %cst_92 = arith.constant dense<0.000000e+00> : vector<8xf32>
    %235 = vector.multi_reduction <add>, %234, %cst_92 [1] : vector<8x16xf32> to vector<8xf32>
    %236 = vector.shape_cast %235 : vector<8xf32> to vector<8x1xf32>
    %237 = tpu.reciprocal %236 {approx = true} : vector<8x1xf32> -> vector<8x1xf32>
    %238 = vector.broadcast %237 : vector<8x1xf32> to vector<8x16xf32>
    %239 = arith.mulf %234, %238 : vector<8x16xf32>
    %240 = arith.truncf %239 : vector<8x16xf32> to vector<8x16xbf16>
    %cst_93 = arith.constant dense<0.000000e+00> : vector<8x8xf32>
    %241 = tpu.matmul %240, %227, %cst_93 {dimension_numbers = #tpu.dot_dimension_numbers<[1], [0], [0], [1], [0, 0, 1, 1], [], []>} : vector<8x16xbf16>, vector<16x8xbf16>, vector<8x8xf32> -> vector<8x8xf32>
    %242 = arith.truncf %241 : vector<8x8xf32> to vector<8x8xbf16>
    %c24_94 = arith.constant 24 : index
    %c0_95 = arith.constant 0 : index
    %243 = vector.load %arg20[%c24_94, %c0_95] : memref<32x32xbf16, #tpu.memory_space<vmem>>, vector<8x32xbf16>
    %cst_96 = arith.constant dense<0.000000e+00> : vector<8x32xf32>
    %244 = tpu.matmul %242, %243, %cst_96 {dimension_numbers = #tpu.dot_dimension_numbers<[1], [0], [0], [1], [0, 0, 1, 1], [], []>} : vector<8x8xbf16>, vector<8x32xbf16>, vector<8x32xf32> -> vector<8x32xf32>
    %245 = arith.addf %223, %244 : vector<8x32xf32>
    %c0_97 = arith.constant 0 : index
    %c0_98 = arith.constant 0 : index
    %246 = vector.load %arg21[%c0_97, %c0_98] : memref<1x32xf32, #tpu.memory_space<vmem>>, vector<1x32xf32>
    %247 = vector.broadcast %246 : vector<1x32xf32> to vector<8x32xf32>
    %248 = arith.addf %245, %247 : vector<8x32xf32>
    %249 = arith.addf %140, %248 : vector<8x32xf32>
    %c0_99 = arith.constant 0 : index
    %c0_100 = arith.constant 0 : index
    %250 = vector.load %arg28[%c0_99, %c0_100] : memref<1x32xf32, #tpu.memory_space<vmem>>, vector<1x32xf32>
    %c0_101 = arith.constant 0 : index
    %c0_102 = arith.constant 0 : index
    %251 = vector.load %arg29[%c0_101, %c0_102] : memref<1x32xf32, #tpu.memory_space<vmem>>, vector<1x32xf32>
    %cst_103 = arith.constant dense<0.000000e+00> : vector<8xf32>
    %252 = vector.multi_reduction <add>, %249, %cst_103 [1] : vector<8x32xf32> to vector<8xf32>
    %253 = vector.shape_cast %252 : vector<8xf32> to vector<8x1xf32>
    %cst_104 = arith.constant 3.200000e+01 : f32
    %254 = vector.broadcast %cst_104 : f32 to vector<8x1xf32>
    %255 = arith.divf %253, %254 : vector<8x1xf32>
    %256 = vector.broadcast %255 : vector<8x1xf32> to vector<8x32xf32>
    %257 = arith.subf %249, %256 : vector<8x32xf32>
    %258 = arith.mulf %257, %257 : vector<8x32xf32>
    %cst_105 = arith.constant dense<0.000000e+00> : vector<8xf32>
    %259 = vector.multi_reduction <add>, %258, %cst_105 [1] : vector<8x32xf32> to vector<8xf32>
    %260 = vector.shape_cast %259 : vector<8xf32> to vector<8x1xf32>
    %cst_106 = arith.constant 3.200000e+01 : f32
    %261 = vector.broadcast %cst_106 : f32 to vector<8x1xf32>
    %262 = arith.divf %260, %261 : vector<8x1xf32>
    %263 = vector.broadcast %255 : vector<8x1xf32> to vector<8x32xf32>
    %264 = arith.subf %249, %263 : vector<8x32xf32>
    %cst_107 = arith.constant 9.99999974E-6 : f32
    %265 = vector.broadcast %cst_107 : f32 to vector<8x1xf32>
    %266 = arith.addf %262, %265 : vector<8x1xf32>
    %267 = math.rsqrt %266 : vector<8x1xf32>
    %268 = vector.broadcast %267 : vector<8x1xf32> to vector<8x32xf32>
    %269 = arith.mulf %264, %268 : vector<8x32xf32>
    %270 = vector.broadcast %250 : vector<1x32xf32> to vector<8x32xf32>
    %271 = arith.mulf %269, %270 : vector<8x32xf32>
    %272 = vector.broadcast %251 : vector<1x32xf32> to vector<8x32xf32>
    %273 = arith.addf %271, %272 : vector<8x32xf32>
    %274 = arith.truncf %273 : vector<8x32xf32> to vector<8x32xbf16>
    %cst_108 = arith.constant 0.000000e+00 : f32
    %275 = vector.broadcast %cst_108 : f32 to vector<8x32xf32>
    %c0_109 = arith.constant 0 : index
    %c0_110 = arith.constant 0 : index
    %276 = vector.load %arg22[%c0_109, %c0_110] : memref<32x64xbf16, #tpu.memory_space<vmem>>, vector<32x64xbf16>
    %cst_111 = arith.constant dense<0.000000e+00> : vector<8x64xf32>
    %277 = tpu.matmul %274, %276, %cst_111 {dimension_numbers = #tpu.dot_dimension_numbers<[1], [0], [0], [1], [0, 0, 1, 1], [], []>} : vector<8x32xbf16>, vector<32x64xbf16>, vector<8x64xf32> -> vector<8x64xf32>
    %c0_112 = arith.constant 0 : index
    %c0_113 = arith.constant 0 : index
    %278 = vector.load %arg23[%c0_112, %c0_113] : memref<1x64xf32, #tpu.memory_space<vmem>>, vector<1x64xf32>
    %279 = vector.broadcast %278 : vector<1x64xf32> to vector<8x64xf32>
    %280 = arith.addf %277, %279 : vector<8x64xf32>
    %cst_114 = arith.constant 0.000000e+00 : f32
    %281 = vector.broadcast %cst_114 : f32 to vector<8x64xf32>
    %282 = arith.maximumf %280, %281 : vector<8x64xf32>
    %283 = arith.truncf %282 : vector<8x64xf32> to vector<8x64xbf16>
    %c0_115 = arith.constant 0 : index
    %c0_116 = arith.constant 0 : index
    %284 = vector.load %arg24[%c0_115, %c0_116] : memref<64x32xbf16, #tpu.memory_space<vmem>>, vector<64x32xbf16>
    %cst_117 = arith.constant dense<0.000000e+00> : vector<8x32xf32>
    %285 = tpu.matmul %283, %284, %cst_117 {dimension_numbers = #tpu.dot_dimension_numbers<[1], [0], [0], [1], [0, 0, 1, 1], [], []>} : vector<8x64xbf16>, vector<64x32xbf16>, vector<8x32xf32> -> vector<8x32xf32>
    %286 = arith.addf %275, %285 : vector<8x32xf32>
    %c0_118 = arith.constant 0 : index
    %c0_119 = arith.constant 0 : index
    %287 = vector.load %arg25[%c0_118, %c0_119] : memref<1x32xf32, #tpu.memory_space<vmem>>, vector<1x32xf32>
    %288 = vector.broadcast %287 : vector<1x32xf32> to vector<8x32xf32>
    %289 = arith.addf %286, %288 : vector<8x32xf32>
    %290 = arith.addf %273, %289 : vector<8x32xf32>
    %c0_120 = arith.constant 0 : index
    %c0_121 = arith.constant 0 : index
    %291 = vector.load %arg30[%c0_120, %c0_121] : memref<1x32xf32, #tpu.memory_space<vmem>>, vector<1x32xf32>
    %c0_122 = arith.constant 0 : index
    %c0_123 = arith.constant 0 : index
    %292 = vector.load %arg31[%c0_122, %c0_123] : memref<1x32xf32, #tpu.memory_space<vmem>>, vector<1x32xf32>
    %cst_124 = arith.constant dense<0.000000e+00> : vector<8xf32>
    %293 = vector.multi_reduction <add>, %290, %cst_124 [1] : vector<8x32xf32> to vector<8xf32>
    %294 = vector.shape_cast %293 : vector<8xf32> to vector<8x1xf32>
    %cst_125 = arith.constant 3.200000e+01 : f32
    %295 = vector.broadcast %cst_125 : f32 to vector<8x1xf32>
    %296 = arith.divf %294, %295 : vector<8x1xf32>
    %297 = vector.broadcast %296 : vector<8x1xf32> to vector<8x32xf32>
    %298 = arith.subf %290, %297 : vector<8x32xf32>
    %299 = arith.mulf %298, %298 : vector<8x32xf32>
    %cst_126 = arith.constant dense<0.000000e+00> : vector<8xf32>
    %300 = vector.multi_reduction <add>, %299, %cst_126 [1] : vector<8x32xf32> to vector<8xf32>
    %301 = vector.shape_cast %300 : vector<8xf32> to vector<8x1xf32>
    %cst_127 = arith.constant 3.200000e+01 : f32
    %302 = vector.broadcast %cst_127 : f32 to vector<8x1xf32>
    %303 = arith.divf %301, %302 : vector<8x1xf32>
    %304 = vector.broadcast %296 : vector<8x1xf32> to vector<8x32xf32>
    %305 = arith.subf %290, %304 : vector<8x32xf32>
    %cst_128 = arith.constant 9.99999974E-6 : f32
    %306 = vector.broadcast %cst_128 : f32 to vector<8x1xf32>
    %307 = arith.addf %303, %306 : vector<8x1xf32>
    %308 = math.rsqrt %307 : vector<8x1xf32>
    %309 = vector.broadcast %308 : vector<8x1xf32> to vector<8x32xf32>
    %310 = arith.mulf %305, %309 : vector<8x32xf32>
    %311 = vector.broadcast %291 : vector<1x32xf32> to vector<8x32xf32>
    %312 = arith.mulf %310, %311 : vector<8x32xf32>
    %313 = vector.broadcast %292 : vector<1x32xf32> to vector<8x32xf32>
    %314 = arith.addf %312, %313 : vector<8x32xf32>
    %c0_129 = arith.constant 0 : index
    %c0_130 = arith.constant 0 : index
    %c0_131 = arith.constant 0 : index
    %315 = vector.load %arg32[%c0_129, %c0_130, %c0_131] : memref<1x8x32xf32, #tpu.memory_space<vmem>>, vector<1x8x32xf32>
    %316 = vector.shape_cast %315 : vector<1x8x32xf32> to vector<8x32xf32>
    %317 = vector.shape_cast %314 : vector<8x32xf32> to vector<1x8x32xf32>
    tpu.vector_store %arg32[%c0_129, %c0_130, %c0_131], %317 {strides = array<i32>} : memref<1x8x32xf32, #tpu.memory_space<vmem>>, vector<1x8x32xf32>,
    return
  }
  func.func @transform_0(%arg0: i32, %arg1: i32) -> (i32, i32, i32) {
    %c0_i32 = arith.constant 0 : i32
    %c0_i32_0 = arith.constant 0 : i32
    %c0_i32_1 = arith.constant 0 : i32
    return %arg0, %c0_i32, %c0_i32_0 : i32, i32, i32
  }
  func.func @transform_1(%arg0: i32, %arg1: i32) -> (i32, i32, i32) {
    %c0_i32 = arith.constant 0 : i32
    %c0_i32_0 = arith.constant 0 : i32
    %c0_i32_1 = arith.constant 0 : i32
    return %arg0, %c0_i32, %c0_i32_0 : i32, i32, i32
  }
  func.func @transform_2(%arg0: i32, %arg1: i32) -> (i32, i32) {
    %c0_i32 = arith.constant 0 : i32
    %c0_i32_0 = arith.constant 0 : i32
    return %arg1, %c0_i32 : i32, i32
  }
  func.func @transform_3(%arg0: i32, %arg1: i32) -> (i32, i32) {
    %c0_i32 = arith.constant 0 : i32
    %c0_i32_0 = arith.constant 0 : i32
    return %arg1, %c0_i32 : i32, i32
  }
  func.func @transform_4(%arg0: i32, %arg1: i32) -> (i32, i32) {
    %c0_i32 = arith.constant 0 : i32
    %c0_i32_0 = arith.constant 0 : i32
    %c0_i32_1 = arith.constant 0 : i32
    return %c0_i32, %c0_i32_0 : i32, i32
  }
  func.func @transform_5(%arg0: i32, %arg1: i32) -> (i32, i32) {
    %c0_i32 = arith.constant 0 : i32
    %c0_i32_0 = arith.constant 0 : i32
    %c0_i32_1 = arith.constant 0 : i32
    return %c0_i32, %c0_i32_0 : i32, i32
  }
  func.func @transform_6(%arg0: i32, %arg1: i32) -> (i32, i32) {
    %c0_i32 = arith.constant 0 : i32
    %c0_i32_0 = arith.constant 0 : i32
    %c0_i32_1 = arith.constant 0 : i32
    return %c0_i32, %c0_i32_0 : i32, i32
  }
  func.func @transform_7(%arg0: i32, %arg1: i32) -> (i32, i32) {
    %c0_i32 = arith.constant 0 : i32
    %c0_i32_0 = arith.constant 0 : i32
    %c0_i32_1 = arith.constant 0 : i32
    return %c0_i32, %c0_i32_0 : i32, i32
  }
  func.func @transform_8(%arg0: i32, %arg1: i32) -> (i32, i32) {
    %c0_i32 = arith.constant 0 : i32
    %c0_i32_0 = arith.constant 0 : i32
    %c0_i32_1 = arith.constant 0 : i32
    return %c0_i32, %c0_i32_0 : i32, i32
  }
  func.func @transform_9(%arg0: i32, %arg1: i32) -> (i32, i32) {
    %c0_i32 = arith.constant 0 : i32
    %c0_i32_0 = arith.constant 0 : i32
    %c0_i32_1 = arith.constant 0 : i32
    return %c0_i32, %c0_i32_0 : i32, i32
  }
  func.func @transform_10(%arg0: i32, %arg1: i32) -> (i32, i32) {
    %c0_i32 = arith.constant 0 : i32
    %c0_i32_0 = arith.constant 0 : i32
    %c0_i32_1 = arith.constant 0 : i32
    return %c0_i32, %c0_i32_0 : i32, i32
  }
  func.func @transform_11(%arg0: i32, %arg1: i32) -> (i32, i32) {
    %c0_i32 = arith.constant 0 : i32
    %c0_i32_0 = arith.constant 0 : i32
    %c0_i32_1 = arith.constant 0 : i32
    return %c0_i32, %c0_i32_0 : i32, i32
  }
  func.func @transform_12(%arg0: i32, %arg1: i32) -> (i32, i32) {
    %c0_i32 = arith.constant 0 : i32
    %c0_i32_0 = arith.constant 0 : i32
    %c0_i32_1 = arith.constant 0 : i32
    return %c0_i32, %c0_i32_0 : i32, i32
  }
  func.func @transform_13(%arg0: i32, %arg1: i32) -> (i32, i32) {
    %c0_i32 = arith.constant 0 : i32
    %c0_i32_0 = arith.constant 0 : i32
    %c0_i32_1 = arith.constant 0 : i32
    return %c0_i32, %c0_i32_0 : i32, i32
  }
  func.func @transform_14(%arg0: i32, %arg1: i32) -> (i32, i32) {
    %c0_i32 = arith.constant 0 : i32
    %c0_i32_0 = arith.constant 0 : i32
    %c0_i32_1 = arith.constant 0 : i32
    return %c0_i32, %c0_i32_0 : i32, i32
  }
  func.func @transform_15(%arg0: i32, %arg1: i32) -> (i32, i32) {
    %c0_i32 = arith.constant 0 : i32
    %c0_i32_0 = arith.constant 0 : i32
    %c0_i32_1 = arith.constant 0 : i32
    return %c0_i32, %c0_i32_0 : i32, i32
  }
  func.func @transform_16(%arg0: i32, %arg1: i32) -> (i32, i32) {
    %c0_i32 = arith.constant 0 : i32
    %c0_i32_0 = arith.constant 0 : i32
    %c0_i32_1 = arith.constant 0 : i32
    return %c0_i32, %c0_i32_0 : i32, i32
  }
  func.func @transform_17(%arg0: i32, %arg1: i32) -> (i32, i32) {
    %c0_i32 = arith.constant 0 : i32
    %c0_i32_0 = arith.constant 0 : i32
    %c0_i32_1 = arith.constant 0 : i32
    return %c0_i32, %c0_i32_0 : i32, i32
  }
  func.func @transform_18(%arg0: i32, %arg1: i32) -> (i32, i32) {
    %c0_i32 = arith.constant 0 : i32
    %c0_i32_0 = arith.constant 0 : i32
    %c0_i32_1 = arith.constant 0 : i32
    return %c0_i32, %c0_i32_0 : i32, i32
  }
  func.func @transform_19(%arg0: i32, %arg1: i32) -> (i32, i32) {
    %c0_i32 = arith.constant 0 : i32
    %c0_i32_0 = arith.constant 0 : i32
    %c0_i32_1 = arith.constant 0 : i32
    return %c0_i32, %c0_i32_0 : i32, i32
  }
  func.func @transform_20(%arg0: i32, %arg1: i32) -> (i32, i32) {
    %c0_i32 = arith.constant 0 : i32
    %c0_i32_0 = arith.constant 0 : i32
    %c0_i32_1 = arith.constant 0 : i32
    return %c0_i32, %c0_i32_0 : i32, i32
  }
  func.func @transform_21(%arg0: i32, %arg1: i32) -> (i32, i32) {
    %c0_i32 = arith.constant 0 : i32
    %c0_i32_0 = arith.constant 0 : i32
    %c0_i32_1 = arith.constant 0 : i32
    return %c0_i32, %c0_i32_0 : i32, i32
  }
  func.func @transform_22(%arg0: i32, %arg1: i32) -> (i32, i32) {
    %c0_i32 = arith.constant 0 : i32
    %c0_i32_0 = arith.constant 0 : i32
    %c0_i32_1 = arith.constant 0 : i32
    return %c0_i32, %c0_i32_0 : i32, i32
  }
  func.func @transform_23(%arg0: i32, %arg1: i32) -> (i32, i32) {
    %c0_i32 = arith.constant 0 : i32
    %c0_i32_0 = arith.constant 0 : i32
    %c0_i32_1 = arith.constant 0 : i32
    return %c0_i32, %c0_i32_0 : i32, i32
  }
  func.func @transform_24(%arg0: i32, %arg1: i32) -> (i32, i32) {
    %c0_i32 = arith.constant 0 : i32
    %c0_i32_0 = arith.constant 0 : i32
    %c0_i32_1 = arith.constant 0 : i32
    return %c0_i32, %c0_i32_0 : i32, i32
  }
  func.func @transform_25(%arg0: i32, %arg1: i32) -> (i32, i32) {
    %c0_i32 = arith.constant 0 : i32
    %c0_i32_0 = arith.constant 0 : i32
    %c0_i32_1 = arith.constant 0 : i32
    return %c0_i32, %c0_i32_0 : i32, i32
  }
  func.func @transform_26(%arg0: i32, %arg1: i32) -> (i32, i32) {
    %c0_i32 = arith.constant 0 : i32
    %c0_i32_0 = arith.constant 0 : i32
    %c0_i32_1 = arith.constant 0 : i32
    return %c0_i32, %c0_i32_0 : i32, i32
  }
  func.func @transform_27(%arg0: i32, %arg1: i32) -> (i32, i32) {
    %c0_i32 = arith.constant 0 : i32
    %c0_i32_0 = arith.constant 0 : i32
    %c0_i32_1 = arith.constant 0 : i32
    return %c0_i32, %c0_i32_0 : i32, i32
  }
  func.func @transform_28(%arg0: i32, %arg1: i32) -> (i32, i32) {
    %c0_i32 = arith.constant 0 : i32
    %c0_i32_0 = arith.constant 0 : i32
    %c0_i32_1 = arith.constant 0 : i32
    return %c0_i32, %c0_i32_0 : i32, i32
  }
  func.func @transform_29(%arg0: i32, %arg1: i32) -> (i32, i32) {
    %c0_i32 = arith.constant 0 : i32
    %c0_i32_0 = arith.constant 0 : i32
    %c0_i32_1 = arith.constant 0 : i32
    return %c0_i32, %c0_i32_0 : i32, i32
  }
  func.func @transform_30(%arg0: i32, %arg1: i32) -> (i32, i32, i32) {
    %c0_i32 = arith.constant 0 : i32
    %c0_i32_0 = arith.constant 0 : i32
    return %arg0, %arg1, %c0_i32 : i32, i32, i32
  }
}

module attributes {stable_mosaic.version = 11 : i64} {
  func.func @_decoder_layer_kernel(%arg0: i32, %arg1: i32, %arg2: memref<1x8x32xf32, #tpu.memory_space<vmem>>, %arg3: memref<1x16x32xf32, #tpu.memory_space<vmem>>, %arg4: memref<8x8xf32, #tpu.memory_space<vmem>>, %arg5: memref<8x16xf32, #tpu.memory_space<vmem>>, %arg6: memref<32x32xbf16, #tpu.memory_space<vmem>>, %arg7: memref<1x32xf32, #tpu.memory_space<vmem>>, %arg8: memref<32x32xbf16, #tpu.memory_space<vmem>>, %arg9: memref<1x32xf32, #tpu.memory_space<vmem>>, %arg10: memref<32x32xbf16, #tpu.memory_space<vmem>>, %arg11: memref<1x32xf32, #tpu.memory_space<vmem>>, %arg12: memref<32x32xbf16, #tpu.memory_space<vmem>>, %arg13: memref<1x32xf32, #tpu.memory_space<vmem>>, %arg14: memref<32x32xbf16, #tpu.memory_space<vmem>>, %arg15: memref<1x32xf32, #tpu.memory_space<vmem>>, %arg16: memref<32x32xbf16, #tpu.memory_space<vmem>>, %arg17: memref<1x32xf32, #tpu.memory_space<vmem>>, %arg18: memref<32x32xbf16, #tpu.memory_space<vmem>>, %arg19: memref<1x32xf32, #tpu.memory_space<vmem>>, %arg20: memref<32x32xbf16, #tpu.memory_space<vmem>>, %arg21: memref<1x32xf32, #tpu.memory_space<vmem>>, %arg22: memref<32x64xbf16, #tpu.memory_space<vmem>>, %arg23: memref<1x64xf32, #tpu.memory_space<vmem>>, %arg24: memref<64x32xbf16, #tpu.memory_space<vmem>>, %arg25: memref<1x32xf32, #tpu.memory_space<vmem>>, %arg26: memref<1x32xf32, #tpu.memory_space<vmem>>, %arg27: memref<1x32xf32, #tpu.memory_space<vmem>>, %arg28: memref<1x32xf32, #tpu.memory_space<vmem>>, %arg29: memref<1x32xf32, #tpu.memory_space<vmem>>, %arg30: memref<1x32xf32, #tpu.memory_space<vmem>>, %arg31: memref<1x32xf32, #tpu.memory_space<vmem>>, %arg32: memref<1x8x32xf32, #tpu.memory_space<vmem>>, %arg33: memref<8x32xbf16, #tpu.memory_space<vmem>>, %arg34: memref<8x32xbf16, #tpu.memory_space<vmem>>, %arg35: memref<16x32xbf16, #tpu.memory_space<vmem>>, %arg36: memref<16x32xbf16, #tpu.memory_space<vmem>>) attributes {dimension_semantics = [#tpu.dimension_semantics<parallel>, #tpu.dimension_semantics<arbitrary>], iteration_bounds = array<i64: 2, 1>, scalar_prefetch = 0 : i64, scratch_operands = 4 : i64, tpu.core_type = #tpu.core_type<tc>, window_params = [{transform_indices = @transform_0, window_bounds = array<i64: 1, 8, 32>}, {transform_indices = @transform_1, window_bounds = array<i64: 1, 16, 32>}, {transform_indices = @transform_2, window_bounds = array<i64: 8, 8>}, {transform_indices = @transform_3, window_bounds = array<i64: 8, 16>}, {pipeline_mode = #tpu.pipeline_mode<synchronous>, transform_indices = @transform_4, window_bounds = array<i64: 32, 32>}, {pipeline_mode = #tpu.pipeline_mode<synchronous>, transform_indices = @transform_5, window_bounds = array<i64: 1, 32>}, {pipeline_mode = #tpu.pipeline_mode<synchronous>, transform_indices = @transform_6, window_bounds = array<i64: 32, 32>}, {pipeline_mode = #tpu.pipeline_mode<synchronous>, transform_indices = @transform_7, window_bounds = array<i64: 1, 32>}, {pipeline_mode = #tpu.pipeline_mode<synchronous>, transform_indices = @transform_8, window_bounds = array<i64: 32, 32>}, {pipeline_mode = #tpu.pipeline_mode<synchronous>, transform_indices = @transform_9, window_bounds = array<i64: 1, 32>}, {pipeline_mode = #tpu.pipeline_mode<synchronous>, transform_indices = @transform_10, window_bounds = array<i64: 32, 32>}, {pipeline_mode = #tpu.pipeline_mode<synchronous>, transform_indices = @transform_11, window_bounds = array<i64: 1, 32>}, {pipeline_mode = #tpu.pipeline_mode<synchronous>, transform_indices = @transform_12, window_bounds = array<i64: 32, 32>}, {pipeline_mode = #tpu.pipeline_mode<synchronous>, transform_indices = @transform_13, window_bounds = array<i64: 1, 32>}, {pipeline_mode = #tpu.pipeline_mode<synchronous>, transform_indices = @transform_14, window_bounds = array<i64: 32, 32>}, {pipeline_mode = #tpu.pipeline_mode<synchronous>, transform_indices = @transform_15, window_bounds = array<i64: 1, 32>}, {pipeline_mode = #tpu.pipeline_mode<synchronous>, transform_indices = @transform_16, window_bounds = array<i64: 32, 32>}, {pipeline_mode = #tpu.pipeline_mode<synchronous>, transform_indices = @transform_17, window_bounds = array<i64: 1, 32>}, {pipeline_mode = #tpu.pipeline_mode<synchronous>, transform_indices = @transform_18, window_bounds = array<i64: 32, 32>}, {pipeline_mode = #tpu.pipeline_mode<synchronous>, transform_indices = @transform_19, window_bounds = array<i64: 1, 32>}, {pipeline_mode = #tpu.pipeline_mode<synchronous>, transform_indices = @transform_20, window_bounds = array<i64: 32, 64>}, {pipeline_mode = #tpu.pipeline_mode<synchronous>, transform_indices = @transform_21, window_bounds = array<i64: 1, 64>}, {pipeline_mode = #tpu.pipeline_mode<synchronous>, transform_indices = @transform_22, window_bounds = array<i64: 64, 32>}, {pipeline_mode = #tpu.pipeline_mode<synchronous>, transform_indices = @transform_23, window_bounds = array<i64: 1, 32>}, {pipeline_mode = #tpu.pipeline_mode<synchronous>, transform_indices = @transform_24, window_bounds = array<i64: 1, 32>}, {pipeline_mode = #tpu.pipeline_mode<synchronous>, transform_indices = @transform_25, window_bounds = array<i64: 1, 32>}, {pipeline_mode = #tpu.pipeline_mode<synchronous>, transform_indices = @transform_26, window_bounds = array<i64: 1, 32>}, {pipeline_mode = #tpu.pipeline_mode<synchronous>, transform_indices = @transform_27, window_bounds = array<i64: 1, 32>}, {pipeline_mode = #tpu.pipeline_mode<synchronous>, transform_indices = @transform_28, window_bounds = array<i64: 1, 32>}, {pipeline_mode = #tpu.pipeline_mode<synchronous>, transform_indices = @transform_29, window_bounds = array<i64: 1, 32>}, {transform_indices = @transform_30, window_bounds = array<i64: 1, 8, 32>}]} {
    %c0_i32 = arith.constant 0 : i32
    %0 = arith.cmpi eq, %arg1, %c0_i32 : i32
    %1 = arith.extui %0 : i1 to i32
    %c0_i32_0 = arith.constant 0 : i32
    %2 = arith.cmpi ne, %1, %c0_i32_0 : i32
    scf.if %2 {
      %c0_132 = arith.constant 0 : index
      %c0_133 = arith.constant 0 : index
      %c0_134 = arith.constant 0 : index
      %318 = vector.load %arg2[%c0_132, %c0_133, %c0_134] : memref<1x8x32xf32, #tpu.memory_space<vmem>>, vector<1x8x32xf32>
      %319 = vector.shape_cast %318 : vector<1x8x32xf32> to vector<8x32xf32>
      %320 = arith.truncf %319 : vector<8x32xf32> to vector<8x32xbf16>
      %c0_135 = arith.constant 0 : index
      %c0_136 = arith.constant 0 : index
      %c0_137 = arith.constant 0 : index
      %321 = vector.load %arg3[%c0_135, %c0_136, %c0_137] : memref<1x16x32xf32, #tpu.memory_space<vmem>>, vector<1x16x32xf32>
      %322 = vector.shape_cast %321 : vector<1x16x32xf32> to vector<16x32xf32>
      %323 = arith.truncf %322 : vector<16x32xf32> to vector<16x32xbf16>
      %c0_138 = arith.constant 0 : index
      %c0_139 = arith.constant 0 : index
      %324 = vector.load %arg8[%c0_138, %c0_139] : memref<32x32xbf16, #tpu.memory_space<vmem>>, vector<32x32xbf16>
      %cst_140 = arith.constant dense<0.000000e+00> : vector<8x32xf32>
      %325 = tpu.matmul %320, %324, %cst_140 {dimension_numbers = #tpu.dot_dimension_numbers<[1], [0], [0], [1], [0, 0, 1, 1], [], []>} : vector<8x32xbf16>, vector<32x32xbf16>, vector<8x32xf32> -> vector<8x32xf32>
      %c0_141 = arith.constant 0 : index
      %c0_142 = arith.constant 0 : index
      %326 = vector.load %arg9[%c0_141, %c0_142] : memref<1x32xf32, #tpu.memory_space<vmem>>, vector<1x32xf32>
      %327 = vector.broadcast %326 : vector<1x32xf32> to vector<8x32xf32>
      %328 = arith.addf %325, %327 : vector<8x32xf32>
      %329 = arith.truncf %328 : vector<8x32xf32> to vector<8x32xbf16>
      %c0_143 = arith.constant 0 : index
      %c0_144 = arith.constant 0 : index
      %330 = vector.load %arg33[%c0_143, %c0_144] : memref<8x32xbf16, #tpu.memory_space<vmem>>, vector<8x32xbf16>
      tpu.vector_store %arg33[%c0_143, %c0_144], %329 {strides = array<i32>} : memref<8x32xbf16, #tpu.memory_space<vmem>>, vector<8x32xbf16>,
      %c0_145 = arith.constant 0 : index
      %c0_146 = arith.constant 0 : index
      %331 = vector.load %arg10[%c0_145, %c0_146] : memref<32x32xbf16, #tpu.memory_space<vmem>>, vector<32x32xbf16>
      %cst_147 = arith.constant dense<0.000000e+00> : vector<8x32xf32>
      %332 = tpu.matmul %320, %331, %cst_147 {dimension_numbers = #tpu.dot_dimension_numbers<[1], [0], [0], [1], [0, 0, 1, 1], [], []>} : vector<8x32xbf16>, vector<32x32xbf16>, vector<8x32xf32> -> vector<8x32xf32>
      %c0_148 = arith.constant 0 : index
      %c0_149 = arith.constant 0 : index
      %333 = vector.load %arg11[%c0_148, %c0_149] : memref<1x32xf32, #tpu.memory_space<vmem>>, vector<1x32xf32>
      %334 = vector.broadcast %333 : vector<1x32xf32> to vector<8x32xf32>
      %335 = arith.addf %332, %334 : vector<8x32xf32>
      %336 = arith.truncf %335 : vector<8x32xf32> to vector<8x32xbf16>
      %c0_150 = arith.constant 0 : index
      %c0_151 = arith.constant 0 : index
      %337 = vector.load %arg34[%c0_150, %c0_151] : memref<8x32xbf16, #tpu.memory_space<vmem>>, vector<8x32xbf16>
      tpu.vector_store %arg34[%c0_150, %c0_151], %336 {strides = array<i32>} : memref<8x32xbf16, #tpu.memory_space<vmem>>, vector<8x32xbf16>,
      %c0_152 = arith.constant 0 : index
      %c0_153 = arith.constant 0 : index
      %338 = vector.load %arg16[%c0_152, %c0_153] : memref<32x32xbf16, #tpu.memory_space<vmem>>, vector<32x32xbf16>
      %cst_154 = arith.constant dense<0.000000e+00> : vector<16x32xf32>
      %339 = tpu.matmul %323, %338, %cst_154 {dimension_numbers = #tpu.dot_dimension_numbers<[1], [0], [0], [1], [0, 0, 1, 1], [], []>} : vector<16x32xbf16>, vector<32x32xbf16>, vector<16x32xf32> -> vector<16x32xf32>
      %c0_155 = arith.constant 0 : index
      %c0_156 = arith.constant 0 : index
      %340 = vector.load %arg17[%c0_155, %c0_156] : memref<1x32xf32, #tpu.memory_space<vmem>>, vector<1x32xf32>
      %341 = vector.broadcast %340 : vector<1x32xf32> to vector<16x32xf32>
      %342 = arith.addf %339, %341 : vector<16x32xf32>
      %343 = arith.truncf %342 : vector<16x32xf32> to vector<16x32xbf16>
      %c0_157 = arith.constant 0 : index
      %c0_158 = arith.constant 0 : index
      %344 = vector.load %arg35[%c0_157, %c0_158] : memref<16x32xbf16, #tpu.memory_space<vmem>>, vector<16x32xbf16>
      tpu.vector_store %arg35[%c0_157, %c0_158], %343 {strides = array<i32>} : memref<16x32xbf16, #tpu.memory_space<vmem>>, vector<16x32xbf16>,
      %c0_159 = arith.constant 0 : index
      %c0_160 = arith.constant 0 : index
      %345 = vector.load %arg18[%c0_159, %c0_160] : memref<32x32xbf16, #tpu.memory_space<vmem>>, vector<32x32xbf16>
      %cst_161 = arith.constant dense<0.000000e+00> : vector<16x32xf32>
      %346 = tpu.matmul %323, %345, %cst_161 {dimension_numbers = #tpu.dot_dimension_numbers<[1], [0], [0], [1], [0, 0, 1, 1], [], []>} : vector<16x32xbf16>, vector<32x32xbf16>, vector<16x32xf32> -> vector<16x32xf32>
      %c0_162 = arith.constant 0 : index
      %c0_163 = arith.constant 0 : index
      %347 = vector.load %arg19[%c0_162, %c0_163] : memref<1x32xf32, #tpu.memory_space<vmem>>, vector<1x32xf32>
      %348 = vector.broadcast %347 : vector<1x32xf32> to vector<16x32xf32>
      %349 = arith.addf %346, %348 : vector<16x32xf32>
      %350 = arith.truncf %349 : vector<16x32xf32> to vector<16x32xbf16>
      %c0_164 = arith.constant 0 : index
      %c0_165 = arith.constant 0 : index
      %351 = vector.load %arg36[%c0_164, %c0_165] : memref<16x32xbf16, #tpu.memory_space<vmem>>, vector<16x32xbf16>
      tpu.vector_store %arg36[%c0_164, %c0_165], %350 {strides = array<i32>} : memref<16x32xbf16, #tpu.memory_space<vmem>>, vector<16x32xbf16>,
    } else {
    }
    %c8_i32 = arith.constant 8 : i32
    %3 = arith.muli %arg1, %c8_i32 : i32
    %4 = tpu.assume_multiple %3, 8 : i32
    %c0 = arith.constant 0 : index
    %5 = arith.index_cast %4 : i32 to index
    %c0_1 = arith.constant 0 : index
    %6 = vector.load %arg2[%c0, %5, %c0_1] : memref<1x8x32xf32, #tpu.memory_space<vmem>>, vector<1x8x32xf32>
    %7 = vector.shape_cast %6 : vector<1x8x32xf32> to vector<8x32xf32>
    %c0_2 = arith.constant 0 : index
    %c0_3 = arith.constant 0 : index
    %8 = vector.load %arg33[%c0_2, %c0_3] : memref<8x32xbf16, #tpu.memory_space<vmem>>, vector<8x32xbf16>
    %c0_4 = arith.constant 0 : index
    %c0_5 = arith.constant 0 : index
    %9 = vector.load %arg34[%c0_4, %c0_5] : memref<8x32xbf16, #tpu.memory_space<vmem>>, vector<8x32xbf16>
    %c0_6 = arith.constant 0 : index
    %c0_7 = arith.constant 0 : index
    %10 = vector.load %arg4[%c0_6, %c0_7] : memref<8x8xf32, #tpu.memory_space<vmem>>, vector<8x8xf32>
    %11 = arith.truncf %7 : vector<8x32xf32> to vector<8x32xbf16>
    %c0_8 = arith.constant 0 : index
    %c0_9 = arith.constant 0 : index
    %12 = vector.load %arg6[%c0_8, %c0_9] : memref<32x32xbf16, #tpu.memory_space<vmem>>, vector<32x32xbf16>
    %cst = arith.constant dense<0.000000e+00> : vector<8x32xf32>
    %13 = tpu.matmul %11, %12, %cst {dimension_numbers = #tpu.dot_dimension_numbers<[1], [0], [0], [1], [0, 0, 1, 1], [], []>} : vector<8x32xbf16>, vector<32x32xbf16>, vector<8x32xf32> -> vector<8x32xf32>
    %c0_10 = arith.constant 0 : index
    %c0_11 = arith.constant 0 : index
    %14 = vector.load %arg7[%c0_10, %c0_11] : memref<1x32xf32, #tpu.memory_space<vmem>>, vector<1x32xf32>
    %15 = vector.broadcast %14 : vector<1x32xf32> to vector<8x32xf32>
    %16 = arith.addf %13, %15 : vector<8x32xf32>
    %cst_12 = arith.constant 0.353553385 : f32
    %17 = vector.broadcast %cst_12 : f32 to vector<8x32xf32>
    %18 = arith.mulf %16, %17 : vector<8x32xf32>
    %cst_13 = arith.constant 0.000000e+00 : f32
    %19 = vector.broadcast %cst_13 : f32 to vector<8x8xf32>
    %20 = arith.cmpf oeq, %10, %19 : vector<8x8xf32>
    %cst_14 = arith.constant -1.000000e+09 : f32
    %cst_15 = arith.constant 0.000000e+00 : f32
    %21 = vector.broadcast %cst_14 : f32 to vector<8x8xf32>
    %22 = vector.broadcast %cst_15 : f32 to vector<8x8xf32>
    %23 = arith.select %20, %21, %22 : vector<8x8xi1>, vector<8x8xf32>
    %cst_16 = arith.constant 0.000000e+00 : f32
    %24 = vector.broadcast %cst_16 : f32 to vector<8x32xf32>
    %25 = vector.extract_strided_slice %18 {offsets = [0, 0], sizes = [8, 8], strides = [1, 1]} : vector<8x32xf32> to vector<8x8xf32>
    %26 = arith.truncf %25 : vector<8x8xf32> to vector<8x8xbf16>
    %27 = vector.extract_strided_slice %8 {offsets = [0, 0], sizes = [8, 8], strides = [1, 1]} : vector<8x32xbf16> to vector<8x8xbf16>
    %28 = vector.extract_strided_slice %9 {offsets = [0, 0], sizes = [8, 8], strides = [1, 1]} : vector<8x32xbf16> to vector<8x8xbf16>
    %cst_17 = arith.constant dense<0.000000e+00> : vector<8x8xf32>
    %29 = tpu.matmul %26, %27, %cst_17 {dimension_numbers = #tpu.dot_dimension_numbers<[1], [1], [0], [0], [0, 0, 1, 0], [], []>} : vector<8x8xbf16>, vector<8x8xbf16>, vector<8x8xf32> -> vector<8x8xf32>
    %30 = arith.addf %29, %23 : vector<8x8xf32>
    %cst_18 = arith.constant dense<0xFF800000> : vector<8xf32>
    %31 = vector.multi_reduction <maximumf>, %30, %cst_18 [1] : vector<8x8xf32> to vector<8xf32>
    %32 = vector.shape_cast %31 : vector<8xf32> to vector<8x1xf32>
    %33 = vector.broadcast %32 : vector<8x1xf32> to vector<8x8xf32>
    %34 = arith.subf %30, %33 : vector<8x8xf32>
    %35 = math.exp %34 : vector<8x8xf32>
    %cst_19 = arith.constant dense<0.000000e+00> : vector<8xf32>
    %36 = vector.multi_reduction <add>, %35, %cst_19 [1] : vector<8x8xf32> to vector<8xf32>
    %37 = vector.shape_cast %36 : vector<8xf32> to vector<8x1xf32>
    %38 = tpu.reciprocal %37 {approx = true} : vector<8x1xf32> -> vector<8x1xf32>
    %39 = vector.broadcast %38 : vector<8x1xf32> to vector<8x8xf32>
    %40 = arith.mulf %35, %39 : vector<8x8xf32>
    %41 = arith.truncf %40 : vector<8x8xf32> to vector<8x8xbf16>
    %cst_20 = arith.constant dense<0.000000e+00> : vector<8x8xf32>
    %42 = tpu.matmul %41, %28, %cst_20 {dimension_numbers = #tpu.dot_dimension_numbers<[1], [0], [0], [1], [0, 0, 1, 1], [], []>} : vector<8x8xbf16>, vector<8x8xbf16>, vector<8x8xf32> -> vector<8x8xf32>
    %43 = arith.truncf %42 : vector<8x8xf32> to vector<8x8xbf16>
    %c0_21 = arith.constant 0 : index
    %c0_22 = arith.constant 0 : index
    %44 = vector.load %arg12[%c0_21, %c0_22] : memref<32x32xbf16, #tpu.memory_space<vmem>>, vector<8x32xbf16>
    %cst_23 = arith.constant dense<0.000000e+00> : vector<8x32xf32>
    %45 = tpu.matmul %43, %44, %cst_23 {dimension_numbers = #tpu.dot_dimension_numbers<[1], [0], [0], [1], [0, 0, 1, 1], [], []>} : vector<8x8xbf16>, vector<8x32xbf16>, vector<8x32xf32> -> vector<8x32xf32>
    %46 = arith.addf %24, %45 : vector<8x32xf32>
    %47 = vector.extract_strided_slice %18 {offsets = [0, 8], sizes = [8, 8], strides = [1, 1]} : vector<8x32xf32> to vector<8x8xf32>
    %48 = arith.truncf %47 : vector<8x8xf32> to vector<8x8xbf16>
    %49 = vector.extract_strided_slice %8 {offsets = [0, 8], sizes = [8, 8], strides = [1, 1]} : vector<8x32xbf16> to vector<8x8xbf16>
    %50 = vector.extract_strided_slice %9 {offsets = [0, 8], sizes = [8, 8], strides = [1, 1]} : vector<8x32xbf16> to vector<8x8xbf16>
    %cst_24 = arith.constant dense<0.000000e+00> : vector<8x8xf32>
    %51 = tpu.matmul %48, %49, %cst_24 {dimension_numbers = #tpu.dot_dimension_numbers<[1], [1], [0], [0], [0, 0, 1, 0], [], []>} : vector<8x8xbf16>, vector<8x8xbf16>, vector<8x8xf32> -> vector<8x8xf32>
    %52 = arith.addf %51, %23 : vector<8x8xf32>
    %cst_25 = arith.constant dense<0xFF800000> : vector<8xf32>
    %53 = vector.multi_reduction <maximumf>, %52, %cst_25 [1] : vector<8x8xf32> to vector<8xf32>
    %54 = vector.shape_cast %53 : vector<8xf32> to vector<8x1xf32>
    %55 = vector.broadcast %54 : vector<8x1xf32> to vector<8x8xf32>
    %56 = arith.subf %52, %55 : vector<8x8xf32>
    %57 = math.exp %56 : vector<8x8xf32>
    %cst_26 = arith.constant dense<0.000000e+00> : vector<8xf32>
    %58 = vector.multi_reduction <add>, %57, %cst_26 [1] : vector<8x8xf32> to vector<8xf32>
    %59 = vector.shape_cast %58 : vector<8xf32> to vector<8x1xf32>
    %60 = tpu.reciprocal %59 {approx = true} : vector<8x1xf32> -> vector<8x1xf32>
    %61 = vector.broadcast %60 : vector<8x1xf32> to vector<8x8xf32>
    %62 = arith.mulf %57, %61 : vector<8x8xf32>
    %63 = arith.truncf %62 : vector<8x8xf32> to vector<8x8xbf16>
    %cst_27 = arith.constant dense<0.000000e+00> : vector<8x8xf32>
    %64 = tpu.matmul %63, %50, %cst_27 {dimension_numbers = #tpu.dot_dimension_numbers<[1], [0], [0], [1], [0, 0, 1, 1], [], []>} : vector<8x8xbf16>, vector<8x8xbf16>, vector<8x8xf32> -> vector<8x8xf32>
    %65 = arith.truncf %64 : vector<8x8xf32> to vector<8x8xbf16>
    %c8 = arith.constant 8 : index
    %c0_28 = arith.constant 0 : index
    %66 = vector.load %arg12[%c8, %c0_28] : memref<32x32xbf16, #tpu.memory_space<vmem>>, vector<8x32xbf16>
    %cst_29 = arith.constant dense<0.000000e+00> : vector<8x32xf32>
    %67 = tpu.matmul %65, %66, %cst_29 {dimension_numbers = #tpu.dot_dimension_numbers<[1], [0], [0], [1], [0, 0, 1, 1], [], []>} : vector<8x8xbf16>, vector<8x32xbf16>, vector<8x32xf32> -> vector<8x32xf32>
    %68 = arith.addf %46, %67 : vector<8x32xf32>
    %69 = vector.extract_strided_slice %18 {offsets = [0, 16], sizes = [8, 8], strides = [1, 1]} : vector<8x32xf32> to vector<8x8xf32>
    %70 = arith.truncf %69 : vector<8x8xf32> to vector<8x8xbf16>
    %71 = vector.extract_strided_slice %8 {offsets = [0, 16], sizes = [8, 8], strides = [1, 1]} : vector<8x32xbf16> to vector<8x8xbf16>
    %72 = vector.extract_strided_slice %9 {offsets = [0, 16], sizes = [8, 8], strides = [1, 1]} : vector<8x32xbf16> to vector<8x8xbf16>
    %cst_30 = arith.constant dense<0.000000e+00> : vector<8x8xf32>
    %73 = tpu.matmul %70, %71, %cst_30 {dimension_numbers = #tpu.dot_dimension_numbers<[1], [1], [0], [0], [0, 0, 1, 0], [], []>} : vector<8x8xbf16>, vector<8x8xbf16>, vector<8x8xf32> -> vector<8x8xf32>
    %74 = arith.addf %73, %23 : vector<8x8xf32>
    %cst_31 = arith.constant dense<0xFF800000> : vector<8xf32>
    %75 = vector.multi_reduction <maximumf>, %74, %cst_31 [1] : vector<8x8xf32> to vector<8xf32>
    %76 = vector.shape_cast %75 : vector<8xf32> to vector<8x1xf32>
    %77 = vector.broadcast %76 : vector<8x1xf32> to vector<8x8xf32>
    %78 = arith.subf %74, %77 : vector<8x8xf32>
    %79 = math.exp %78 : vector<8x8xf32>
    %cst_32 = arith.constant dense<0.000000e+00> : vector<8xf32>
    %80 = vector.multi_reduction <add>, %79, %cst_32 [1] : vector<8x8xf32> to vector<8xf32>
    %81 = vector.shape_cast %80 : vector<8xf32> to vector<8x1xf32>
    %82 = tpu.reciprocal %81 {approx = true} : vector<8x1xf32> -> vector<8x1xf32>
    %83 = vector.broadcast %82 : vector<8x1xf32> to vector<8x8xf32>
    %84 = arith.mulf %79, %83 : vector<8x8xf32>
    %85 = arith.truncf %84 : vector<8x8xf32> to vector<8x8xbf16>
    %cst_33 = arith.constant dense<0.000000e+00> : vector<8x8xf32>
    %86 = tpu.matmul %85, %72, %cst_33 {dimension_numbers = #tpu.dot_dimension_numbers<[1], [0], [0], [1], [0, 0, 1, 1], [], []>} : vector<8x8xbf16>, vector<8x8xbf16>, vector<8x8xf32> -> vector<8x8xf32>
    %87 = arith.truncf %86 : vector<8x8xf32> to vector<8x8xbf16>
    %c16 = arith.constant 16 : index
    %c0_34 = arith.constant 0 : index
    %88 = vector.load %arg12[%c16, %c0_34] : memref<32x32xbf16, #tpu.memory_space<vmem>>, vector<8x32xbf16>
    %cst_35 = arith.constant dense<0.000000e+00> : vector<8x32xf32>
    %89 = tpu.matmul %87, %88, %cst_35 {dimension_numbers = #tpu.dot_dimension_numbers<[1], [0], [0], [1], [0, 0, 1, 1], [], []>} : vector<8x8xbf16>, vector<8x32xbf16>, vector<8x32xf32> -> vector<8x32xf32>
    %90 = arith.addf %68, %89 : vector<8x32xf32>
    %91 = vector.extract_strided_slice %18 {offsets = [0, 24], sizes = [8, 8], strides = [1, 1]} : vector<8x32xf32> to vector<8x8xf32>
    %92 = arith.truncf %91 : vector<8x8xf32> to vector<8x8xbf16>
    %93 = vector.extract_strided_slice %8 {offsets = [0, 24], sizes = [8, 8], strides = [1, 1]} : vector<8x32xbf16> to vector<8x8xbf16>
    %94 = vector.extract_strided_slice %9 {offsets = [0, 24], sizes = [8, 8], strides = [1, 1]} : vector<8x32xbf16> to vector<8x8xbf16>
    %cst_36 = arith.constant dense<0.000000e+00> : vector<8x8xf32>
    %95 = tpu.matmul %92, %93, %cst_36 {dimension_numbers = #tpu.dot_dimension_numbers<[1], [1], [0], [0], [0, 0, 1, 0], [], []>} : vector<8x8xbf16>, vector<8x8xbf16>, vector<8x8xf32> -> vector<8x8xf32>
    %96 = arith.addf %95, %23 : vector<8x8xf32>
    %cst_37 = arith.constant dense<0xFF800000> : vector<8xf32>
    %97 = vector.multi_reduction <maximumf>, %96, %cst_37 [1] : vector<8x8xf32> to vector<8xf32>
    %98 = vector.shape_cast %97 : vector<8xf32> to vector<8x1xf32>
    %99 = vector.broadcast %98 : vector<8x1xf32> to vector<8x8xf32>
    %100 = arith.subf %96, %99 : vector<8x8xf32>
    %101 = math.exp %100 : vector<8x8xf32>
    %cst_38 = arith.constant dense<0.000000e+00> : vector<8xf32>
    %102 = vector.multi_reduction <add>, %101, %cst_38 [1] : vector<8x8xf32> to vector<8xf32>
    %103 = vector.shape_cast %102 : vector<8xf32> to vector<8x1xf32>
    %104 = tpu.reciprocal %103 {approx = true} : vector<8x1xf32> -> vector<8x1xf32>
    %105 = vector.broadcast %104 : vector<8x1xf32> to vector<8x8xf32>
    %106 = arith.mulf %101, %105 : vector<8x8xf32>
    %107 = arith.truncf %106 : vector<8x8xf32> to vector<8x8xbf16>
    %cst_39 = arith.constant dense<0.000000e+00> : vector<8x8xf32>
    %108 = tpu.matmul %107, %94, %cst_39 {dimension_numbers = #tpu.dot_dimension_numbers<[1], [0], [0], [1], [0, 0, 1, 1], [], []>} : vector<8x8xbf16>, vector<8x8xbf16>, vector<8x8xf32> -> vector<8x8xf32>
    %109 = arith.truncf %108 : vector<8x8xf32> to vector<8x8xbf16>
    %c24 = arith.constant 24 : index
    %c0_40 = arith.constant 0 : index
    %110 = vector.load %arg12[%c24, %c0_40] : memref<32x32xbf16, #tpu.memory_space<vmem>>, vector<8x32xbf16>
    %cst_41 = arith.constant dense<0.000000e+00> : vector<8x32xf32>
    %111 = tpu.matmul %109, %110, %cst_41 {dimension_numbers = #tpu.dot_dimension_numbers<[1], [0], [0], [1], [0, 0, 1, 1], [], []>} : vector<8x8xbf16>, vector<8x32xbf16>, vector<8x32xf32> -> vector<8x32xf32>
    %112 = arith.addf %90, %111 : vector<8x32xf32>
    %c0_42 = arith.constant 0 : index
    %c0_43 = arith.constant 0 : index
    %113 = vector.load %arg13[%c0_42, %c0_43] : memref<1x32xf32, #tpu.memory_space<vmem>>, vector<1x32xf32>
    %114 = vector.broadcast %113 : vector<1x32xf32> to vector<8x32xf32>
    %115 = arith.addf %112, %114 : vector<8x32xf32>
    %116 = arith.addf %7, %115 : vector<8x32xf32>
    %c0_44 = arith.constant 0 : index
    %c0_45 = arith.constant 0 : index
    %117 = vector.load %arg26[%c0_44, %c0_45] : memref<1x32xf32, #tpu.memory_space<vmem>>, vector<1x32xf32>
    %c0_46 = arith.constant 0 : index
    %c0_47 = arith.constant 0 : index
    %118 = vector.load %arg27[%c0_46, %c0_47] : memref<1x32xf32, #tpu.memory_space<vmem>>, vector<1x32xf32>
    %cst_48 = arith.constant dense<0.000000e+00> : vector<8xf32>
    %119 = vector.multi_reduction <add>, %116, %cst_48 [1] : vector<8x32xf32> to vector<8xf32>
    %120 = vector.shape_cast %119 : vector<8xf32> to vector<8x1xf32>
    %cst_49 = arith.constant 3.200000e+01 : f32
    %121 = vector.broadcast %cst_49 : f32 to vector<8x1xf32>
    %122 = arith.divf %120, %121 : vector<8x1xf32>
    %123 = vector.broadcast %122 : vector<8x1xf32> to vector<8x32xf32>
    %124 = arith.subf %116, %123 : vector<8x32xf32>
    %125 = arith.mulf %124, %124 : vector<8x32xf32>
    %cst_50 = arith.constant dense<0.000000e+00> : vector<8xf32>
    %126 = vector.multi_reduction <add>, %125, %cst_50 [1] : vector<8x32xf32> to vector<8xf32>
    %127 = vector.shape_cast %126 : vector<8xf32> to vector<8x1xf32>
    %cst_51 = arith.constant 3.200000e+01 : f32
    %128 = vector.broadcast %cst_51 : f32 to vector<8x1xf32>
    %129 = arith.divf %127, %128 : vector<8x1xf32>
    %130 = vector.broadcast %122 : vector<8x1xf32> to vector<8x32xf32>
    %131 = arith.subf %116, %130 : vector<8x32xf32>
    %cst_52 = arith.constant 9.99999974E-6 : f32
    %132 = vector.broadcast %cst_52 : f32 to vector<8x1xf32>
    %133 = arith.addf %129, %132 : vector<8x1xf32>
    %134 = math.rsqrt %133 : vector<8x1xf32>
    %135 = vector.broadcast %134 : vector<8x1xf32> to vector<8x32xf32>
    %136 = arith.mulf %131, %135 : vector<8x32xf32>
    %137 = vector.broadcast %117 : vector<1x32xf32> to vector<8x32xf32>
    %138 = arith.mulf %136, %137 : vector<8x32xf32>
    %139 = vector.broadcast %118 : vector<1x32xf32> to vector<8x32xf32>
    %140 = arith.addf %138, %139 : vector<8x32xf32>
    %c0_53 = arith.constant 0 : index
    %c0_54 = arith.constant 0 : index
    %141 = vector.load %arg35[%c0_53, %c0_54] : memref<16x32xbf16, #tpu.memory_space<vmem>>, vector<16x32xbf16>
    %c0_55 = arith.constant 0 : index
    %c0_56 = arith.constant 0 : index
    %142 = vector.load %arg36[%c0_55, %c0_56] : memref<16x32xbf16, #tpu.memory_space<vmem>>, vector<16x32xbf16>
    %c0_57 = arith.constant 0 : index
    %c0_58 = arith.constant 0 : index
    %143 = vector.load %arg5[%c0_57, %c0_58] : memref<8x16xf32, #tpu.memory_space<vmem>>, vector<8x16xf32>
    %144 = arith.truncf %140 : vector<8x32xf32> to vector<8x32xbf16>
    %c0_59 = arith.constant 0 : index
    %c0_60 = arith.constant 0 : index
    %145 = vector.load %arg14[%c0_59, %c0_60] : memref<32x32xbf16, #tpu.memory_space<vmem>>, vector<32x32xbf16>
    %cst_61 = arith.constant dense<0.000000e+00> : vector<8x32xf32>
    %146 = tpu.matmul %144, %145, %cst_61 {dimension_numbers = #tpu.dot_dimension_numbers<[1], [0], [0], [1], [0, 0, 1, 1], [], []>} : vector<8x32xbf16>, vector<32x32xbf16>, vector<8x32xf32> -> vector<8x32xf32>
    %c0_62 = arith.constant 0 : index
    %c0_63 = arith.constant 0 : index
    %147 = vector.load %arg15[%c0_62, %c0_63] : memref<1x32xf32, #tpu.memory_space<vmem>>, vector<1x32xf32>
    %148 = vector.broadcast %147 : vector<1x32xf32> to vector<8x32xf32>
    %149 = arith.addf %146, %148 : vector<8x32xf32>
    %cst_64 = arith.constant 0.353553385 : f32
    %150 = vector.broadcast %cst_64 : f32 to vector<8x32xf32>
    %151 = arith.mulf %149, %150 : vector<8x32xf32>
    %cst_65 = arith.constant 0.000000e+00 : f32
    %152 = vector.broadcast %cst_65 : f32 to vector<8x16xf32>
    %153 = arith.cmpf oeq, %143, %152 : vector<8x16xf32>
    %cst_66 = arith.constant -1.000000e+09 : f32
    %cst_67 = arith.constant 0.000000e+00 : f32
    %154 = vector.broadcast %cst_66 : f32 to vector<8x16xf32>
    %155 = vector.broadcast %cst_67 : f32 to vector<8x16xf32>
    %156 = arith.select %153, %154, %155 : vector<8x16xi1>, vector<8x16xf32>
    %cst_68 = arith.constant 0.000000e+00 : f32
    %157 = vector.broadcast %cst_68 : f32 to vector<8x32xf32>
    %158 = vector.extract_strided_slice %151 {offsets = [0, 0], sizes = [8, 8], strides = [1, 1]} : vector<8x32xf32> to vector<8x8xf32>
    %159 = arith.truncf %158 : vector<8x8xf32> to vector<8x8xbf16>
    %160 = vector.extract_strided_slice %141 {offsets = [0, 0], sizes = [16, 8], strides = [1, 1]} : vector<16x32xbf16> to vector<16x8xbf16>
    %161 = vector.extract_strided_slice %142 {offsets = [0, 0], sizes = [16, 8], strides = [1, 1]} : vector<16x32xbf16> to vector<16x8xbf16>
    %cst_69 = arith.constant dense<0.000000e+00> : vector<8x16xf32>
    %162 = tpu.matmul %159, %160, %cst_69 {dimension_numbers = #tpu.dot_dimension_numbers<[1], [1], [0], [0], [0, 0, 1, 0], [], []>} : vector<8x8xbf16>, vector<16x8xbf16>, vector<8x16xf32> -> vector<8x16xf32>
    %163 = arith.addf %162, %156 : vector<8x16xf32>
    %cst_70 = arith.constant dense<0xFF800000> : vector<8xf32>
    %164 = vector.multi_reduction <maximumf>, %163, %cst_70 [1] : vector<8x16xf32> to vector<8xf32>
    %165 = vector.shape_cast %164 : vector<8xf32> to vector<8x1xf32>
    %166 = vector.broadcast %165 : vector<8x1xf32> to vector<8x16xf32>
    %167 = arith.subf %163, %166 : vector<8x16xf32>
    %168 = math.exp %167 : vector<8x16xf32>
    %cst_71 = arith.constant dense<0.000000e+00> : vector<8xf32>
    %169 = vector.multi_reduction <add>, %168, %cst_71 [1] : vector<8x16xf32> to vector<8xf32>
    %170 = vector.shape_cast %169 : vector<8xf32> to vector<8x1xf32>
    %171 = tpu.reciprocal %170 {approx = true} : vector<8x1xf32> -> vector<8x1xf32>
    %172 = vector.broadcast %171 : vector<8x1xf32> to vector<8x16xf32>
    %173 = arith.mulf %168, %172 : vector<8x16xf32>
    %174 = arith.truncf %173 : vector<8x16xf32> to vector<8x16xbf16>
    %cst_72 = arith.constant dense<0.000000e+00> : vector<8x8xf32>
    %175 = tpu.matmul %174, %161, %cst_72 {dimension_numbers = #tpu.dot_dimension_numbers<[1], [0], [0], [1], [0, 0, 1, 1], [], []>} : vector<8x16xbf16>, vector<16x8xbf16>, vector<8x8xf32> -> vector<8x8xf32>
    %176 = arith.truncf %175 : vector<8x8xf32> to vector<8x8xbf16>
    %c0_73 = arith.constant 0 : index
    %c0_74 = arith.constant 0 : index
    %177 = vector.load %arg20[%c0_73, %c0_74] : memref<32x32xbf16, #tpu.memory_space<vmem>>, vector<8x32xbf16>
    %cst_75 = arith.constant dense<0.000000e+00> : vector<8x32xf32>
    %178 = tpu.matmul %176, %177, %cst_75 {dimension_numbers = #tpu.dot_dimension_numbers<[1], [0], [0], [1], [0, 0, 1, 1], [], []>} : vector<8x8xbf16>, vector<8x32xbf16>, vector<8x32xf32> -> vector<8x32xf32>
    %179 = arith.addf %157, %178 : vector<8x32xf32>
    %180 = vector.extract_strided_slice %151 {offsets = [0, 8], sizes = [8, 8], strides = [1, 1]} : vector<8x32xf32> to vector<8x8xf32>
    %181 = arith.truncf %180 : vector<8x8xf32> to vector<8x8xbf16>
    %182 = vector.extract_strided_slice %141 {offsets = [0, 8], sizes = [16, 8], strides = [1, 1]} : vector<16x32xbf16> to vector<16x8xbf16>
    %183 = vector.extract_strided_slice %142 {offsets = [0, 8], sizes = [16, 8], strides = [1, 1]} : vector<16x32xbf16> to vector<16x8xbf16>
    %cst_76 = arith.constant dense<0.000000e+00> : vector<8x16xf32>
    %184 = tpu.matmul %181, %182, %cst_76 {dimension_numbers = #tpu.dot_dimension_numbers<[1], [1], [0], [0], [0, 0, 1, 0], [], []>} : vector<8x8xbf16>, vector<16x8xbf16>, vector<8x16xf32> -> vector<8x16xf32>
    %185 = arith.addf %184, %156 : vector<8x16xf32>
    %cst_77 = arith.constant dense<0xFF800000> : vector<8xf32>
    %186 = vector.multi_reduction <maximumf>, %185, %cst_77 [1] : vector<8x16xf32> to vector<8xf32>
    %187 = vector.shape_cast %186 : vector<8xf32> to vector<8x1xf32>
    %188 = vector.broadcast %187 : vector<8x1xf32> to vector<8x16xf32>
    %189 = arith.subf %185, %188 : vector<8x16xf32>
    %190 = math.exp %189 : vector<8x16xf32>
    %cst_78 = arith.constant dense<0.000000e+00> : vector<8xf32>
    %191 = vector.multi_reduction <add>, %190, %cst_78 [1] : vector<8x16xf32> to vector<8xf32>
    %192 = vector.shape_cast %191 : vector<8xf32> to vector<8x1xf32>
    %193 = tpu.reciprocal %192 {approx = true} : vector<8x1xf32> -> vector<8x1xf32>
    %194 = vector.broadcast %193 : vector<8x1xf32> to vector<8x16xf32>
    %195 = arith.mulf %190, %194 : vector<8x16xf32>
    %196 = arith.truncf %195 : vector<8x16xf32> to vector<8x16xbf16>
    %cst_79 = arith.constant dense<0.000000e+00> : vector<8x8xf32>
    %197 = tpu.matmul %196, %183, %cst_79 {dimension_numbers = #tpu.dot_dimension_numbers<[1], [0], [0], [1], [0, 0, 1, 1], [], []>} : vector<8x16xbf16>, vector<16x8xbf16>, vector<8x8xf32> -> vector<8x8xf32>
    %198 = arith.truncf %197 : vector<8x8xf32> to vector<8x8xbf16>
    %c8_80 = arith.constant 8 : index
    %c0_81 = arith.constant 0 : index
    %199 = vector.load %arg20[%c8_80, %c0_81] : memref<32x32xbf16, #tpu.memory_space<vmem>>, vector<8x32xbf16>
    %cst_82 = arith.constant dense<0.000000e+00> : vector<8x32xf32>
    %200 = tpu.matmul %198, %199, %cst_82 {dimension_numbers = #tpu.dot_dimension_numbers<[1], [0], [0], [1], [0, 0, 1, 1], [], []>} : vector<8x8xbf16>, vector<8x32xbf16>, vector<8x32xf32> -> vector<8x32xf32>
    %201 = arith.addf %179, %200 : vector<8x32xf32>
    %202 = vector.extract_strided_slice %151 {offsets = [0, 16], sizes = [8, 8], strides = [1, 1]} : vector<8x32xf32> to vector<8x8xf32>
    %203 = arith.truncf %202 : vector<8x8xf32> to vector<8x8xbf16>
    %204 = vector.extract_strided_slice %141 {offsets = [0, 16], sizes = [16, 8], strides = [1, 1]} : vector<16x32xbf16> to vector<16x8xbf16>
    %205 = vector.extract_strided_slice %142 {offsets = [0, 16], sizes = [16, 8], strides = [1, 1]} : vector<16x32xbf16> to vector<16x8xbf16>
    %cst_83 = arith.constant dense<0.000000e+00> : vector<8x16xf32>
    %206 = tpu.matmul %203, %204, %cst_83 {dimension_numbers = #tpu.dot_dimension_numbers<[1], [1], [0], [0], [0, 0, 1, 0], [], []>} : vector<8x8xbf16>, vector<16x8xbf16>, vector<8x16xf32> -> vector<8x16xf32>
    %207 = arith.addf %206, %156 : vector<8x16xf32>
    %cst_84 = arith.constant dense<0xFF800000> : vector<8xf32>
    %208 = vector.multi_reduction <maximumf>, %207, %cst_84 [1] : vector<8x16xf32> to vector<8xf32>
    %209 = vector.shape_cast %208 : vector<8xf32> to vector<8x1xf32>
    %210 = vector.broadcast %209 : vector<8x1xf32> to vector<8x16xf32>
    %211 = arith.subf %207, %210 : vector<8x16xf32>
    %212 = math.exp %211 : vector<8x16xf32>
    %cst_85 = arith.constant dense<0.000000e+00> : vector<8xf32>
    %213 = vector.multi_reduction <add>, %212, %cst_85 [1] : vector<8x16xf32> to vector<8xf32>
    %214 = vector.shape_cast %213 : vector<8xf32> to vector<8x1xf32>
    %215 = tpu.reciprocal %214 {approx = true} : vector<8x1xf32> -> vector<8x1xf32>
    %216 = vector.broadcast %215 : vector<8x1xf32> to vector<8x16xf32>
    %217 = arith.mulf %212, %216 : vector<8x16xf32>
    %218 = arith.truncf %217 : vector<8x16xf32> to vector<8x16xbf16>
    %cst_86 = arith.constant dense<0.000000e+00> : vector<8x8xf32>
    %219 = tpu.matmul %218, %205, %cst_86 {dimension_numbers = #tpu.dot_dimension_numbers<[1], [0], [0], [1], [0, 0, 1, 1], [], []>} : vector<8x16xbf16>, vector<16x8xbf16>, vector<8x8xf32> -> vector<8x8xf32>
    %220 = arith.truncf %219 : vector<8x8xf32> to vector<8x8xbf16>
    %c16_87 = arith.constant 16 : index
    %c0_88 = arith.constant 0 : index
    %221 = vector.load %arg20[%c16_87, %c0_88] : memref<32x32xbf16, #tpu.memory_space<vmem>>, vector<8x32xbf16>
    %cst_89 = arith.constant dense<0.000000e+00> : vector<8x32xf32>
    %222 = tpu.matmul %220, %221, %cst_89 {dimension_numbers = #tpu.dot_dimension_numbers<[1], [0], [0], [1], [0, 0, 1, 1], [], []>} : vector<8x8xbf16>, vector<8x32xbf16>, vector<8x32xf32> -> vector<8x32xf32>
    %223 = arith.addf %201, %222 : vector<8x32xf32>
    %224 = vector.extract_strided_slice %151 {offsets = [0, 24], sizes = [8, 8], strides = [1, 1]} : vector<8x32xf32> to vector<8x8xf32>
    %225 = arith.truncf %224 : vector<8x8xf32> to vector<8x8xbf16>
    %226 = vector.extract_strided_slice %141 {offsets = [0, 24], sizes = [16, 8], strides = [1, 1]} : vector<16x32xbf16> to vector<16x8xbf16>
    %227 = vector.extract_strided_slice %142 {offsets = [0, 24], sizes = [16, 8], strides = [1, 1]} : vector<16x32xbf16> to vector<16x8xbf16>
    %cst_90 = arith.constant dense<0.000000e+00> : vector<8x16xf32>
    %228 = tpu.matmul %225, %226, %cst_90 {dimension_numbers = #tpu.dot_dimension_numbers<[1], [1], [0], [0], [0, 0, 1, 0], [], []>} : vector<8x8xbf16>, vector<16x8xbf16>, vector<8x16xf32> -> vector<8x16xf32>
    %229 = arith.addf %228, %156 : vector<8x16xf32>
    %cst_91 = arith.constant dense<0xFF800000> : vector<8xf32>
    %230 = vector.multi_reduction <maximumf>, %229, %cst_91 [1] : vector<8x16xf32> to vector<8xf32>
    %231 = vector.shape_cast %230 : vector<8xf32> to vector<8x1xf32>
    %232 = vector.broadcast %231 : vector<8x1xf32> to vector<8x16xf32>
    %233 = arith.subf %229, %232 : vector<8x16xf32>
    %234 = math.exp %233 : vector<8x16xf32>
    %cst_92 = arith.constant dense<0.000000e+00> : vector<8xf32>
    %235 = vector.multi_reduction <add>, %234, %cst_92 [1] : vector<8x16xf32> to vector<8xf32>
    %236 = vector.shape_cast %235 : vector<8xf32> to vector<8x1xf32>
    %237 = tpu.reciprocal %236 {approx = true} : vector<8x1xf32> -> vector<8x1xf32>
    %238 = vector.broadcast %237 : vector<8x1xf32> to vector<8x16xf32>
    %239 = arith.mulf %234, %238 : vector<8x16xf32>
    %240 = arith.truncf %239 : vector<8x16xf32> to vector<8x16xbf16>
    %cst_93 = arith.constant dense<0.000000e+00> : vector<8x8xf32>
    %241 = tpu.matmul %240, %227, %cst_93 {dimension_numbers = #tpu.dot_dimension_numbers<[1], [0], [0], [1], [0, 0, 1, 1], [], []>} : vector<8x16xbf16>, vector<16x8xbf16>, vector<8x8xf32> -> vector<8x8xf32>
    %242 = arith.truncf %241 : vector<8x8xf32> to vector<8x8xbf16>
    %c24_94 = arith.constant 24 : index
    %c0_95 = arith.constant 0 : index
    %243 = vector.load %arg20[%c24_94, %c0_95] : memref<32x32xbf16, #tpu.memory_space<vmem>>, vector<8x32xbf16>
    %cst_96 = arith.constant dense<0.000000e+00> : vector<8x32xf32>
    %244 = tpu.matmul %242, %243, %cst_96 {dimension_numbers = #tpu.dot_dimension_numbers<[1], [0], [0], [1], [0, 0, 1, 1], [], []>} : vector<8x8xbf16>, vector<8x32xbf16>, vector<8x32xf32> -> vector<8x32xf32>
    %245 = arith.addf %223, %244 : vector<8x32xf32>
    %c0_97 = arith.constant 0 : index
    %c0_98 = arith.constant 0 : index
    %246 = vector.load %arg21[%c0_97, %c0_98] : memref<1x32xf32, #tpu.memory_space<vmem>>, vector<1x32xf32>
    %247 = vector.broadcast %246 : vector<1x32xf32> to vector<8x32xf32>
    %248 = arith.addf %245, %247 : vector<8x32xf32>
    %249 = arith.addf %140, %248 : vector<8x32xf32>
    %c0_99 = arith.constant 0 : index
    %c0_100 = arith.constant 0 : index
    %250 = vector.load %arg28[%c0_99, %c0_100] : memref<1x32xf32, #tpu.memory_space<vmem>>, vector<1x32xf32>
    %c0_101 = arith.constant 0 : index
    %c0_102 = arith.constant 0 : index
    %251 = vector.load %arg29[%c0_101, %c0_102] : memref<1x32xf32, #tpu.memory_space<vmem>>, vector<1x32xf32>
    %cst_103 = arith.constant dense<0.000000e+00> : vector<8xf32>
    %252 = vector.multi_reduction <add>, %249, %cst_103 [1] : vector<8x32xf32> to vector<8xf32>
    %253 = vector.shape_cast %252 : vector<8xf32> to vector<8x1xf32>
    %cst_104 = arith.constant 3.200000e+01 : f32
    %254 = vector.broadcast %cst_104 : f32 to vector<8x1xf32>
    %255 = arith.divf %253, %254 : vector<8x1xf32>
    %256 = vector.broadcast %255 : vector<8x1xf32> to vector<8x32xf32>
    %257 = arith.subf %249, %256 : vector<8x32xf32>
    %258 = arith.mulf %257, %257 : vector<8x32xf32>
    %cst_105 = arith.constant dense<0.000000e+00> : vector<8xf32>
    %259 = vector.multi_reduction <add>, %258, %cst_105 [1] : vector<8x32xf32> to vector<8xf32>
    %260 = vector.shape_cast %259 : vector<8xf32> to vector<8x1xf32>
    %cst_106 = arith.constant 3.200000e+01 : f32
    %261 = vector.broadcast %cst_106 : f32 to vector<8x1xf32>
    %262 = arith.divf %260, %261 : vector<8x1xf32>
    %263 = vector.broadcast %255 : vector<8x1xf32> to vector<8x32xf32>
    %264 = arith.subf %249, %263 : vector<8x32xf32>
    %cst_107 = arith.constant 9.99999974E-6 : f32
    %265 = vector.broadcast %cst_107 : f32 to vector<8x1xf32>
    %266 = arith.addf %262, %265 : vector<8x1xf32>
    %267 = math.rsqrt %266 : vector<8x1xf32>
    %268 = vector.broadcast %267 : vector<8x1xf32> to vector<8x32xf32>
    %269 = arith.mulf %264, %268 : vector<8x32xf32>
    %270 = vector.broadcast %250 : vector<1x32xf32> to vector<8x32xf32>
    %271 = arith.mulf %269, %270 : vector<8x32xf32>
    %272 = vector.broadcast %251 : vector<1x32xf32> to vector<8x32xf32>
    %273 = arith.addf %271, %272 : vector<8x32xf32>
    %274 = arith.truncf %273 : vector<8x32xf32> to vector<8x32xbf16>
    %cst_108 = arith.constant 0.000000e+00 : f32
    %275 = vector.broadcast %cst_108 : f32 to vector<8x32xf32>
    %c0_109 = arith.constant 0 : index
    %c0_110 = arith.constant 0 : index
    %276 = vector.load %arg22[%c0_109, %c0_110] : memref<32x64xbf16, #tpu.memory_space<vmem>>, vector<32x64xbf16>
    %cst_111 = arith.constant dense<0.000000e+00> : vector<8x64xf32>
    %277 = tpu.matmul %274, %276, %cst_111 {dimension_numbers = #tpu.dot_dimension_numbers<[1], [0], [0], [1], [0, 0, 1, 1], [], []>} : vector<8x32xbf16>, vector<32x64xbf16>, vector<8x64xf32> -> vector<8x64xf32>
    %c0_112 = arith.constant 0 : index
    %c0_113 = arith.constant 0 : index
    %278 = vector.load %arg23[%c0_112, %c0_113] : memref<1x64xf32, #tpu.memory_space<vmem>>, vector<1x64xf32>
    %279 = vector.broadcast %278 : vector<1x64xf32> to vector<8x64xf32>
    %280 = arith.addf %277, %279 : vector<8x64xf32>
    %cst_114 = arith.constant 0.000000e+00 : f32
    %281 = vector.broadcast %cst_114 : f32 to vector<8x64xf32>
    %282 = arith.maximumf %280, %281 : vector<8x64xf32>
    %283 = arith.truncf %282 : vector<8x64xf32> to vector<8x64xbf16>
    %c0_115 = arith.constant 0 : index
    %c0_116 = arith.constant 0 : index
    %284 = vector.load %arg24[%c0_115, %c0_116] : memref<64x32xbf16, #tpu.memory_space<vmem>>, vector<64x32xbf16>
    %cst_117 = arith.constant dense<0.000000e+00> : vector<8x32xf32>
    %285 = tpu.matmul %283, %284, %cst_117 {dimension_numbers = #tpu.dot_dimension_numbers<[1], [0], [0], [1], [0, 0, 1, 1], [], []>} : vector<8x64xbf16>, vector<64x32xbf16>, vector<8x32xf32> -> vector<8x32xf32>
    %286 = arith.addf %275, %285 : vector<8x32xf32>
    %c0_118 = arith.constant 0 : index
    %c0_119 = arith.constant 0 : index
    %287 = vector.load %arg25[%c0_118, %c0_119] : memref<1x32xf32, #tpu.memory_space<vmem>>, vector<1x32xf32>
    %288 = vector.broadcast %287 : vector<1x32xf32> to vector<8x32xf32>
    %289 = arith.addf %286, %288 : vector<8x32xf32>
    %290 = arith.addf %273, %289 : vector<8x32xf32>
    %c0_120 = arith.constant 0 : index
    %c0_121 = arith.constant 0 : index
    %291 = vector.load %arg30[%c0_120, %c0_121] : memref<1x32xf32, #tpu.memory_space<vmem>>, vector<1x32xf32>
    %c0_122 = arith.constant 0 : index
    %c0_123 = arith.constant 0 : index
    %292 = vector.load %arg31[%c0_122, %c0_123] : memref<1x32xf32, #tpu.memory_space<vmem>>, vector<1x32xf32>
    %cst_124 = arith.constant dense<0.000000e+00> : vector<8xf32>
    %293 = vector.multi_reduction <add>, %290, %cst_124 [1] : vector<8x32xf32> to vector<8xf32>
    %294 = vector.shape_cast %293 : vector<8xf32> to vector<8x1xf32>
    %cst_125 = arith.constant 3.200000e+01 : f32
    %295 = vector.broadcast %cst_125 : f32 to vector<8x1xf32>
    %296 = arith.divf %294, %295 : vector<8x1xf32>
    %297 = vector.broadcast %296 : vector<8x1xf32> to vector<8x32xf32>
    %298 = arith.subf %290, %297 : vector<8x32xf32>
    %299 = arith.mulf %298, %298 : vector<8x32xf32>
    %cst_126 = arith.constant dense<0.000000e+00> : vector<8xf32>
    %300 = vector.multi_reduction <add>, %299, %cst_126 [1] : vector<8x32xf32> to vector<8xf32>
    %301 = vector.shape_cast %300 : vector<8xf32> to vector<8x1xf32>
    %cst_127 = arith.constant 3.200000e+01 : f32
    %302 = vector.broadcast %cst_127 : f32 to vector<8x1xf32>
    %303 = arith.divf %301, %302 : vector<8x1xf32>
    %304 = vector.broadcast %296 : vector<8x1xf32> to vector<8x32xf32>
    %305 = arith.subf %290, %304 : vector<8x32xf32>
    %cst_128 = arith.constant 9.99999974E-6 : f32
    %306 = vector.broadcast %cst_128 : f32 to vector<8x1xf32>
    %307 = arith.addf %303, %306 : vector<8x1xf32>
    %308 = math.rsqrt %307 : vector<8x1xf32>
    %309 = vector.broadcast %308 : vector<8x1xf32> to vector<8x32xf32>
    %310 = arith.mulf %305, %309 : vector<8x32xf32>
    %311 = vector.broadcast %291 : vector<1x32xf32> to vector<8x32xf32>
    %312 = arith.mulf %310, %311 : vector<8x32xf32>
    %313 = vector.broadcast %292 : vector<1x32xf32> to vector<8x32xf32>
    %314 = arith.addf %312, %313 : vector<8x32xf32>
    %c0_129 = arith.constant 0 : index
    %c0_130 = arith.constant 0 : index
    %c0_131 = arith.constant 0 : index
    %315 = vector.load %arg32[%c0_129, %c0_130, %c0_131] : memref<1x8x32xf32, #tpu.memory_space<vmem>>, vector<1x8x32xf32>
    %316 = vector.shape_cast %315 : vector<1x8x32xf32> to vector<8x32xf32>
    %317 = vector.shape_cast %314 : vector<8x32xf32> to vector<1x8x32xf32>
    tpu.vector_store %arg32[%c0_129, %c0_130, %c0_131], %317 {strides = array<i32>} : memref<1x8x32xf32, #tpu.memory_space<vmem>>, vector<1x8x32xf32>,
    return
  }
  func.func @transform_0(%arg0: i32, %arg1: i32) -> (i32, i32, i32) {
    %c0_i32 = arith.constant 0 : i32
    %c0_i32_0 = arith.constant 0 : i32
    %c0_i32_1 = arith.constant 0 : i32
    return %arg0, %c0_i32, %c0_i32_0 : i32, i32, i32
  }
  func.func @transform_1(%arg0: i32, %arg1: i32) -> (i32, i32, i32) {
    %c0_i32 = arith.constant 0 : i32
    %c0_i32_0 = arith.constant 0 : i32
    %c0_i32_1 = arith.constant 0 : i32
    return %arg0, %c0_i32, %c0_i32_0 : i32, i32, i32
  }
  func.func @transform_2(%arg0: i32, %arg1: i32) -> (i32, i32) {
    %c0_i32 = arith.constant 0 : i32
    %c0_i32_0 = arith.constant 0 : i32
    return %arg1, %c0_i32 : i32, i32
  }
  func.func @transform_3(%arg0: i32, %arg1: i32) -> (i32, i32) {
    %c0_i32 = arith.constant 0 : i32
    %c0_i32_0 = arith.constant 0 : i32
    return %arg1, %c0_i32 : i32, i32
  }
  func.func @transform_4(%arg0: i32, %arg1: i32) -> (i32, i32) {
    %c0_i32 = arith.constant 0 : i32
    %c0_i32_0 = arith.constant 0 : i32
    %c0_i32_1 = arith.constant 0 : i32
    return %c0_i32, %c0_i32_0 : i32, i32
  }
  func.func @transform_5(%arg0: i32, %arg1: i32) -> (i32, i32) {
    %c0_i32 = arith.constant 0 : i32
    %c0_i32_0 = arith.constant 0 : i32
    %c0_i32_1 = arith.constant 0 : i32
    return %c0_i32, %c0_i32_0 : i32, i32
  }
  func.func @transform_6(%arg0: i32, %arg1: i32) -> (i32, i32) {
    %c0_i32 = arith.constant 0 : i32
    %c0_i32_0 = arith.constant 0 : i32
    %c0_i32_1 = arith.constant 0 : i32
    return %c0_i32, %c0_i32_0 : i32, i32
  }
  func.func @transform_7(%arg0: i32, %arg1: i32) -> (i32, i32) {
    %c0_i32 = arith.constant 0 : i32
    %c0_i32_0 = arith.constant 0 : i32
    %c0_i32_1 = arith.constant 0 : i32
    return %c0_i32, %c0_i32_0 : i32, i32
  }
  func.func @transform_8(%arg0: i32, %arg1: i32) -> (i32, i32) {
    %c0_i32 = arith.constant 0 : i32
    %c0_i32_0 = arith.constant 0 : i32
    %c0_i32_1 = arith.constant 0 : i32
    return %c0_i32, %c0_i32_0 : i32, i32
  }
  func.func @transform_9(%arg0: i32, %arg1: i32) -> (i32, i32) {
    %c0_i32 = arith.constant 0 : i32
    %c0_i32_0 = arith.constant 0 : i32
    %c0_i32_1 = arith.constant 0 : i32
    return %c0_i32, %c0_i32_0 : i32, i32
  }
  func.func @transform_10(%arg0: i32, %arg1: i32) -> (i32, i32) {
    %c0_i32 = arith.constant 0 : i32
    %c0_i32_0 = arith.constant 0 : i32
    %c0_i32_1 = arith.constant 0 : i32
    return %c0_i32, %c0_i32_0 : i32, i32
  }
  func.func @transform_11(%arg0: i32, %arg1: i32) -> (i32, i32) {
    %c0_i32 = arith.constant 0 : i32
    %c0_i32_0 = arith.constant 0 : i32
    %c0_i32_1 = arith.constant 0 : i32
    return %c0_i32, %c0_i32_0 : i32, i32
  }
  func.func @transform_12(%arg0: i32, %arg1: i32) -> (i32, i32) {
    %c0_i32 = arith.constant 0 : i32
    %c0_i32_0 = arith.constant 0 : i32
    %c0_i32_1 = arith.constant 0 : i32
    return %c0_i32, %c0_i32_0 : i32, i32
  }
  func.func @transform_13(%arg0: i32, %arg1: i32) -> (i32, i32) {
    %c0_i32 = arith.constant 0 : i32
    %c0_i32_0 = arith.constant 0 : i32
    %c0_i32_1 = arith.constant 0 : i32
    return %c0_i32, %c0_i32_0 : i32, i32
  }
  func.func @transform_14(%arg0: i32, %arg1: i32) -> (i32, i32) {
    %c0_i32 = arith.constant 0 : i32
    %c0_i32_0 = arith.constant 0 : i32
    %c0_i32_1 = arith.constant 0 : i32
    return %c0_i32, %c0_i32_0 : i32, i32
  }
  func.func @transform_15(%arg0: i32, %arg1: i32) -> (i32, i32) {
    %c0_i32 = arith.constant 0 : i32
    %c0_i32_0 = arith.constant 0 : i32
    %c0_i32_1 = arith.constant 0 : i32
    return %c0_i32, %c0_i32_0 : i32, i32
  }
  func.func @transform_16(%arg0: i32, %arg1: i32) -> (i32, i32) {
    %c0_i32 = arith.constant 0 : i32
    %c0_i32_0 = arith.constant 0 : i32
    %c0_i32_1 = arith.constant 0 : i32
    return %c0_i32, %c0_i32_0 : i32, i32
  }
  func.func @transform_17(%arg0: i32, %arg1: i32) -> (i32, i32) {
    %c0_i32 = arith.constant 0 : i32
    %c0_i32_0 = arith.constant 0 : i32
    %c0_i32_1 = arith.constant 0 : i32
    return %c0_i32, %c0_i32_0 : i32, i32
  }
  func.func @transform_18(%arg0: i32, %arg1: i32) -> (i32, i32) {
    %c0_i32 = arith.constant 0 : i32
    %c0_i32_0 = arith.constant 0 : i32
    %c0_i32_1 = arith.constant 0 : i32
    return %c0_i32, %c0_i32_0 : i32, i32
  }
  func.func @transform_19(%arg0: i32, %arg1: i32) -> (i32, i32) {
    %c0_i32 = arith.constant 0 : i32
    %c0_i32_0 = arith.constant 0 : i32
    %c0_i32_1 = arith.constant 0 : i32
    return %c0_i32, %c0_i32_0 : i32, i32
  }
  func.func @transform_20(%arg0: i32, %arg1: i32) -> (i32, i32) {
    %c0_i32 = arith.constant 0 : i32
    %c0_i32_0 = arith.constant 0 : i32
    %c0_i32_1 = arith.constant 0 : i32
    return %c0_i32, %c0_i32_0 : i32, i32
  }
  func.func @transform_21(%arg0: i32, %arg1: i32) -> (i32, i32) {
    %c0_i32 = arith.constant 0 : i32
    %c0_i32_0 = arith.constant 0 : i32
    %c0_i32_1 = arith.constant 0 : i32
    return %c0_i32, %c0_i32_0 : i32, i32
  }
  func.func @transform_22(%arg0: i32, %arg1: i32) -> (i32, i32) {
    %c0_i32 = arith.constant 0 : i32
    %c0_i32_0 = arith.constant 0 : i32
    %c0_i32_1 = arith.constant 0 : i32
    return %c0_i32, %c0_i32_0 : i32, i32
  }
  func.func @transform_23(%arg0: i32, %arg1: i32) -> (i32, i32) {
    %c0_i32 = arith.constant 0 : i32
    %c0_i32_0 = arith.constant 0 : i32
    %c0_i32_1 = arith.constant 0 : i32
    return %c0_i32, %c0_i32_0 : i32, i32
  }
  func.func @transform_24(%arg0: i32, %arg1: i32) -> (i32, i32) {
    %c0_i32 = arith.constant 0 : i32
    %c0_i32_0 = arith.constant 0 : i32
    %c0_i32_1 = arith.constant 0 : i32
    return %c0_i32, %c0_i32_0 : i32, i32
  }
  func.func @transform_25(%arg0: i32, %arg1: i32) -> (i32, i32) {
    %c0_i32 = arith.constant 0 : i32
    %c0_i32_0 = arith.constant 0 : i32
    %c0_i32_1 = arith.constant 0 : i32
    return %c0_i32, %c0_i32_0 : i32, i32
  }
  func.func @transform_26(%arg0: i32, %arg1: i32) -> (i32, i32) {
    %c0_i32 = arith.constant 0 : i32
    %c0_i32_0 = arith.constant 0 : i32
    %c0_i32_1 = arith.constant 0 : i32
    return %c0_i32, %c0_i32_0 : i32, i32
  }
  func.func @transform_27(%arg0: i32, %arg1: i32) -> (i32, i32) {
    %c0_i32 = arith.constant 0 : i32
    %c0_i32_0 = arith.constant 0 : i32
    %c0_i32_1 = arith.constant 0 : i32
    return %c0_i32, %c0_i32_0 : i32, i32
  }
  func.func @transform_28(%arg0: i32, %arg1: i32) -> (i32, i32) {
    %c0_i32 = arith.constant 0 : i32
    %c0_i32_0 = arith.constant 0 : i32
    %c0_i32_1 = arith.constant 0 : i32
    return %c0_i32, %c0_i32_0 : i32, i32
  }
  func.func @transform_29(%arg0: i32, %arg1: i32) -> (i32, i32) {
    %c0_i32 = arith.constant 0 : i32
    %c0_i32_0 = arith.constant 0 : i32
    %c0_i32_1 = arith.constant 0 : i32
    return %c0_i32, %c0_i32_0 : i32, i32
  }
  func.func @transform_30(%arg0: i32, %arg1: i32) -> (i32, i32, i32) {
    %c0_i32 = arith.constant 0 : i32
    %c0_i32_0 = arith.constant 0 : i32
    return %arg0, %arg1, %c0_i32 : i32, i32, i32
  }
}

</mosaic_0001>

<bundles_post_ra>
// kernel: tpu_custom_call.1
= control target key start
LH: loop header
LB: loop body
LE: loop exit
PB: predicated region body
PF: predicated region fallthrough
CT: control target
= control target key end

     0   :  { %s4633_s6 = smov 1   ;;  %s4634_s10 = smov 2   ;;  %s5504_s0 = inlined_call_operand.smem [shape: u32[31], index: -1, kind: input, shape index: {}] }
   0x1   :  { %s4694_s5 = sld [smem:[%s5504_s0]]   ;;  %s4635_s14 = smov 3  }
   0x2   :  { %s4699_s9 = sld [smem:[%s5504_s0 + %s4633_s6]]   ;;  %s4636_s18 = smov 4  }
   0x3   :  { %s4704_s13 = sld [smem:[%s5504_s0 + %s4634_s10]]   ;;  %s4637_s22 = smov 5  }
   0x4   :  { %s4709_s17 = sld [smem:[%s5504_s0 + %s4635_s14]]   ;;  %s4638_s26 = smov 6  }
   0x5   :  { %s4714_s21 = sld [smem:[%s5504_s0 + %s4636_s18]]   ;;  %s4639_s30 = smov 7  }
   0x6   :  { %s4719_s25 = sld [smem:[%s5504_s0 + %s4637_s22]]   ;;  %s4640_s4 = smov 8  }
   0x7   :  { %5531 = sst [smem:[#allocation40_spill]] %s4694_s5  ;;  %s4641_s10 = smov 9  }
   0x8   :  { %5532 = sst [smem:[#allocation41_spill]] %s4699_s9  ;;  %s4642_s15 = smov 10  }
   0x9   :  { %s4724_s29 = sld [smem:[%s5504_s0 + %s4638_s26]]   ;;  %s4643_s20 = smov 11  }
   0xa   :  { %s4729_s3 = sld [smem:[%s5504_s0 + %s4639_s30]]   ;;  %s4644_s26 = smov 12  }
   0xb   :  { %s4734_s8 = sld [smem:[%s5504_s0 + %s4640_s4]]   ;;  %s4645_s1 = smov 13  }
   0xc   :  { %s4739_s14 = sld [smem:[%s5504_s0 + %s4641_s10]]   ;;  %s4646_s7 = smov 14  }
   0xd   :  { %s4744_s19 = sld [smem:[%s5504_s0 + %s4642_s15]]   ;;  %s4647_s15 = smov 15  }
   0xe   :  { %s4749_s24 = sld [smem:[%s5504_s0 + %s4643_s20]]   ;;  %s4648_s22 = smov 16  }
   0xf   :  { %s4754_s30 = sld [smem:[%s5504_s0 + %s4644_s26]]   ;;  %s4649_s28 = smov 17  }
  0x10   :  { %5533 = sst [smem:[#allocation42_spill]] %s4729_s3 }
  0x11   :  { %s4759_s6 = sld [smem:[%s5504_s0 + %s4645_s1]]  }
  0x12   :  { %s4764_s12 = sld [smem:[%s5504_s0 + %s4646_s7]]   ;;  %s4650_s7 = smov 18  }
  0x13   :  { %5534 = sst [smem:[#allocation43_spill]] %s4744_s19 }
  0x14   :  { %s4769_s20 = sld [smem:[%s5504_s0 + %s4647_s15]]   ;;  %s4651_s15 = smov 19  }
  0x15   :  { %s4774_s27 = sld [smem:[%s5504_s0 + %s4648_s22]]   ;;  %s4652_s22 = smov 20  }
  0x16   :  { %s4779_s4 = sld [smem:[%s5504_s0 + %s4649_s28]]   ;;  %s4653_s28 = smov 21  }
  0x17   :  { %s4784_s19 = sld [smem:[%s5504_s0 + %s4650_s7]]   ;;  %s4654_s7 = smov 22  }
  0x18   :  { %5535 = sst [smem:[#allocation44_spill]] %s4764_s12 }
  0x19   :  { %s4789_s12 = sld [smem:[%s5504_s0 + %s4651_s15]]   ;;  %s4655_s15 = smov 23  }
  0x1a   :  { %s4794_s9 = sld [smem:[%s5504_s0 + %s4652_s22]]   ;;  %s4656_s22 = smov 24  }
  0x1b   :  { %s4799_s5 = sld [smem:[%s5504_s0 + %s4653_s28]]   ;;  %s4657_s28 = smov 25  }
  0x1c   :  { %5536 = sst [smem:[#allocation45_spill]] %s4779_s4 }
  0x1d   :  { %5537 = sst [smem:[#allocation46_spill]] %s4784_s19 }
  0x1e   :  { %s4804_s19 = sld [smem:[%s5504_s0 + %s4654_s7]]   ;;  %s4658_s7 = smov 26  }
  0x1f   :  { %5538 = sst [smem:[#allocation47_spill]] %s4789_s12 }
  0x20   :  { %5539 = sst [smem:[#allocation48_spill]] %s4794_s9 }
  0x21   :  { %5540 = sst [smem:[#allocation49_spill]] %s4799_s5 }
  0x22   :  { %s4809_s12 = sld [smem:[%s5504_s0 + %s4655_s15]]   ;;  %s4659_s15 = smov 27  }
  0x23   :  { %s4814_s9 = sld [smem:[%s5504_s0 + %s4656_s22]]   ;;  %s4660_s22 = smov 28  }
  0x24   :  { %5541 = sst [smem:[#allocation50_spill]] %s4804_s19 }
  0x25   :  { %s4819_s5 = sld [smem:[%s5504_s0 + %s4657_s28]]   ;;  %s4661_s28 = smov 29  }
  0x26   :  { %s4824_s19 = sld [smem:[%s5504_s0 + %s4658_s7]]   ;;  %s4662_s7 = smov 30  }
  0x28   :  { %5542 = sst [smem:[#allocation51_spill]] %s4809_s12 }
  0x29   :  { %5543 = sst [smem:[#allocation52_spill]] %s4814_s9 }
  0x2a   :  { %s4829_s12 = sld [smem:[%s5504_s0 + %s4659_s15]]  }
  0x2b   :  { %5544 = sst [smem:[#allocation53_spill]] %s4819_s5 }
  0x2c   :  { %5545 = sst [smem:[#allocation54_spill]] %s4824_s19 }
  0x2d   :  { %s4834_s9 = sld [smem:[%s5504_s0 + %s4660_s22]]  }
  0x2e   :  { %s4839_s5 = sld [smem:[%s5504_s0 + %s4661_s28]]  }
  0x2f   :  { %s4844_s19 = sld [smem:[%s5504_s0 + %s4662_s7]]  }
  0x34   :  { %5546 = sst [smem:[#allocation55_spill]] %s4839_s5 }
  0x35   :  { %5547 = sst [smem:[#allocation56_spill]] %s4844_s19 }
  0x36   :  { %66 = vsyncpa [#allocation7], 0 }
  0x37   :  { %67 = vsyncpa [#allocation10], 0 }
  0x38   :  { %68 = vsyncpa [#allocation13], 0 }
  0x39   :  { %69 = vsyncpa [#allocation16], 0 }
  0x3a   :  { %70 = vsyncpa [#allocation19], 0 }
  0x3b   :  { %71 = vsyncpa [#allocation22], 0 }
  0x3c   :  { %72 = vsyncpa [#allocation25], 0 }
  0x3d   :  { %73 = vsyncpa [#allocation28], 0 }
  0x3e   :  { %74 = vsyncpa [#allocation8], 0 }
  0x3f   :  { %76 = vsyncpa [#allocation8 + $0x1], 0  ;;  %s4846_s15 = smov 0   ;;  %s4848_s16 = smov 0  }
  0x40   :  { %s4850_s18 = smov 0   ;;  %s4852_s22 = smov 0  }
  0x41   :  { %s4854_s0 = smov 0   ;;  %s4856_s23 = smov 0  }
  0x42 LB: > { %s5548_s4 = sld [smem:[#allocation45_spill]]  ;;  %s5549_s3 = sld [smem:[#allocation42_spill]]  ;;  %s4615_s16 = sphi %s4848_s16, %s5594_s16   ;;  %s4611_s15 = sphi %s4846_s15, %s5593_s15   ;;  %s4631_s23 = sphi %s4856_s23, %s82_s23   ;;  %s4627_s0 = sphi %s4854_s0, %s5596_s0   ;;  %s4623_s22 = sphi %s4852_s22, %s5595_s22   ;;  %s4619_s18 = sphi %s4850_s18, %s5590_s18  }
  0x43   : > { %5550 = sst [smem:[#allocation57_spill]] %s4611_s15  ;;  %s3402_s26 = sadd.s32 4294967295, %s4631_s23  }
  0x44   : > { %5551 = sst [smem:[#allocation58_spill]] %s4619_s18  ;;  %s3403_s28 = sadd.s32 4294967294, %s4631_s23  }
  0x45   : > { %5552 = sst [smem:[#allocation59_spill]] %s4627_s0  ;;  %s94_s1 = sadd.s32 1, %s4627_s0 }
  0x46   : > { %s753_s2 = sadd.s32 1, %s4619_s18  ;;  %p96_p0 = scmp.ge.s32.totalorder %s94_s1, 2 }
  0x47   : > { %p763_p1 = scmp.ne.s32.totalorder %s4619_s18, %s4615_s16  ;;  %p764_p2 = scmp.eq.s32.totalorder %s3402_s26, 1 }
  0x48   : > { %p769_p3 = scmp.ne.s32.totalorder %s4615_s16, %s4611_s15  ;;  %s5598_s1 = smov (%p96_p0, %s94_s1), 0 }
  0x49   : > { %5553 = sst [smem:[#allocation60_spill]] %s5598_s1  ;;  %p4886_p4 = por %p764_p2, %p763_p1 }
  0x4a   : > { %p770_p5 = scmp.eq.s32.totalorder %s3403_s28, 1  ;;  %s748_s10 = ssub.s32 %s4627_s0, %s5598_s1 }
  0x4b   : > { %s5554_s7 = scalar_select %p4886_p4, 1, 0 }
  0x4c   : > { %p3404_p6 = scmp.ge.s32.totalorder %s4631_s23, 1  ;;  %p751_p7 = scmp.eq.s32.totalorder %s748_s10, 0 }
  0x4d   : > { %5555 = sst [smem:[#allocation61_spill]] %s5554_s7  ;;  %p4893_p8 = por %p770_p5, %p769_p3 }
  0x4e   : > { %p777_p9 = scmp.lt.s32.totalorder %s4631_s23, 3  ;;  %p4905_p11 = scmp.eq.s32.totalorder %s3402_s26, 0 }
  0x4f   : > { %s5556_s11 = scalar_select %p4893_p8, 1, 0 }
  0x50   : > { %s4899_s19 = scalar_select %p751_p7, %s4619_s18, %s753_s2  }
  0x51   : > { %5557 = sst [smem:[#allocation62_spill]] %s5556_s11  ;;  %p4901_p10 = pnand %p3404_p6, %p777_p9 }
  0x52   : > { %5558 = sst [smem:[#allocation63_spill]] %s4899_s19  ;;  %s4663_s28 = smov [#allocation9]  }
  0x53   : > { %s5559_s15 = scalar_select %p4901_p10, 1, 0 }
  0x54   : > { %s5560_s7 = scalar_select %p4905_p11, 1, 0 }
  0x55   : > { %p3862_p12 = pneg %p4901_p10  ;;  %s805_s10 = sshll.u32 %s4663_s28, 4  ;;  %s806_s10 = int_to_ptr.vmem [resolvable:$true] %s805_s10 }
  0x56   : > { %s4664_s1 = smov [#allocation12]   ;;  %s4665_s26 = smov [#allocation15]  }
  0x57   : > { %s829_s0 = sshll.u32 %s4664_s1, 4  ;;  %p4913_p13 = pnand %p4905_p11, %p3862_p12  ;;  %s4917_s0 = int_to_ptr.vmem [resolvable:$true] %s829_s0 }
  0x58   : > { %s4919_s19 = sshll.u32 %s4665_s26, 4  ;;  %s4101_s18 = scalar_lea.hbm %s4709_s17, 128  ;;  %s854_s19 = int_to_ptr.vmem [resolvable:$true] %s4919_s19 }
  0x59   : > { %p4102_p0 = scmp.ne.s32.totalorder %s4709_s17, %s4101_s18  ;;  %p4925_p1 = pneg %p4913_p13 }
  0x5a   : > { %p4108_p5 = scmp.lt.u32.totalorder %s4101_s18, %s4709_s17 }
  0x5b   : > { %p4104_p2 = pnand %p4925_p1, %p4102_p0 }
  0x5d   : > { %p4105_p3 = pneg %p4104_p2 }
  0x5f   : > { %p4110_p6 = pnand %p4108_p5, %p4105_p3 }
  0x61   : > { %4113 = shalt.err (!%p4110_p6)
}
  0x62   : > { %s4114_s1 = scalar_lea.vmem %s806_s10, 128  ;;  %p4122_p8 = scmp.lt.s32.totalorder %s806_s10, %s806_s10 }
  0x63   : > { %p4115_p7 = scmp.ne.s32.totalorder %s806_s10, %s4114_s1  ;;  %p4123_p4 = scmp.lt.s32.totalorder %s4114_s1, %s4114_s1 }
  0x65   : > { %p4117_p9 = pnand %p4115_p7, %p4925_p1  ;;  %p4124_p11 = por %p4123_p4, %p4122_p8 }
  0x67   : > { %p4118_p12 = pneg %p4117_p9 }
  0x69   : > { %p4125_p10 = pnand %p4124_p11, %p4118_p12 }
  0x6b   : > { %4128 = shalt.err (!%p4125_p10)
}
  0x6c   : > { %3868 = dma.hbm_to_vmem [thread:$0]  (!%p4913_p13), %s4709_s17, 128, %s806_s10, [#allocation10]  }
  0x6d   : > { %s4129_s18 = scalar_lea.hbm %s4719_s25, 16 }
  0x6e   : > { %p4130_p0 = scmp.ne.s32.totalorder %s4719_s25, %s4129_s18  ;;  %p4136_p5 = scmp.lt.u32.totalorder %s4129_s18, %s4719_s25 }
  0x70   : > { %p4132_p2 = pnand %p4130_p0, %p4925_p1 }
  0x72   : > { %p4133_p3 = pneg %p4132_p2 }
  0x74   : > { %p4138_p6 = pnand %p4136_p5, %p4133_p3 }
  0x76   : > { %4141 = shalt.err (!%p4138_p6)
}
  0x77   : > { %s4142_s28 = scalar_lea.vmem %s4917_s0, 16  ;;  %s4149_s26 = scalar_lea.vmem %s4917_s0, 32 }
  0x78   : > { %p4143_p4 = scmp.ne.s32.totalorder %s4917_s0, %s4142_s28  ;;  %p4150_p11 = scmp.lt.s32.totalorder %s4917_s0, %s4917_s0 }
  0x79   : > { %p4151_p7 = scmp.lt.s32.totalorder %s4149_s26, %s4142_s28 }
  0x7a   : > { %p4145_p8 = pnand %p4143_p4, %p4925_p1 }
  0x7b   : > { %p4152_p9 = por %p4151_p7, %p4150_p11 }
  0x7c   : > { %p4146_p10 = pneg %p4145_p8 }
  0x7e   : > { %p4153_p12 = pnand %p4152_p9, %p4146_p10 }
  0x80   : > { %4156 = shalt.err (!%p4153_p12)
}
  0x81   : > { %3874 = dma.hbm_to_vmem [thread:$0]  (!%p4913_p13), %s4719_s25, 16, %s4917_s0, [#allocation13]  }
  0x82   : > { %s4666_s10 = smov [#allocation18]   ;;  %s4157_s18 = scalar_lea.hbm %s5549_s3, 16 }
  0x83   : > { %s877_s1 = sshll.u32 %s4666_s10, 4  ;;  %p4158_p0 = scmp.ne.s32.totalorder %s5549_s3, %s4157_s18  ;;  %s878_s1 = int_to_ptr.vmem [resolvable:$true] %s877_s1 }
  0x84   : > { %p4164_p5 = scmp.lt.u32.totalorder %s4157_s18, %s5549_s3 }
  0x85   : > { %p4160_p2 = pnand %p4158_p0, %p4925_p1 }
  0x87   : > { %p4161_p3 = pneg %p4160_p2 }
  0x89   : > { %p4166_p6 = pnand %p4164_p5, %p4161_p3 }
  0x8b   : > { %4169 = shalt.err (!%p4166_p6)
}
  0x8c   : > { %s4170_s28 = scalar_lea.vmem %s854_s19, 16  ;;  %s4177_s26 = scalar_lea.vmem %s854_s19, 32 }
  0x8d   : > { %p4171_p4 = scmp.ne.s32.totalorder %s854_s19, %s4170_s28  ;;  %p4178_p11 = scmp.lt.s32.totalorder %s854_s19, %s854_s19 }
  0x8e   : > { %p4179_p7 = scmp.lt.s32.totalorder %s4177_s26, %s4170_s28 }
  0x8f   : > { %p4173_p8 = pnand %p4171_p4, %p4925_p1 }
  0x90   : > { %p4180_p9 = por %p4179_p7, %p4178_p11 }
  0x91   : > { %p4174_p10 = pneg %p4173_p8 }
  0x93   : > { %p4181_p12 = pnand %p4180_p9, %p4174_p10 }
  0x95   : > { %4184 = shalt.err (!%p4181_p12)
}
  0x96   : > { %3880 = dma.hbm_to_vmem [thread:$0]  (!%p4913_p13), %s5549_s3, 16, %s854_s19, [#allocation16]  }
  0x97   : > { %s4185_s0 = scalar_lea.hbm %s4739_s14, 16 }
  0x98   : > { %p4186_p0 = scmp.ne.s32.totalorder %s4739_s14, %s4185_s0  ;;  %p4192_p5 = scmp.lt.u32.totalorder %s4185_s0, %s4739_s14 }
  0x9a   : > { %p4188_p2 = pnand %p4186_p0, %p4925_p1 }
  0x9c   : > { %p4189_p3 = pneg %p4188_p2 }
  0x9e   : > { %p4194_p6 = pnand %p4192_p5, %p4189_p3 }
  0xa0   : > { %4197 = shalt.err (!%p4194_p6)
}
  0xa1   : > { %s4198_s10 = scalar_lea.vmem %s878_s1, 16  ;;  %s4205_s18 = scalar_lea.vmem %s878_s1, 32 }
  0xa2   : > { %p4199_p4 = scmp.ne.s32.totalorder %s878_s1, %s4198_s10  ;;  %p4206_p11 = scmp.lt.s32.totalorder %s878_s1, %s878_s1 }
  0xa3   : > { %p4207_p7 = scmp.lt.s32.totalorder %s4205_s18, %s4198_s10 }
  0xa4   : > { %p4201_p8 = pnand %p4199_p4, %p4925_p1 }
  0xa5   : > { %p4208_p9 = por %p4207_p7, %p4206_p11 }
  0xa6   : > { %p4202_p10 = pneg %p4201_p8 }
  0xa8   : > { %p4209_p12 = pnand %p4208_p9, %p4202_p10 }
  0xaa   : > { %4212 = shalt.err (!%p4209_p12)
}
  0xab   : > { %3886 = dma.hbm_to_vmem [thread:$0]  (!%p4913_p13), %s4739_s14, 16, %s878_s1, [#allocation19]  }
  0xac   : > { %s4667_s19 = smov [#allocation21]   ;;  %s4668_s26 = smov [#allocation24]  }
  0xad   : > { %s901_s28 = sshll.u32 %s4667_s19, 4  ;;  %s929_s0 = sshll.u32 %s4668_s26, 4  ;;  %s902_s28 = int_to_ptr.vmem [resolvable:$true] %s901_s28  ;;  %s930_s0 = int_to_ptr.vmem [resolvable:$true] %s929_s0 }
  0xae   : > { %s4213_s3 = scalar_lea.hbm %s4754_s30, 256 }
  0xaf   : > { %p4214_p0 = scmp.ne.s32.totalorder %s4754_s30, %s4213_s3  ;;  %p4220_p5 = scmp.lt.u32.totalorder %s4213_s3, %s4754_s30 }
  0xb1   : > { %p4216_p2 = pnand %p4214_p0, %p4925_p1 }
  0xb3   : > { %p4217_p3 = pneg %p4216_p2 }
  0xb5   : > { %p4222_p6 = pnand %p4220_p5, %p4217_p3 }
  0xb7   : > { %4225 = shalt.err (!%p4222_p6)
}
  0xb8   : > { %s4226_s10 = scalar_lea.vmem %s902_s28, 256  ;;  %p4234_p11 = scmp.lt.s32.totalorder %s902_s28, %s902_s28 }
  0xb9   : > { %p4227_p4 = scmp.ne.s32.totalorder %s902_s28, %s4226_s10  ;;  %p4235_p7 = scmp.lt.s32.totalorder %s4226_s10, %s4226_s10 }
  0xbb   : > { %p4229_p8 = pnand %p4227_p4, %p4925_p1  ;;  %p4236_p9 = por %p4235_p7, %p4234_p11 }
  0xbd   : > { %p4230_p10 = pneg %p4229_p8 }
  0xbf   : > { %p4237_p12 = pnand %p4236_p9, %p4230_p10 }
  0xc1   : > { %4240 = shalt.err (!%p4237_p12)
}
  0xc2   : > { %s5523_s1 = smov 64   ;;  %s5525_s3 = smov 4  }
  0xc3   : > { %3892 = dma.hbm_to_vmem [thread:$0]  (!%p4913_p13), %s4754_s30, 256, %s902_s28, [#allocation22], %s5523_s1, %s5523_s1, %s5525_s3  }
  0xc4   : > { %s4241_s18 = scalar_lea.hbm %s4769_s20, 16 }
  0xc5   : > { %p4242_p0 = scmp.ne.s32.totalorder %s4769_s20, %s4241_s18  ;;  %p4248_p5 = scmp.lt.u32.totalorder %s4241_s18, %s4769_s20 }
  0xc7   : > { %p4244_p2 = pnand %p4242_p0, %p4925_p1 }
  0xc9   : > { %p4245_p3 = pneg %p4244_p2 }
  0xcb   : > { %p4250_p6 = pnand %p4248_p5, %p4245_p3 }
  0xcd   : > { %4253 = shalt.err (!%p4250_p6)
}
  0xce   : > { %s4254_s19 = scalar_lea.vmem %s930_s0, 16  ;;  %s4261_s26 = scalar_lea.vmem %s930_s0, 32 }
  0xcf   : > { %p4255_p4 = scmp.ne.s32.totalorder %s930_s0, %s4254_s19  ;;  %p4262_p11 = scmp.lt.s32.totalorder %s930_s0, %s930_s0 }
  0xd0   : > { %p4263_p7 = scmp.lt.s32.totalorder %s4261_s26, %s4254_s19 }
  0xd1   : > { %p4257_p8 = pnand %p4255_p4, %p4925_p1 }
  0xd2   : > { %p4264_p9 = por %p4263_p7, %p4262_p11 }
  0xd3   : > { %p4258_p10 = pneg %p4257_p8 }
  0xd5   : > { %p4265_p12 = pnand %p4264_p9, %p4258_p10 }
  0xd7   : > { %4268 = shalt.err (!%p4265_p12)
}
  0xd8   : > { %3898 = dma.hbm_to_vmem [thread:$0]  (!%p4913_p13), %s4769_s20, 16, %s930_s0, [#allocation25]  }
  0xd9   : > { %s4671_s28 = smov [#allocation27]   ;;  %s4269_s18 = scalar_lea.hbm %s5548_s4, 16 }
  0xda   : > { %s953_s10 = sshll.u32 %s4671_s28, 4  ;;  %p4270_p0 = scmp.ne.s32.totalorder %s5548_s4, %s4269_s18  ;;  %s954_s10 = int_to_ptr.vmem [resolvable:$true] %s953_s10 }
  0xdb   : > { %p4276_p5 = scmp.lt.u32.totalorder %s4269_s18, %s5548_s4 }
  0xdc   : > { %p4272_p2 = pnand %p4270_p0, %p4925_p1 }
  0xde   : > { %p4273_p3 = pneg %p4272_p2 }
  0xe0   : > { %p4278_p6 = pnand %p4276_p5, %p4273_p3 }
  0xe2   : > { %4281 = shalt.err (!%p4278_p6)
}
  0xe3   : > { %s4282_s19 = scalar_lea.vmem %s954_s10, 16  ;;  %s4289_s26 = scalar_lea.vmem %s954_s10, 32 }
  0xe4   : > { %p4283_p4 = scmp.ne.s32.totalorder %s954_s10, %s4282_s19  ;;  %p4290_p11 = scmp.lt.s32.totalorder %s954_s10, %s954_s10 }
  0xe5   : > { %p4291_p7 = scmp.lt.s32.totalorder %s4289_s26, %s4282_s19 }
  0xe6   : > { %p4285_p8 = pnand %p4283_p4, %p4925_p1 }
  0xe7   : > { %p4292_p9 = por %p4291_p7, %p4290_p11 }
  0xe8   : > { %p4286_p10 = pneg %p4285_p8 }
  0xea   : > { %p4293_p12 = pnand %p4292_p9, %p4286_p10 }
  0xec   : > { %4296 = shalt.err (!%p4293_p12)
}
  0xed   : > { %3904 = dma.hbm_to_vmem [thread:$0]  (!%p4913_p13), %s5548_s4, 16, %s954_s10, [#allocation28]  }
  0xee   : > { %s4672_s0 = smov [#allocation6]   ;;  %s4673_s18 = smov [#allocation11]  }
  0xef   : > { %s792_s28 = sshll.u32 %s4672_s0, 4  ;;  %s815_s1 = sshll.u32 %s4673_s18, 4  ;;  %s793_s28 = int_to_ptr.vmem [resolvable:$true] %s792_s28  ;;  %s5007_s1 = int_to_ptr.vmem [resolvable:$true] %s815_s1 }
  0xf0   : > { %s4297_s3 = scalar_lea.hbm %s4704_s13, 128 }
  0xf1   : > { %p4298_p0 = scmp.ne.s32.totalorder %s4704_s13, %s4297_s3  ;;  %p4304_p5 = scmp.lt.u32.totalorder %s4297_s3, %s4704_s13 }
  0xf3   : > { %p4300_p2 = pnand %p4298_p0, %p4925_p1 }
  0xf5   : > { %p4301_p3 = pneg %p4300_p2 }
  0xf7   : > { %p4306_p6 = pnand %p4304_p5, %p4301_p3 }
  0xf9   : > { %4309 = shalt.err (!%p4306_p6)
}
  0xfa   : > { %s4310_s19 = scalar_lea.vmem %s793_s28, 128  ;;  %p4318_p11 = scmp.lt.s32.totalorder %s793_s28, %s793_s28 }
  0xfb   : > { %p4311_p4 = scmp.ne.s32.totalorder %s793_s28, %s4310_s19  ;;  %p4319_p7 = scmp.lt.s32.totalorder %s4310_s19, %s4310_s19 }
  0xfd   : > { %p4313_p8 = pnand %p4311_p4, %p4925_p1  ;;  %p4320_p9 = por %p4319_p7, %p4318_p11 }
  0xff   : > { %p4314_p10 = pneg %p4313_p8 }
 0x101   : > { %p4321_p12 = pnand %p4320_p9, %p4314_p10 }
 0x103   : > { %4324 = shalt.err (!%p4321_p12)
}
 0x104   : > { %3865 = dma.hbm_to_vmem [thread:$0]  (!%p4913_p13), %s4704_s13, 128, %s793_s28, [#allocation7]  }
 0x105   : > { %s4325_s3 = scalar_lea.hbm %s4714_s21, 256 }
 0x106   : > { %p4326_p0 = scmp.ne.s32.totalorder %s4714_s21, %s4325_s3  ;;  %p4332_p5 = scmp.lt.u32.totalorder %s4325_s3, %s4714_s21 }
 0x108   : > { %p4328_p2 = pnand %p4326_p0, %p4925_p1 }
 0x10a   : > { %p4329_p3 = pneg %p4328_p2 }
 0x10c   : > { %p4334_p6 = pnand %p4332_p5, %p4329_p3 }
 0x10e   : > { %4337 = shalt.err (!%p4334_p6)
}
 0x10f   : > { %s4338_s10 = scalar_lea.vmem %s5007_s1, 256  ;;  %p4346_p11 = scmp.lt.s32.totalorder %s5007_s1, %s5007_s1 }
 0x110   : > { %p4339_p4 = scmp.ne.s32.totalorder %s5007_s1, %s4338_s10  ;;  %p4347_p7 = scmp.lt.s32.totalorder %s4338_s10, %s4338_s10 }
 0x112   : > { %p4341_p8 = pnand %p4339_p4, %p4925_p1  ;;  %p4348_p9 = por %p4347_p7, %p4346_p11 }
 0x114   : > { %p4342_p10 = pneg %p4341_p8 }
 0x116   : > { %p4349_p12 = pnand %p4348_p9, %p4342_p10 }
 0x118   : > { %4352 = shalt.err (!%p4349_p12)
}
 0x119   : > { %s5563_s26 = smov 4   ;;  %s5564_s0 = smov 64  }
 0x11a   : > { %3871 = dma.hbm_to_vmem [thread:$0]  (!%p4913_p13), %s4714_s21, 256, %s5007_s1, [#allocation10], %s5564_s0, %s5564_s0, %s5563_s26  }
 0x11b   : > { %s4674_s28 = smov [#allocation14]   ;;  %s4675_s19 = smov [#allocation17]  }
 0x11c   : > { %s839_s18 = sshll.u32 %s4674_s28, 4  ;;  %s863_s3 = sshll.u32 %s4675_s19, 4  ;;  %s840_s18 = int_to_ptr.vmem [resolvable:$true] %s839_s18  ;;  %s5037_s3 = int_to_ptr.vmem [resolvable:$true] %s863_s3 }
 0x11d   : > { %s4353_s10 = scalar_lea.hbm %s4724_s29, 256 }
 0x11e   : > { %p4354_p0 = scmp.ne.s32.totalorder %s4724_s29, %s4353_s10  ;;  %p4360_p5 = scmp.lt.u32.totalorder %s4353_s10, %s4724_s29 }
 0x120   : > { %p4356_p2 = pnand %p4354_p0, %p4925_p1 }
 0x122   : > { %p4357_p3 = pneg %p4356_p2 }
 0x124   : > { %p4362_p6 = pnand %p4360_p5, %p4357_p3 }
 0x126   : > { %4365 = shalt.err (!%p4362_p6)
}
 0x127   : > { %s4366_s4 = scalar_lea.vmem %s840_s18, 256  ;;  %p4374_p11 = scmp.lt.s32.totalorder %s840_s18, %s840_s18 }
 0x128   : > { %p4367_p4 = scmp.ne.s32.totalorder %s840_s18, %s4366_s4  ;;  %p4375_p7 = scmp.lt.s32.totalorder %s4366_s4, %s4366_s4 }
 0x12a   : > { %p4369_p8 = pnand %p4367_p4, %p4925_p1  ;;  %p4376_p9 = por %p4375_p7, %p4374_p11 }
 0x12c   : > { %p4370_p10 = pneg %p4369_p8 }
 0x12e   : > { %p4377_p12 = pnand %p4376_p9, %p4370_p10 }
 0x130   : > { %4380 = shalt.err (!%p4377_p12)
}
 0x131   : > { %3877 = dma.hbm_to_vmem [thread:$0]  (!%p4913_p13), %s4724_s29, 256, %s840_s18, [#allocation13], %s5564_s0, %s5564_s0, %s5563_s26  }
 0x132   : > { %s4381_s1 = scalar_lea.hbm %s4734_s8, 256 }
 0x133   : > { %p4382_p0 = scmp.ne.s32.totalorder %s4734_s8, %s4381_s1  ;;  %p4388_p5 = scmp.lt.u32.totalorder %s4381_s1, %s4734_s8 }
 0x135   : > { %p4384_p2 = pnand %p4382_p0, %p4925_p1 }
 0x137   : > { %p4385_p3 = pneg %p4384_p2 }
 0x139   : > { %p4390_p6 = pnand %p4388_p5, %p4385_p3 }
 0x13b   : > { %4393 = shalt.err (!%p4390_p6)
}
 0x13c   : > { %s4394_s4 = scalar_lea.vmem %s5037_s3, 256  ;;  %p4402_p11 = scmp.lt.s32.totalorder %s5037_s3, %s5037_s3 }
 0x13d   : > { %p4395_p4 = scmp.ne.s32.totalorder %s5037_s3, %s4394_s4  ;;  %p4403_p7 = scmp.lt.s32.totalorder %s4394_s4, %s4394_s4 }
 0x13f   : > { %p4397_p8 = pnand %p4395_p4, %p4925_p1  ;;  %p4404_p9 = por %p4403_p7, %p4402_p11 }
 0x141   : > { %p4398_p10 = pneg %p4397_p8 }
 0x143   : > { %p4405_p12 = pnand %p4404_p9, %p4398_p10 }
 0x145   : > { %4408 = shalt.err (!%p4405_p12)
}
 0x146   : > { %3883 = dma.hbm_to_vmem [thread:$0]  (!%p4913_p13), %s4734_s8, 256, %s5037_s3, [#allocation16], %s5564_s0, %s5564_s0, %s5563_s26  }
 0x147   : > { %s4676_s28 = smov [#allocation20]   ;;  %s4677_s19 = smov [#allocation23]  }
 0x148   : > { %s891_s18 = sshll.u32 %s4676_s28, 4  ;;  %s915_s10 = sshll.u32 %s4677_s19, 4  ;;  %s892_s18 = int_to_ptr.vmem [resolvable:$true] %s891_s18  ;;  %s5070_s10 = int_to_ptr.vmem [resolvable:$true] %s915_s10 }
 0x149   : > { %s4409_s1 = scalar_lea.hbm %s4749_s24, 16 }
 0x14a   : > { %p4410_p0 = scmp.ne.s32.totalorder %s4749_s24, %s4409_s1  ;;  %p4416_p5 = scmp.lt.u32.totalorder %s4409_s1, %s4749_s24 }
 0x14c   : > { %p4412_p2 = pnand %p4410_p0, %p4925_p1 }
 0x14e   : > { %p4413_p3 = pneg %p4412_p2 }
 0x150   : > { %p4418_p6 = pnand %p4416_p5, %p4413_p3 }
 0x152   : > { %4421 = shalt.err (!%p4418_p6)
}
 0x153   : > { %s4422_s4 = scalar_lea.vmem %s892_s18, 16  ;;  %s4429_s3 = scalar_lea.vmem %s892_s18, 32 }
 0x154   : > { %p4423_p4 = scmp.ne.s32.totalorder %s892_s18, %s4422_s4  ;;  %p4430_p11 = scmp.lt.s32.totalorder %s892_s18, %s892_s18 }
 0x155   : > { %p4431_p7 = scmp.lt.s32.totalorder %s4429_s3, %s4422_s4 }
 0x156   : > { %p4425_p8 = pnand %p4423_p4, %p4925_p1 }
 0x157   : > { %p4432_p9 = por %p4431_p7, %p4430_p11 }
 0x158   : > { %p4426_p10 = pneg %p4425_p8 }
 0x15a   : > { %p4433_p12 = pnand %p4432_p9, %p4426_p10 }
 0x15c   : > { %4436 = shalt.err (!%p4433_p12)
}
 0x15d   : > { %3889 = dma.hbm_to_vmem [thread:$0]  (!%p4913_p13), %s4749_s24, 16, %s892_s18, [#allocation19]  }
 0x15e   : > { %s4437_s28 = scalar_lea.hbm %s4759_s6, 16 }
 0x15f   : > { %p4438_p0 = scmp.ne.s32.totalorder %s4759_s6, %s4437_s28  ;;  %p4444_p5 = scmp.lt.u32.totalorder %s4437_s28, %s4759_s6 }
 0x161   : > { %p4440_p2 = pnand %p4438_p0, %p4925_p1 }
 0x163   : > { %p4441_p3 = pneg %p4440_p2 }
 0x165   : > { %p4446_p6 = pnand %p4444_p5, %p4441_p3 }
 0x167   : > { %4449 = shalt.err (!%p4446_p6)
}
 0x168   : > { %s4450_s19 = scalar_lea.vmem %s5070_s10, 16  ;;  %s4457_s1 = scalar_lea.vmem %s5070_s10, 32 }
 0x169   : > { %p4451_p4 = scmp.ne.s32.totalorder %s5070_s10, %s4450_s19  ;;  %p4458_p11 = scmp.lt.s32.totalorder %s5070_s10, %s5070_s10 }
 0x16a   : > { %p4459_p7 = scmp.lt.s32.totalorder %s4457_s1, %s4450_s19 }
 0x16b   : > { %p4453_p8 = pnand %p4451_p4, %p4925_p1 }
 0x16c   : > { %p4460_p9 = por %p4459_p7, %p4458_p11 }
 0x16d   : > { %p4454_p10 = pneg %p4453_p8 }
 0x16f   : > { %p4461_p12 = pnand %p4460_p9, %p4454_p10 }
 0x171   : > { %4464 = shalt.err (!%p4461_p12)
}
 0x172   : > { %3895 = dma.hbm_to_vmem [thread:$0]  (!%p4913_p13), %s4759_s6, 16, %s5070_s10, [#allocation22]  }
 0x173   : > { %s4678_s18 = smov [#allocation26]   ;;  %s4679_s3 = smov [#allocation29]  }
 0x174   : > { %s939_s4 = sshll.u32 %s4678_s18, 4  ;;  %s969_s28 = sshll.u32 %s4679_s3, 4  ;;  %s940_s4 = int_to_ptr.vmem [resolvable:$true] %s939_s4  ;;  %s5098_s28 = int_to_ptr.vmem [resolvable:$true] %s969_s28 }
 0x175   : > { %s4465_s19 = scalar_lea.hbm %s4774_s27, 256 }
 0x176   : > { %p4466_p0 = scmp.ne.s32.totalorder %s4774_s27, %s4465_s19  ;;  %p4472_p5 = scmp.lt.u32.totalorder %s4465_s19, %s4774_s27 }
 0x178   : > { %p4468_p2 = pnand %p4466_p0, %p4925_p1 }
 0x17a   : > { %p4469_p3 = pneg %p4468_p2 }
 0x17c   : > { %p4474_p6 = pnand %p4472_p5, %p4469_p3 }
 0x17e   : > { %4477 = shalt.err (!%p4474_p6)
}
 0x17f   : > { %s4478_s1 = scalar_lea.vmem %s940_s4, 256  ;;  %p4486_p11 = scmp.lt.s32.totalorder %s940_s4, %s940_s4 }
 0x180   : > { %p4479_p4 = scmp.ne.s32.totalorder %s940_s4, %s4478_s1  ;;  %p4487_p7 = scmp.lt.s32.totalorder %s4478_s1, %s4478_s1 }
 0x182   : > { %p4481_p8 = pnand %p4479_p4, %p4925_p1  ;;  %p4488_p9 = por %p4487_p7, %p4486_p11 }
 0x184   : > { %p4482_p10 = pneg %p4481_p8 }
 0x186   : > { %p4489_p12 = pnand %p4488_p9, %p4482_p10 }
 0x188   : > { %4492 = shalt.err (!%p4489_p12)
}
 0x189   : > { %s5565_s10 = sld [smem:[#allocation48_spill]] }
 0x18a   : > { %3901 = dma.hbm_to_vmem [thread:$0]  (!%p4913_p13), %s4774_s27, 256, %s940_s4, [#allocation25], %s5564_s0, %s5564_s0, %s5563_s26  }
 0x18f   : > { %s4493_s18 = scalar_lea.hbm %s5565_s10, 256 }
 0x190   : > { %p4494_p0 = scmp.ne.s32.totalorder %s5565_s10, %s4493_s18  ;;  %p4500_p5 = scmp.lt.u32.totalorder %s4493_s18, %s5565_s10 }
 0x192   : > { %p4496_p2 = pnand %p4494_p0, %p4925_p1 }
 0x194   : > { %p4497_p3 = pneg %p4496_p2 }
 0x196   : > { %p4502_p6 = pnand %p4500_p5, %p4497_p3 }
 0x198   : > { %4505 = shalt.err (!%p4502_p6)
}
 0x199   : > { %s4506_s3 = scalar_lea.vmem %s5098_s28, 256  ;;  %p4514_p11 = scmp.lt.s32.totalorder %s5098_s28, %s5098_s28 }
 0x19a   : > { %p4507_p4 = scmp.ne.s32.totalorder %s5098_s28, %s4506_s3  ;;  %p4515_p7 = scmp.lt.s32.totalorder %s4506_s3, %s4506_s3 }
 0x19c   : > { %p4509_p8 = pnand %p4507_p4, %p4925_p1  ;;  %p4516_p9 = por %p4515_p7, %p4514_p11 }
 0x19e   : > { %p4510_p10 = pneg %p4509_p8 }
 0x1a0   : > { %p4517_p12 = pnand %p4516_p9, %p4510_p10 }
 0x1a2   : > { %4520 = shalt.err (!%p4517_p12)
}
 0x1a3   : > { %3907 = dma.hbm_to_vmem [thread:$0]  (!%p4913_p13), %s5565_s10, 256, %s5098_s28, [#allocation28], %s5564_s0, %s5564_s0, %s5563_s26  }
 0x1a4   : > { %p5566_p0 = scmp.ne.s32.totalorder %s5559_s15, 0 }
 0x1a5   : > { %p5567_p1 = scmp.ne.s32.totalorder (!%p5566_p0), %s5560_s7, 0 }
 0x1a6   : > { %1027 = sbr.rel (%p5566_p0) target bundleno = 7031 (0x1b77), region = 140 }
 0x1ad   : > { %4574 = dma.done.wait (%p5567_p1), [#allocation7], 128  }
 0x1ae   : > { %4576 = vsyncadd (%p5567_p1), [#allocation7], 4294967168 }
 0x1af   : > { %4578 = dma.done.wait (%p5567_p1), [#allocation10], 384  }
 0x1b0   : > { %4580 = vsyncadd (%p5567_p1), [#allocation10], 4294966912 }
 0x1b1   : > { %4582 = dma.done.wait (%p5567_p1), [#allocation13], 272  }
 0x1b2   : > { %4584 = vsyncadd (%p5567_p1), [#allocation13], 4294967024 }
 0x1b3   : > { %4586 = dma.done.wait (%p5567_p1), [#allocation16], 272  }
 0x1b4   : > { %4588 = vsyncadd (%p5567_p1), [#allocation16], 4294967024 }
 0x1b5   : > { %4590 = dma.done.wait (%p5567_p1), [#allocation19], 32  }
 0x1b6   : > { %4592 = vsyncadd (%p5567_p1), [#allocation19], 4294967264 }
 0x1b7   : > { %4594 = dma.done.wait (%p5567_p1), [#allocation22], 272  }
 0x1b8   : > { %4596 = vsyncadd (%p5567_p1), [#allocation22], 4294967024 }
 0x1b9   : > { %4598 = dma.done.wait (%p5567_p1), [#allocation25], 272  }
 0x1ba   : > { %4600 = vsyncadd (%p5567_p1), [#allocation25], 4294967024 }
 0x1bb   : > { %4602 = dma.done.wait (%p5567_p1), [#allocation28], 272  }
 0x1bc   : > { %4604 = vsyncadd (%p5567_p1), [#allocation28], 4294967024  ;;  %s5568_s15 = sld [smem:[#allocation40_spill]]  ;;  %p1165_p13 = scmp.lt.s32.totalorder %s4623_s22, 1  ;;  %v4680_v0 = vmov 0.0   ;;  %vm4681_vm0 = vmmov 0  }
 0x1bd   : > { %s5569_s11 = sld [smem:[#allocation41_spill]]  ;;  %3588 = vmatprep.subr.bf16.mxu0 %v4680_v0  ;;  %3592 = vmatprep.mubr.msk.bf16.mxu0 %vm4681_vm0, %v4680_v0  ;;  %s5570_s2 = sld [smem:[#allocation44_spill]]  ;;  %v4043_v1 = vld [vmem:[#allocation14] sm:$0xff]   ;;  %v4044_v2 = vld [vmem:[#allocation14 + $0x8] sm:$0xff]   ;;  %vm1207_vm1 = vcmask 261120   ;;  %v4049_v6 = vld [vmem:[#allocation17] sm:$0xff]  }
 0x1be   : > { %s1166_s26 = scalar_select %p1165_p13, %s4623_s22, 1  ;;  %3596 = vmatprep.subr.bf16.mxu1 %v4680_v0  ;;  %3600 = vmatprep.mubr.msk.bf16.mxu1 %vm4681_vm0, %v4680_v0  ;;  %v4050_v10 = vld [vmem:[#allocation17 + $0x8] sm:$0xff]   ;;  %v4047_v11 = vld [vmem:[#allocation11] sm:$0xff]   ;;  %v4052_v15 = vld [vmem:[#allocation26 + $0x8] sm:$0xff]   ;;  %vm1252_vm2 = vcmask 257024   ;;  %vm1532_vm3 = vcmask 64512  }
 0x1bf   : > { %3589 = vmatpush3.bf16.msra.mxu0 %v4043_v1  ;;  %3597 = vmatpush3.bf16.msra.mxu1 %v4049_v6  ;;  %v4048_v13 = vld [vmem:[#allocation11 + $0x8] sm:$0xff]   ;;  %v3441_v16 = vld [vmem:[#allocation15] ss:$0 sm:$0xff]  ;;  %v3445_v27 = vld [vmem:[#allocation18] ss:$0 sm:$0xff]  ;;  %s4682_s19 = smov 120  }
 0x1c0   : > { %s3438_s7 = sshll.u32 %s1166_s26, 3  ;;  %s3513_s4 = sshll.u32 %s1166_s26, 4  ;;  %3590 = vmatprep.subr.bf16.mxu0 %v4680_v0  ;;  %3598 = vmatprep.subr.bf16.mxu1 %v4680_v0  ;;  %v4051_v14 = vld [vmem:[#allocation26] sm:$0xff]   ;;  %v3449_v23 = vld [vmem:[#allocation24] ss:$0 sm:$0xff]  ;;  %vm1594_vm4 = vcmask 1043456  }
 0x1c1   : > { %v3457_v41 = vld [vmem:[#allocation12] ss:$0 sm:$0xff]  ;;  %v3453_v49 = vld [vmem:[#allocation27] ss:$0 sm:$0xff]  ;;  %s4683_s1 = smov 112   ;;  %s5571_s18 = sld [smem:[#allocation43_spill]] }
 0x1c2   : > { %s1168_s0 = scalar_lea.vmem %s5568_s15, %s3438_s7  ;;  %v1459_v62 = vld [vmem:[#allocation6] sm:$0xff]  ;;  %s4684_s15 = smov 104   ;;  %vm2328_vm7 = vcmask 130048   ;;  %vm3051_vm8 = vcmask 523264  }
 0x1c3   : > { %v5174_v3 = vld [vmem:[%s1168_s0] sm:$0xff]  ;;  %s1173_s28 = scalar_lea.vmem %s5569_s11, %s3513_s4  ;;  %3591 = vmatpush3.bf16.msra.mxu0 %v4044_v2  ;;  %v4046_v7 = vld [vmem:[%s5570_s2 + $0x8] sm:$0xff]   ;;  %3599 = vmatpush3.bf16.msra.mxu1 %v4050_v10  ;;  %vm1529_vm5 = vcmp.eq.f32.partialorder %v1459_v62, 0.0  ;;  %s5573_s11 = sld [smem:[#allocation52_spill]] }
 0x1c4   : > { %v1180_v4 = vpack.c.bf16 %v5174_v3, %v5174_v3  ;;  %v4045_v5 = vld [vmem:[%s5570_s2] sm:$0xff]   ;;  %3604 = vmatprep.subr.bf16.mxu0 %v4680_v0  ;;  %v1182_v9 = vld [vmem:[%s1173_s28 + $0x8] sm:$0xff]  ;;  %3612 = vmatprep.subr.bf16.mxu1 %v4680_v0  ;;  %v5232_v63 = vsel %vm1529_vm5, -1e+09, %v4680_v0  ;;  %s5574_s26 = sld [smem:[#allocation53_spill]]  ;;  %s5575_s7 = sld [smem:[#allocation46_spill]] }
 0x1c5   : > { %v1181_v8 = vld [vmem:[%s1173_s28] sm:$0xff]  ;;  %s5576_s0 = sld [smem:[#allocation47_spill]]  ;;  %s5577_s4 = sld [smem:[#allocation50_spill]] }
 0x1c6   : > { %3593 = vmatmul.mubr.msk.bf16.vlgmr.msra.gmra.mrb[0].mxu0 %vm1207_vm1, %v1180_v4  ;;  %v1183_v12 = vpack.c.bf16 %v1182_v9, %v1181_v8  ;;  %3601 = vmatmul.mubr.msk.bf16.vlgmr.msra.gmra.mrb[0].mxu1 %vm1207_vm1, %v1180_v4  ;;  %s5578_s28 = sld [smem:[#allocation54_spill]]  ;;  %s5581_s5 = sld [smem:[#allocation55_spill]] }
 0x1c7   : > { %3605 = vmatpush3.bf16.msra.mxu0 %v4045_v5  ;;  %3608 = vmatprep.mubr.msk.bf16.mxu0 %vm4681_vm0, %v4680_v0  ;;  %s5572_s3 = smov %s5571_s18 }
 0x1c8   : > { %3606 = vmatprep.subr.bf16.mxu0 %v4680_v0  ;;  %3616 = vmatprep.mubr.msk.bf16.mxu1 %vm4681_vm0, %v4680_v0 }
 0x1c9   : > { %3613 = vmatpush3.bf16.msra.mxu1 %v4051_v14 }
 0x1ca   : > { %3614 = vmatprep.subr.bf16.mxu1 %v4680_v0 }
 0x1cb   : > { %3607 = vmatpush3.bf16.msra.mxu0 %v4046_v7 }
 0x1cc   : > { %3620 = vmatprep.subr.bf16.mxu0 %v4680_v0 }
 0x1cd   : > { %3615 = vmatpush3.bf16.msra.mxu1 %v4052_v15 }
 0x1ce   : > { %3609 = vmatmul.mubr.msk.bf16.vlgmr.msra.gmra.mrb[4].mxu0 %vm1207_vm1, %v1183_v12  ;;  %3628 = vmatprep.subr.bf16.mxu1 %v4680_v0 }
 0x1cf   : > { %3621 = vmatpush3.bf16.msra.mxu0 %v4047_v11  ;;  %3624 = vmatprep.mubr.msk.bf16.mxu0 %vm4681_vm0, %v4680_v0 }
 0x1d0   : > { %3622 = vmatprep.subr.bf16.mxu0 %v4680_v0  ;;  %3617 = vmatmul.mubr.msk.bf16.vlgmr.msra.gmra.mrb[4].mxu1 %vm1207_vm1, %v1183_v12 }
 0x1d1   : > { %3630 = vmatprep.mubr.msk.bf16.mxu1 %vm4681_vm0, %v4680_v0 }
 0x1d3   : > { %3623 = vmatpush3.bf16.msra.mxu0 %v4048_v13 }
 0x1d4   : > { %3634 = vmatprep.subr.bf16.mxu0 %v4680_v0 }
 0x1d6   : > { %3625 = vmatmul.mubr.msk.bf16.vlgmr.msra.gmra.mrb[8].mxu0 %vm1207_vm1, %v1180_v4 }
 0x1d7   : > { %3636 = vmatprep.mubr.msk.bf16.mxu0 %vm4681_vm0, %v4680_v0 }
 0x299   : > { %v1245_v17 = vpop.f32.mrb[0].mxu0  ;;  %v1311_v28 = vpop.f32.mrb[0].mxu1 }
 0x29a   : > { %v1246_v18 = vadd.f32 %v3441_v16, %v1245_v17  ;;  %v3594_v19 = vpop.f32.mrb[1].mxu0  ;;  %v1312_v32 = vadd.f32 %v3445_v27, %v1311_v28  ;;  %v3602_v33 = vpop.f32.mrb[1].mxu1 }
 0x29b   : > { %v1248_v20 = vpop.f32.mrb[2].mxu0  ;;  %v1314_v35 = vpop.f32.mrb[2].mxu1 }
 0x29c   : > { %v1251_v21 = vpack.c.bf16 %v1246_v18, %v1246_v18  ;;  %v3595_v22 = vpop.f32.mrb[3].mxu0  ;;  %v1317_v39 = vpack.c.bf16 %v1312_v32, %v1312_v32  ;;  %v3603_v40 = vpop.f32.mrb[3].mxu1  ;;  %v1639_v35 = vld [vmem:[%s5572_s3] sm:$0xf] }
 0x29e   : > { %1253 = vst.msk [vmem:[#allocation2] sm:$0xf] %vm1252_vm2, %v1251_v21  ;;  %1318 = vst.msk [vmem:[#allocation3] sm:$0xf] %vm1252_vm2, %v1317_v39  ;;  %v1809_v39 = vsel %vm1594_vm4, %v1639_v35, 0 }
 0x2a1   : > { %v1379_v24 = vpop.f32.mrb[4].mxu0 }
 0x2a2   : > { %v3610_v25 = vpop.f32.mrb[5].mxu0  ;;  %v1380_v29 = vadd.f32 %v3449_v23, %v1379_v24 }
 0x2a3   : > { %v1382_v26 = vpop.f32.mrb[6].mxu0  ;;  %v1445_v50 = vpop.f32.mrb[4].mxu1 }
 0x2a4   : > { %v1383_v30 = vadd.f32 %v3449_v23, %v1382_v26  ;;  %v3611_v31 = vpop.f32.mrb[7].mxu0  ;;  %v1446_v51 = vadd.f32 %v3453_v49, %v1445_v50  ;;  %v3618_v52 = vpop.f32.mrb[5].mxu1 }
 0x2a5   : > { %v1457_v34 = vld [vmem:[#allocation2] sm:$0xf]  ;;  %v1448_v53 = vpop.f32.mrb[6].mxu1  ;;  %v1458_v57 = vld [vmem:[#allocation3] sm:$0xf] }
 0x2a6   : > { %v1386_v36 = vpack.c.bf16 %v1383_v30, %v1380_v29  ;;  %v1537_v37 = vsel %vm1532_vm3, %v1457_v34, 0  ;;  %v5208_v38 = vcombine.low %v1457_v34, %v1457_v34  ;;  %v1449_v54 = vadd.f32 %v3453_v49, %v1448_v53  ;;  %v3619_v55 = vpop.f32.mrb[7].mxu1  ;;  %v1758_v29 = vld [vmem:[%s5571_s18 + $0x4] sm:$0xf]  ;;  %s5582_s18 = sld [smem:[#allocation56_spill]] }
 0x2a7   : > { %3629 = vmatpush3.bf16.xpose.msra.mxu1 %v1537_v37  ;;  %v1596_v58 = vsel %vm1594_vm4, %v1458_v57, 0  ;;  %v5239_v19 = vcombine.low %v1458_v57, %v1458_v57  ;;  %v1763_v30 = vsel %vm1594_vm4, %v1758_v29, 0 }
 0x2a8   : > { %1387 = vst.msk [vmem:[#allocation4] sm:$0xff] %vm1207_vm1, %v1386_v36  ;;  %1646 = vrot.lane.b32.xlu0 %v5208_v38, %s4682_s19  ;;  %3640 = vmatprep.subr.bf16.mxu1 %v4680_v0  ;;  %v1452_v56 = vpack.c.bf16 %v1449_v54, %v1446_v51 }
 0x2a9   : > { %v1522_v42 = vpop.f32.mrb[8].mxu0  ;;  %3635 = vmatpush3.bf16.msra.mxu0 %v1596_v58 }
 0x2aa   : > { %v1523_v43 = vadd.f32 %v3457_v41, %v1522_v42  ;;  %v3626_v44 = vpop.f32.mrb[9].mxu0  ;;  %1453 = vst.msk [vmem:[#allocation5] sm:$0xff] %vm1207_vm1, %v1452_v56  ;;  %3646 = vmatprep.subr.bf16.mxu0 %v4680_v0 }
 0x2ab   : > { %v1525_v45 = vpop.f32.mrb[10].mxu0 }
 0x2ac   : > { %v1528_v46 = vmul.f32 0.35355338, %v1523_v43  ;;  %v3627_v47 = vpop.f32.mrb[11].mxu0 }
 0x2ae   : > { %v5215_v48 = vpack.c.bf16 %v1528_v46, %v1528_v46 }
 0x2b0   : > { %1641 = vrot.lane.b32.xlu0 %v5215_v48, %s4682_s19  ;;  %3631 = vmatmul.mubr.msk.bf16.vlgmr.msra.gmra.mrb[8].mxu1 %vm1532_vm3, %v5215_v48 }
 0x2b1   : > { %3642 = vmatprep.mubr.msk.bf16.mxu1 %vm4681_vm0, %v4680_v0 }
 0x31a   : > { %v1647_v59 = vpop.permute.xlu0 %1646 }
 0x31b   : > { %v1652_v60 = vsel %vm1532_vm3, %v1647_v59, 0 }
 0x31c   : > { %3641 = vmatpush3.bf16.xpose.msra.mxu1 %v1652_v60 }
 0x31d   : > { %3652 = vmatprep.subr.bf16.mxu1 %v4680_v0 }
 0x322   : > { %v1642_v61 = vpop.permute.xlu0 %1641 }
 0x323   : > { %3643 = vmatmul.mubr.msk.bf16.vlgmr.msra.gmra.mrb[12].mxu1 %vm1532_vm3, %v1642_v61 }
 0x324   : > { %3654 = vmatprep.mubr.msk.bf16.mxu1 %vm4681_vm0, %v4680_v0  ;;  %3653 = vmatpush3.bf16.msra.mxu1 %v1763_v30 }
 0x325   : > { %3664 = vmatprep.subr.bf16.mxu1 %v4680_v0 }
 0x383   : > { %v1573_v1 = vpop.f32.mrb[8].mxu1 }
 0x384   : > { %v1574_v2 = vadd.f32 %v1573_v1, %v5232_v63  ;;  %v3632_v4 = vpop.f32.mrb[9].mxu1 }
 0x385   : > { %v1576_v5 = vpop.f32.mrb[10].mxu1 }
 0x386   : > { %v3633_v6 = vpop.f32.mrb[11].mxu1  ;;  %v1579_v7 = vsel %vm1532_vm3, %v1574_v2, -inf }
 0x387   : > { %1580 = vmax.xlane.f32.xlu1 %v1579_v7 }
 0x3f6   : > { %v1688_v8 = vpop.f32.mrb[12].mxu1 }
 0x3f7   : > { %v1689_v9 = vadd.f32 %v1688_v8, %v5232_v63  ;;  %v3644_v10 = vpop.f32.mrb[13].mxu1 }
 0x3f8   : > { %v1691_v11 = vpop.f32.mrb[14].mxu1 }
 0x3f9   : > { %v3645_v12 = vpop.f32.mrb[15].mxu1  ;;  %v1694_v13 = vsel %vm1532_vm3, %v1689_v9, -inf }
 0x3fa   : > { %1695 = vmax.xlane.f32.xlu1 %v1694_v13 }
 0x414   : > { %v1581_v14 = vpop.xlane.xlu1 %1580 }
 0x415   : > { %v1582_v15 = vsub.f32 %v1574_v2, %v1581_v14 }
 0x417   : > { %v1583_v16 = vmul.f32 1.442695, %v1582_v15 }
 0x419   : > { %4063 = vpow2.f32 %v1583_v16 }
 0x423   : > { %v4064_v17 = vpop.eup %4063 }
 0x424   : > { %v1585_v18 = vsel %vm1532_vm3, %v4064_v17, 0.0 }
 0x425   : > { %1586 = vadd.xlane.f32.xlu0 %v1585_v18 }
 0x43b   : > { %1913 = vrot.lane.b32.xlu0 %v5239_v19, %s4683_s1 }
 0x487   : > { %v1696_v20 = vpop.xlane.xlu1 %1695 }
 0x488   : > { %v1697_v21 = vsub.f32 %v1689_v9, %v1696_v20 }
 0x48a   : > { %v1698_v22 = vmul.f32 1.442695, %v1697_v21 }
 0x48c   : > { %4065 = vpow2.f32 %v1698_v22 }
 0x496   : > { %v4066_v23 = vpop.eup %4065 }
 0x497   : > { %v1700_v24 = vsel %vm1532_vm3, %v4066_v23, 0.0 }
 0x498   : > { %1701 = vadd.xlane.f32.xlu1 %v1700_v24 }
 0x4a9   : > { %1709 = vrot.lane.b32.xlu1 %v5239_v19, %s4682_s19 }
 0x4ad   : > { %1853 = vrot.lane.b32.xlu1 %v5208_v38, %s4683_s1 }
 0x4b1   : > { %1851 = vrot.lane.b32.xlu1 %v5215_v48, %s4683_s1 }
 0x4b2   : > { %v1587_v25 = vpop.xlane.xlu0 %1586 }
 0x4b3   : > { %4067 = vrcp.f32 %v1587_v25 }
 0x4b6   : > { %v1914_v40 = vpop.permute.xlu0 %1913 }
 0x4b7   : > { %v1919_v45 = vsel %vm1594_vm4, %v1914_v40, 0  ;;  %v2121_v40 = vld [vmem:[%s5572_s3 + $0xc] sm:$0xf] }
 0x4bd   : > { %v4068_v26 = vpop.eup %4067 }
 0x4be   : > { %v1589_v27 = vmul.f32 %v4068_v26, %v4064_v17 }
 0x4c0   : > { %v1590_v28 = vpack.c.bf16 %v1589_v27, %v1589_v27 }
 0x4c2   : > { %3637 = vmatmul.mubr.msk.bf16.vlgmr.msra.gmra.mrb[12].mxu0 %vm1532_vm3, %v1590_v28 }
 0x4c3   : > { %3648 = vmatprep.mubr.msk.bf16.mxu0 %vm4681_vm0, %v4680_v0 }
 0x525   : > { %v1702_v31 = vpop.xlane.xlu1 %1701 }
 0x526   : > { %4069 = vrcp.f32 %v1702_v31 }
 0x529   : > { %v1710_v32 = vpop.permute.xlu1 %1709 }
 0x52a   : > { %v1715_v33 = vsel %vm1594_vm4, %v1710_v32, 0 }
 0x52b   : > { %3647 = vmatpush3.bf16.msra.mxu0 %v1715_v33 }
 0x52c   : > { %3658 = vmatprep.subr.bf16.mxu0 %v4680_v0 }
 0x52d   : > { %v1854_v47 = vpop.permute.xlu1 %1853 }
 0x52e   : > { %v1859_v53 = vsel %vm1532_vm3, %v1854_v47, 0 }
 0x530   : > { %v4070_v34 = vpop.eup %4069 }
 0x531   : > { %v1704_v36 = vmul.f32 %v4070_v34, %v4066_v23  ;;  %v1852_v55 = vpop.permute.xlu1 %1851 }
 0x533   : > { %v1705_v37 = vpack.c.bf16 %v1704_v36, %v1704_v36 }
 0x535   : > { %3649 = vmatmul.mubr.msk.bf16.vlgmr.msra.gmra.mrb[16].mxu0 %vm1532_vm3, %v1705_v37 }
 0x536   : > { %3659 = vmatpush3.bf16.msra.mxu0 %v1809_v39  ;;  %3660 = vmatprep.mubr.msk.bf16.mxu0 %vm4681_vm0, %v4680_v0 }
 0x537   : > { %3670 = vmatprep.subr.bf16.mxu0 %v4680_v0 }
 0x595   : > { %v1632_v41 = vpop.f32.mrb[12].mxu0 }
 0x596   : > { %v1638_v42 = vpack.c.bf16 %v1632_v41, %v1632_v41  ;;  %v3638_v43 = vpop.f32.mrb[13].mxu0 }
 0x597   : > { %v1635_v44 = vpop.f32.mrb[14].mxu0 }
 0x598   : > { %v3639_v46 = vpop.f32.mrb[15].mxu0  ;;  %3661 = vmatmul.mubr.msk.bf16.vlgmr.msra.gmra.mrb[20].mxu0 %vm1532_vm3, %v1638_v42 }
 0x599   : > { %3671 = vmatpush3.bf16.msra.mxu0 %v1919_v45  ;;  %3672 = vmatprep.mubr.msk.bf16.mxu0 %vm4681_vm0, %v4680_v0 }
 0x59a   : > { %3682 = vmatprep.subr.bf16.mxu0 %v4680_v0 }
 0x608   : > { %v1751_v49 = vpop.f32.mrb[16].mxu0 }
 0x609   : > { %v1757_v50 = vpack.c.bf16 %v1751_v49, %v1751_v49  ;;  %v3650_v51 = vpop.f32.mrb[17].mxu0 }
 0x60a   : > { %v1754_v52 = vpop.f32.mrb[18].mxu0 }
 0x60b   : > { %v3651_v54 = vpop.f32.mrb[19].mxu0  ;;  %3655 = vmatmul.mubr.msk.bf16.vlgmr.msra.gmra.mrb[16].mxu1 %vm1532_vm3, %v1757_v50 }
 0x60c   : > { %3665 = vmatpush3.bf16.xpose.msra.mxu1 %v1859_v53  ;;  %3666 = vmatprep.mubr.msk.bf16.mxu1 %vm4681_vm0, %v4680_v0  ;;  %v5314_v53 = vld [vmem:[#allocation4] sm:$0xff] }
 0x60d   : > { %3676 = vmatprep.subr.bf16.mxu1 %v4680_v0 }
 0x613   : > { %3667 = vmatmul.mubr.msk.bf16.vlgmr.msra.gmra.mrb[20].mxu1 %vm1532_vm3, %v1852_v55 }
 0x614   : > { %3678 = vmatprep.mubr.msk.bf16.mxu1 %vm4681_vm0, %v4680_v0 }
 0x66b   : > { %v1845_v56 = vpop.f32.mrb[20].mxu0 }
 0x66c   : > { %v3662_v57 = vpop.f32.mrb[21].mxu0 }
 0x66d   : > { %v1848_v58 = vpop.f32.mrb[22].mxu0 }
 0x66e   : > { %v3663_v59 = vpop.f32.mrb[23].mxu0  ;;  %v2286_v58 = vsel %vm1532_vm3, %v5314_v53, 0 }
 0x6de   : > { %v1799_v60 = vpop.f32.mrb[16].mxu1 }
 0x6df   : > { %v5277_v61 = vadd.f32 %v1845_v56, %v1799_v60  ;;  %v3656_v62 = vpop.f32.mrb[17].mxu1  ;;  %v3475_v60 = vld [vmem:[#allocation20] ss:$0 sm:$0xff] }
 0x6e0   : > { %v1802_v1 = vpop.f32.mrb[18].mxu1 }
 0x6e1   : > { %v3657_v2 = vpop.f32.mrb[19].mxu1 }
 0x6e6   : > { %v1895_v4 = vpop.f32.mrb[20].mxu1 }
 0x6e7   : > { %v1896_v5 = vadd.f32 %v1895_v4, %v5232_v63  ;;  %v3668_v6 = vpop.f32.mrb[21].mxu1 }
 0x6e8   : > { %v1898_v7 = vpop.f32.mrb[22].mxu1 }
 0x6e9   : > { %v3669_v8 = vpop.f32.mrb[23].mxu1  ;;  %v1901_v9 = vsel %vm1532_vm3, %v1896_v5, -inf }
 0x6ea   : > { %1902 = vmax.xlane.f32.xlu1 %v1901_v9 }
 0x777   : > { %v1903_v10 = vpop.xlane.xlu1 %1902 }
 0x778   : > { %v1904_v11 = vsub.f32 %v1896_v5, %v1903_v10 }
 0x77a   : > { %v1905_v12 = vmul.f32 1.442695, %v1904_v11 }
 0x77c   : > { %4071 = vpow2.f32 %v1905_v12  ;;  %v4055_v12 = vld [vmem:[#allocation21] sm:$0xff]  }
 0x786   : > { %v4072_v13 = vpop.eup %4071 }
 0x787   : > { %v1907_v14 = vsel %vm1532_vm3, %v4072_v13, 0.0 }
 0x788   : > { %1908 = vadd.xlane.f32.xlu0 %v1907_v14 }
 0x79e   : > { %2012 = vrot.lane.b32.xlu0 %v5208_v38, %s4684_s15 }
 0x7a2   : > { %2010 = vrot.lane.b32.xlu0 %v5215_v48, %s4684_s15  ;;  %v1962_v48 = vld [vmem:[%s5572_s3 + $0x8] sm:$0xf] }
 0x7a3   : > { %v1967_v22 = vsel %vm1594_vm4, %v1962_v48, 0 }
 0x7a4   : > { %3677 = vmatpush3.bf16.msra.mxu1 %v1967_v22  ;;  %v5336_v22 = vld [vmem:[#allocation5] sm:$0xff] }
 0x7a5   : > { %3688 = vmatprep.subr.bf16.mxu1 %v4680_v0 }
 0x815   : > { %v1909_v15 = vpop.xlane.xlu0 %1908 }
 0x816   : > { %4073 = vrcp.f32 %v1909_v15 }
 0x819   : > { %v2013_v18 = vpop.permute.xlu0 %2012 }
 0x81a   : > { %v2018_v21 = vsel %vm1532_vm3, %v2013_v18, 0 }
 0x81d   : > { %v2011_v38 = vpop.permute.xlu0 %2010 }
 0x820   : > { %v4074_v16 = vpop.eup %4073 }
 0x821   : > { %v1911_v17 = vmul.f32 %v4074_v16, %v4072_v13 }
 0x823   : > { %v1912_v20 = vpack.c.bf16 %v1911_v17, %v1911_v17  ;;  %v3476_v17 = vld [vmem:[%s5573_s11] ss:$0 sm:$0xff]  ;;  %s5583_s11 = smov %s5582_s18 }
 0x825   : > { %3673 = vmatmul.mubr.msk.bf16.vlgmr.msra.gmra.mrb[24].mxu0 %vm1532_vm3, %v1912_v20  ;;  %v3477_v20 = vld [vmem:[%s5574_s26] ss:$0 sm:$0xff] }
 0x826   : > { %3683 = vmatpush3.bf16.xpose.msra.mxu0 %v2018_v21  ;;  %3684 = vmatprep.mubr.msk.bf16.mxu0 %vm4681_vm0, %v4680_v0 }
 0x827   : > { %3694 = vmatprep.subr.bf16.mxu0 %v4680_v0 }
 0x82d   : > { %3685 = vmatmul.mubr.msk.bf16.vlgmr.msra.gmra.mrb[28].mxu0 %vm1532_vm3, %v2011_v38 }
 0x82e   : > { %3696 = vmatprep.mubr.msk.bf16.mxu0 %vm4681_vm0, %v4680_v0 }
 0x8f8   : > { %v1955_v23 = vpop.f32.mrb[24].mxu0 }
 0x8f9   : > { %v1961_v24 = vpack.c.bf16 %v1955_v23, %v1955_v23  ;;  %v3674_v25 = vpop.f32.mrb[25].mxu0  ;;  %v3478_v23 = vld [vmem:[#allocation23] ss:$0 sm:$0xff] }
 0x8fa   : > { %v1958_v26 = vpop.f32.mrb[26].mxu0 }
 0x8fb   : > { %v3675_v27 = vpop.f32.mrb[27].mxu0  ;;  %3679 = vmatmul.mubr.msk.bf16.vlgmr.msra.gmra.mrb[24].mxu1 %vm1532_vm3, %v1961_v24 }
 0x8fc   : > { %3690 = vmatprep.mubr.msk.bf16.mxu1 %vm4681_vm0, %v4680_v0 }
 0x900   : > { %v2054_v28 = vpop.f32.mrb[28].mxu0 }
 0x901   : > { %v2055_v29 = vadd.f32 %v2054_v28, %v5232_v63  ;;  %v3686_v30 = vpop.f32.mrb[29].mxu0  ;;  %v2126_v63 = vsel %vm1594_vm4, %v2121_v40, 0 }
 0x902   : > { %v2057_v31 = vpop.f32.mrb[30].mxu0  ;;  %3695 = vmatpush3.bf16.msra.mxu0 %v2126_v63 }
 0x903   : > { %v3687_v32 = vpop.f32.mrb[31].mxu0  ;;  %v2060_v33 = vsel %vm1532_vm3, %v2055_v29, -inf  ;;  %3708 = vmatprep.subr.bf16.mxu0 %v4680_v0 }
 0x904   : > { %2061 = vmax.xlane.f32.xlu0 %v2060_v33 }
 0x991   : > { %v2062_v34 = vpop.xlane.xlu0 %2061 }
 0x992   : > { %v2063_v35 = vsub.f32 %v2055_v29, %v2062_v34  ;;  %v2210_v34 = vld [vmem:[#allocation9] sm:$0xff] }
 0x993   : > { %vm2279_vm6 = vcmp.eq.f32.partialorder %v2210_v34, 0.0 }
 0x994   : > { %v2064_v36 = vmul.f32 1.442695, %v2063_v35  ;;  %v5356_v35 = vsel %vm2279_vm6, -1e+09, %v4680_v0 }
 0x996   : > { %4075 = vpow2.f32 %v2064_v36 }
 0x9a0   : > { %v4076_v37 = vpop.eup %4075 }
 0x9a1   : > { %v2066_v39 = vsel %vm1532_vm3, %v4076_v37, 0.0 }
 0x9a2   : > { %2067 = vadd.xlane.f32.xlu1 %v2066_v39 }
 0x9b3   : > { %2072 = vrot.lane.b32.xlu1 %v5239_v19, %s4684_s15 }
 0x9ce   : > { %v2003_v41 = vpop.f32.mrb[24].mxu1 }
 0x9cf   : > { %v2009_v42 = vadd.f32 %v2003_v41, %v5277_v61  ;;  %v3680_v43 = vpop.f32.mrb[25].mxu1 }
 0x9d0   : > { %v2006_v44 = vpop.f32.mrb[26].mxu1 }
 0x9d1   : > { %v3681_v45 = vpop.f32.mrb[27].mxu1 }
 0xa2f   : > { %v2068_v46 = vpop.xlane.xlu1 %2067 }
 0xa30   : > { %4077 = vrcp.f32 %v2068_v46 }
 0xa33   : > { %v2073_v47 = vpop.permute.xlu1 %2072 }
 0xa34   : > { %v2078_v49 = vsel %vm1594_vm4, %v2073_v47, 0 }
 0xa35   : > { %3689 = vmatpush3.bf16.msra.mxu1 %v2078_v49 }
 0xa36   : > { %3700 = vmatprep.subr.bf16.mxu1 %v4680_v0 }
 0xa3a   : > { %v4078_v19 = vpop.eup %4077 }
 0xa3b   : > { %v2070_v50 = vmul.f32 %v4078_v19, %v4076_v37 }
 0xa3d   : > { %v2071_v51 = vpack.c.bf16 %v2070_v50, %v2070_v50 }
 0xa3f   : > { %3691 = vmatmul.mubr.msk.bf16.vlgmr.msra.gmra.mrb[28].mxu1 %vm1532_vm3, %v2071_v51 }
 0xa40   : > { %3704 = vmatprep.mubr.msk.bf16.mxu1 %vm4681_vm0, %v4680_v0  ;;  %3701 = vmatpush3.bf16.msra.mxu1 %v4055_v12 }
 0xa41   : > { %3702 = vmatprep.subr.bf16.mxu1 %v4680_v0 }
 0xb12   : > { %v2114_v52 = vpop.f32.mrb[28].mxu1 }
 0xb13   : > { %v2120_v54 = vpack.c.bf16 %v2114_v52, %v2114_v52  ;;  %v3692_v55 = vpop.f32.mrb[29].mxu1 }
 0xb14   : > { %v2117_v56 = vpop.f32.mrb[30].mxu1 }
 0xb15   : > { %v3693_v57 = vpop.f32.mrb[31].mxu1  ;;  %3697 = vmatmul.mubr.msk.bf16.vlgmr.msra.gmra.mrb[32].mxu0 %vm1532_vm3, %v2120_v54 }
 0xb16   : > { %3709 = vmatpush3.bf16.xpose.msra.mxu0 %v2286_v58  ;;  %3710 = vmatprep.mubr.msk.bf16.mxu0 %vm4681_vm0, %v4680_v0 }
 0xb17   : > { %3720 = vmatprep.subr.bf16.mxu0 %v4680_v0 }
 0xbe8   : > { %v2162_v59 = vpop.f32.mrb[32].mxu0 }
 0xbe9   : > { %v2168_v61 = vadd.f32 %v2162_v59, %v2009_v42  ;;  %v3698_v62 = vpop.f32.mrb[33].mxu0 }
 0xbea   : > { %v2165_v1 = vpop.f32.mrb[34].mxu0 }
 0xbeb   : > { %v2176_v2 = vadd.f32 %v3475_v60, %v2168_v61  ;;  %v3699_v4 = vpop.f32.mrb[35].mxu0  ;;  %v2498_v1 = vld [vmem:[%s5575_s7 + $0x4] sm:$0xf] }
 0xbed   : > { %v2177_v5 = vadd.f32 %v2176_v2, %v5174_v3  ;;  %v4056_v3 = vld [vmem:[#allocation21 + $0x8] sm:$0xff]   ;;  %v2503_v2 = vsel %vm1594_vm4, %v2498_v1, 0 }
 0xbee   : > { %3703 = vmatpush3.bf16.msra.mxu1 %v4056_v3 }
 0xbef   : > { %v2180_v6 = vsel %vm1207_vm1, %v2177_v5, 0.0  ;;  %3714 = vmatprep.subr.bf16.mxu1 %v4680_v0 }
 0xbf0   : > { %2181 = vadd.xlane.f32.xlu1 %v2180_v6 }
 0xc7d   : > { %v2182_v7 = vpop.xlane.xlu1 %2181 }
 0xc7e   : > { %v2184_v8 = vmul.f32 0.03125, %v2182_v7  ;;  %v2385_v7 = vld [vmem:[%s5575_s7] sm:$0xf] }
 0xc80   : > { %v2185_v9 = vsub.f32 %v2177_v5, %v2184_v8 }
 0xc82   : > { %v2186_v10 = vmul.f32 %v2185_v9, %v2185_v9 }
 0xc84   : > { %v2187_v11 = vsel %vm1207_vm1, %v2186_v10, 0.0  ;;  %v2549_v10 = vsel %vm1594_vm4, %v2385_v7, 0 }
 0xc85   : > { %2188 = vadd.xlane.f32.xlu0 %v2187_v11 }
 0xc9b   : > { %2390 = vrot.lane.b32.xlu0 %v5314_v53, %s4682_s19 }
 0xd12   : > { %v2189_v13 = vpop.xlane.xlu0 %2188 }
 0xd13   : > { %v2190_v14 = vmul.f32 0.03125, %v2189_v13 }
 0xd15   : > { %v2191_v15 = vadd.f32 1e-05, %v2190_v14 }
 0xd16   : > { %v2391_v30 = vpop.permute.xlu0 %2390 }
 0xd17   : > { %4079 = vrsqrt.f32 %v2191_v15  ;;  %v2396_v32 = vsel %vm1532_vm3, %v2391_v30, 0 }
 0xd21   : > { %v4080_v16 = vpop.eup %4079 }
 0xd22   : > { %v2193_v18 = vmul.f32 %v4080_v16, %v2185_v9 }
 0xd24   : > { %v2200_v21 = vmul.f32 %v3476_v17, %v2193_v18 }
 0xd26   : > { %v5331_v38 = vadd.f32 %v3477_v20, %v2200_v21 }
 0xd28   : > { %v2211_v48 = vpack.c.bf16 %v5331_v38, %v5331_v38 }
 0xd2a   : > { %3705 = vmatmul.mubr.msk.bf16.vlgmr.msra.gmra.mrb[32].mxu1 %vm1207_vm1, %v2211_v48 }
 0xd2b   : > { %3715 = vmatpush3.bf16.msra.mxu1 %v5336_v22  ;;  %3716 = vmatprep.mubr.msk.bf16.mxu1 %vm4681_vm0, %v4680_v0 }
 0xd2c   : > { %3726 = vmatprep.subr.bf16.mxu1 %v4680_v0 }
 0xdfd   : > { %v2272_v24 = vpop.f32.mrb[32].mxu1 }
 0xdfe   : > { %v2273_v25 = vadd.f32 %v3478_v23, %v2272_v24  ;;  %v3706_v26 = vpop.f32.mrb[33].mxu1 }
 0xdff   : > { %v2275_v27 = vpop.f32.mrb[34].mxu1 }
 0xe00   : > { %v2278_v28 = vmul.f32 0.35355338, %v2273_v25  ;;  %v3707_v29 = vpop.f32.mrb[35].mxu1 }
 0xe02   : > { %v5342_v31 = vpack.c.bf16 %v2278_v28, %v2278_v28 }
 0xe04   : > { %2387 = vrot.lane.b32.xlu0 %v5342_v31, %s4682_s19  ;;  %3711 = vmatmul.mubr.msk.bf16.vlgmr.msra.gmra.mrb[36].mxu0 %vm1532_vm3, %v5342_v31 }
 0xe05   : > { %3721 = vmatpush3.bf16.xpose.msra.mxu0 %v2396_v32  ;;  %3722 = vmatprep.mubr.msk.bf16.mxu0 %vm4681_vm0, %v4680_v0 }
 0xe06   : > { %3732 = vmatprep.subr.bf16.mxu0 %v4680_v0 }
 0xe76   : > { %v2388_v33 = vpop.permute.xlu0 %2387 }
 0xe77   : > { %3723 = vmatmul.mubr.msk.bf16.vlgmr.msra.gmra.mrb[40].mxu0 %vm1532_vm3, %v2388_v33 }
 0xe78   : > { %3734 = vmatprep.mubr.msk.bf16.mxu0 %vm4681_vm0, %v4680_v0  ;;  %3733 = vmatpush3.bf16.msra.mxu0 %v2503_v2 }
 0xe79   : > { %3744 = vmatprep.subr.bf16.mxu0 %v4680_v0 }
 0xed7   : > { %v2322_v36 = vpop.f32.mrb[36].mxu0 }
 0xed8   : > { %v2323_v37 = vadd.f32 %v2322_v36, %v5356_v35  ;;  %v3712_v39 = vpop.f32.mrb[37].mxu0 }
 0xed9   : > { %v2325_v40 = vpop.f32.mrb[38].mxu0 }
 0xeda   : > { %v3713_v63 = vpop.f32.mrb[39].mxu0  ;;  %v2329_v41 = vsel %vm2328_vm7, %v2323_v37, -inf }
 0xedb   : > { %2330 = vmax.xlane.f32.xlu1 %v2329_v41 }
 0xf4a   : > { %v2432_v42 = vpop.f32.mrb[40].mxu0 }
 0xf4b   : > { %v2433_v43 = vadd.f32 %v2432_v42, %v5356_v35  ;;  %v3724_v44 = vpop.f32.mrb[41].mxu0 }
 0xf4c   : > { %v2435_v45 = vpop.f32.mrb[42].mxu0 }
 0xf4d   : > { %v3725_v46 = vpop.f32.mrb[43].mxu0  ;;  %v2438_v47 = vsel %vm2328_vm7, %v2433_v43, -inf }
 0xf4e   : > { %2439 = vmax.xlane.f32.xlu0 %v2438_v47 }
 0xf68   : > { %v2331_v49 = vpop.xlane.xlu1 %2330 }
 0xf69   : > { %v2332_v19 = vsub.f32 %v2323_v37, %v2331_v49 }
 0xf6b   : > { %v2333_v50 = vmul.f32 1.442695, %v2332_v19 }
 0xf6d   : > { %4081 = vpow2.f32 %v2333_v50 }
 0xf77   : > { %v4082_v51 = vpop.eup %4081 }
 0xf78   : > { %v2335_v52 = vsel %vm2328_vm7, %v4082_v51, 0.0 }
 0xf79   : > { %2336 = vadd.xlane.f32.xlu1 %v2335_v52  ;;  %v2700_v52 = vld [vmem:[%s5575_s7 + $0x8] sm:$0xf] }
 0xfdb   : > { %v2440_v54 = vpop.xlane.xlu0 %2439 }
 0xfdc   : > { %v2441_v55 = vsub.f32 %v2433_v43, %v2440_v54  ;;  %v2705_v54 = vsel %vm1594_vm4, %v2700_v52, 0  ;;  %v4061_v52 = vld [vmem:[%s5577_s4 + $0x10] sm:$0xff]  }
 0xfde   : > { %v2442_v56 = vmul.f32 1.442695, %v2441_v55 }
 0xfe0   : > { %4083 = vpow2.f32 %v2442_v56 }
 0xfea   : > { %v4084_v57 = vpop.eup %4083 }
 0xfeb   : > { %v2444_v58 = vsel %vm2328_vm7, %v4084_v57, 0.0 }
 0xfec   : > { %2445 = vadd.xlane.f32.xlu1 %v2444_v58 }
 0xffd   : > { %2451 = vrot.lane.b32.xlu1 %v5336_v22, %s4682_s19  ;;  %s5579_s19 = sld [smem:[#allocation49_spill]] }
0x1001   : > { %2593 = vrot.lane.b32.xlu1 %v5314_v53, %s4683_s1 }
0x1005   : > { %2591 = vrot.lane.b32.xlu1 %v5342_v31, %s4683_s1 }
0x1006   : > { %v2337_v59 = vpop.xlane.xlu1 %2336 }
0x1007   : > { %4085 = vrcp.f32 %v2337_v59 }
0x1011   : > { %v4086_v60 = vpop.eup %4085 }
0x1012   : > { %v2339_v61 = vmul.f32 %v4086_v60, %v4082_v51 }
0x1014   : > { %v2340_v62 = vpack.c.bf16 %v2339_v61, %v2339_v61 }
0x1016   : > { %3717 = vmatmul.mubr.msk.bf16.vlgmr.msra.gmra.mrb[36].mxu1 %vm2328_vm7, %v2340_v62 }
0x1017   : > { %3728 = vmatprep.mubr.msk.bf16.mxu1 %vm4681_vm0, %v4680_v0 }
0x1079   : > { %v2446_v4 = vpop.xlane.xlu1 %2445 }
0x107a   : > { %4087 = vrcp.f32 %v2446_v4 }
0x107d   : > { %v2452_v5 = vpop.permute.xlu1 %2451 }
0x107e   : > { %3727 = vmatpush3.bf16.msra.mxu1 %v2452_v5 }
0x107f   : > { %3738 = vmatprep.subr.bf16.mxu1 %v4680_v0 }
0x1081   : > { %v2594_v15 = vpop.permute.xlu1 %2593 }
0x1082   : > { %v2599_v21 = vsel %vm1532_vm3, %v2594_v15, 0 }
0x1084   : > { %v4088_v6 = vpop.eup %4087 }
0x1085   : > { %v2448_v8 = vmul.f32 %v4088_v6, %v4084_v57  ;;  %v2592_v23 = vpop.permute.xlu1 %2591 }
0x1087   : > { %v2449_v9 = vpack.c.bf16 %v2448_v8, %v2448_v8 }
0x1089   : > { %3729 = vmatmul.mubr.msk.bf16.vlgmr.msra.gmra.mrb[40].mxu1 %vm2328_vm7, %v2449_v9 }
0x108a   : > { %3739 = vmatpush3.bf16.msra.mxu1 %v2549_v10  ;;  %3740 = vmatprep.mubr.msk.bf16.mxu1 %vm4681_vm0, %v4680_v0  ;;  %v2857_v10 = vld [vmem:[%s5575_s7 + $0xc] sm:$0xf] }
0x108b   : > { %3750 = vmatprep.subr.bf16.mxu1 %v4680_v0 }
0x10e9   : > { %v2378_v11 = vpop.f32.mrb[36].mxu1 }
0x10ea   : > { %v2384_v12 = vpack.c.bf16 %v2378_v11, %v2378_v11  ;;  %v3718_v3 = vpop.f32.mrb[37].mxu1 }
0x10eb   : > { %v2381_v13 = vpop.f32.mrb[38].mxu1 }
0x10ec   : > { %v3719_v14 = vpop.f32.mrb[39].mxu1  ;;  %3741 = vmatmul.mubr.msk.bf16.vlgmr.msra.gmra.mrb[44].mxu1 %vm1532_vm3, %v2384_v12 }
0x10ed   : > { %3752 = vmatprep.mubr.msk.bf16.mxu1 %vm4681_vm0, %v4680_v0 }
0x115c   : > { %v2491_v16 = vpop.f32.mrb[40].mxu1 }
0x115d   : > { %v2497_v17 = vpack.c.bf16 %v2491_v16, %v2491_v16  ;;  %v3730_v18 = vpop.f32.mrb[41].mxu1 }
0x115e   : > { %v2494_v20 = vpop.f32.mrb[42].mxu1 }
0x115f   : > { %v3731_v48 = vpop.f32.mrb[43].mxu1  ;;  %3735 = vmatmul.mubr.msk.bf16.vlgmr.msra.gmra.mrb[44].mxu0 %vm1532_vm3, %v2497_v17 }
0x1160   : > { %3745 = vmatpush3.bf16.xpose.msra.mxu0 %v2599_v21  ;;  %3746 = vmatprep.mubr.msk.bf16.mxu0 %vm4681_vm0, %v4680_v0 }
0x1161   : > { %3756 = vmatprep.subr.bf16.mxu0 %v4680_v0 }
0x1167   : > { %3747 = vmatmul.mubr.msk.bf16.vlgmr.msra.gmra.mrb[48].mxu0 %vm1532_vm3, %v2592_v23 }
0x1168   : > { %3758 = vmatprep.mubr.msk.bf16.mxu0 %vm4681_vm0, %v4680_v0  ;;  %3757 = vmatpush3.bf16.msra.mxu0 %v2705_v54  ;;  %v4062_v54 = vld [vmem:[%s5577_s4 + $0x18] sm:$0xff]  }
0x1169   : > { %3768 = vmatprep.subr.bf16.mxu0 %v4680_v0 }
0x11bf   : > { %v2585_v24 = vpop.f32.mrb[44].mxu1 }
0x11c0   : > { %v3742_v25 = vpop.f32.mrb[45].mxu1 }
0x11c1   : > { %v2588_v26 = vpop.f32.mrb[46].mxu1 }
0x11c2   : > { %v3743_v27 = vpop.f32.mrb[47].mxu1  ;;  %v3494_v26 = vld [vmem:[%s5576_s0] ss:$0 sm:$0xff]  ;;  %s5584_s0 = sld [smem:[#allocation61_spill]] }
0x11c8   : > { %p5585_p3 = scmp.ne.s32.totalorder %s5584_s0, 0 }
0x1232   : > { %v2539_v28 = vpop.f32.mrb[44].mxu0 }
0x1233   : > { %v5394_v29 = vadd.f32 %v2585_v24, %v2539_v28  ;;  %v3736_v30 = vpop.f32.mrb[45].mxu0 }
0x1234   : > { %v2542_v32 = vpop.f32.mrb[46].mxu0 }
0x1235   : > { %v3737_v33 = vpop.f32.mrb[47].mxu0 }
0x123a   : > { %v2635_v34 = vpop.f32.mrb[48].mxu0 }
0x123b   : > { %v2636_v36 = vadd.f32 %v2635_v34, %v5356_v35  ;;  %v3748_v37 = vpop.f32.mrb[49].mxu0 }
0x123c   : > { %v2638_v39 = vpop.f32.mrb[50].mxu0 }
0x123d   : > { %v3749_v40 = vpop.f32.mrb[51].mxu0  ;;  %v2641_v63 = vsel %vm2328_vm7, %v2636_v36, -inf }
0x123e   : > { %2642 = vmax.xlane.f32.xlu0 %v2641_v63 }
0x1254   : > { %2653 = vrot.lane.b32.xlu0 %v5336_v22, %s4683_s1  ;;  %s5580_s1 = sld [smem:[#allocation51_spill]] }
0x1258   : > { %2750 = vrot.lane.b32.xlu0 %v5314_v53, %s4684_s15 }
0x125c   : > { %2748 = vrot.lane.b32.xlu0 %v5342_v31, %s4684_s15 }
0x12cb   : > { %v2643_v41 = vpop.xlane.xlu0 %2642 }
0x12cc   : > { %v2644_v42 = vsub.f32 %v2636_v36, %v2643_v41  ;;  %v4057_v41 = vld [vmem:[#allocation29] sm:$0xff]  }
0x12ce   : > { %v2645_v43 = vmul.f32 1.442695, %v2644_v42  ;;  %v4058_v42 = vld [vmem:[#allocation29 + $0x8] sm:$0xff]  }
0x12cf   : > { %v2654_v44 = vpop.permute.xlu0 %2653 }
0x12d0   : > { %4089 = vpow2.f32 %v2645_v43  ;;  %3751 = vmatpush3.bf16.msra.mxu1 %v2654_v44  ;;  %v4060_v43 = vld [vmem:[%s5577_s4 + $0x8] sm:$0xff]  }
0x12d1   : > { %3762 = vmatprep.subr.bf16.mxu1 %v4680_v0 }
0x12d3   : > { %v2751_v19 = vpop.permute.xlu0 %2750 }
0x12d4   : > { %v2756_v31 = vsel %vm1532_vm3, %v2751_v19, 0  ;;  %v3496_v19 = vld [vmem:[%s4829_s12] ss:$0 sm:$0xff] }
0x12d7   : > { %v2749_v51 = vpop.permute.xlu0 %2748 }
0x12da   : > { %v4090_v45 = vpop.eup %4089 }
0x12db   : > { %v2647_v46 = vsel %vm2328_vm7, %v4090_v45, 0.0 }
0x12dc   : > { %2648 = vadd.xlane.f32.xlu1 %v2647_v46 }
0x1369   : > { %v2649_v47 = vpop.xlane.xlu1 %2648 }
0x136a   : > { %4091 = vrcp.f32 %v2649_v47 }
0x1374   : > { %v4092_v49 = vpop.eup %4091 }
0x1375   : > { %v2651_v53 = vmul.f32 %v4092_v49, %v4090_v45  ;;  %v3495_v49 = vld [vmem:[%s5578_s28] ss:$0 sm:$0xff]  ;;  %s3510_s28 = sshll.u32 %s4623_s22, 7  ;;  %s4685_s22 = smov [#allocation30]  }
0x1376   : > { %s5460_s2 = scalar_lea.hbm %s5582_s18, %s3510_s28 }
0x1377   : > { %v2652_v50 = vpack.c.bf16 %v2651_v53, %v2651_v53 }
0x1379   : > { %3753 = vmatmul.mubr.msk.bf16.vlgmr.msra.gmra.mrb[48].mxu1 %vm2328_vm7, %v2652_v50 }
0x137a   : > { %3763 = vmatpush3.bf16.xpose.msra.mxu1 %v2756_v31  ;;  %3764 = vmatprep.mubr.msk.bf16.mxu1 %vm4681_vm0, %v4680_v0 }
0x137b   : > { %3774 = vmatprep.subr.bf16.mxu1 %v4680_v0 }
0x1381   : > { %3765 = vmatmul.mubr.msk.bf16.vlgmr.msra.gmra.mrb[52].mxu1 %vm1532_vm3, %v2749_v51 }
0x1382   : > { %3776 = vmatprep.mubr.msk.bf16.mxu1 %vm4681_vm0, %v4680_v0 }
0x144c   : > { %v2693_v55 = vpop.f32.mrb[48].mxu1 }
0x144d   : > { %v2699_v56 = vpack.c.bf16 %v2693_v55, %v2693_v55  ;;  %v3754_v57 = vpop.f32.mrb[49].mxu1  ;;  %v3497_v55 = vld [vmem:[%s5579_s19] ss:$0 sm:$0xff] }
0x144e   : > { %v2696_v58 = vpop.f32.mrb[50].mxu1 }
0x144f   : > { %v3755_v59 = vpop.f32.mrb[51].mxu1  ;;  %3759 = vmatmul.mubr.msk.bf16.vlgmr.msra.gmra.mrb[52].mxu0 %vm1532_vm3, %v2699_v56 }
0x1450   : > { %3770 = vmatprep.mubr.msk.bf16.mxu0 %vm4681_vm0, %v4680_v0 }
0x1454   : > { %v2792_v60 = vpop.f32.mrb[52].mxu1 }
0x1455   : > { %v2793_v61 = vadd.f32 %v2792_v60, %v5356_v35  ;;  %v3766_v62 = vpop.f32.mrb[53].mxu1  ;;  %v2862_v35 = vsel %vm1594_vm4, %v2857_v10, 0 }
0x1456   : > { %v2795_v1 = vpop.f32.mrb[54].mxu1  ;;  %3775 = vmatpush3.bf16.msra.mxu1 %v2862_v35 }
0x1457   : > { %v3767_v2 = vpop.f32.mrb[55].mxu1  ;;  %v2798_v4 = vsel %vm2328_vm7, %v2793_v61, -inf  ;;  %3788 = vmatprep.subr.bf16.mxu1 %v4680_v0  ;;  %v3501_v1 = vld [vmem:[%s5580_s1] ss:$0 sm:$0xff] }
0x1458   : > { %2799 = vmax.xlane.f32.xlu0 %v2798_v4 }
0x14e5   : > { %v2800_v5 = vpop.xlane.xlu0 %2799 }
0x14e6   : > { %v2801_v6 = vsub.f32 %v2793_v61, %v2800_v5 }
0x14e8   : > { %v2802_v7 = vmul.f32 1.442695, %v2801_v6 }
0x14ea   : > { %4093 = vpow2.f32 %v2802_v7 }
0x14f4   : > { %v4094_v8 = vpop.eup %4093 }
0x14f5   : > { %v2804_v9 = vsel %vm2328_vm7, %v4094_v8, 0.0 }
0x14f6   : > { %2805 = vadd.xlane.f32.xlu1 %v2804_v9 }
0x1507   : > { %2810 = vrot.lane.b32.xlu1 %v5336_v22, %s4684_s15  ;;  %s1162_s15 = sand.u32 1, %s4615_s16  }
0x1508   : > { %s3437_s26 = sshll.u32 %s1162_s15, 3  ;;  %s3127_s3 = scalar_lea.sflag [#allocation8], %s1162_s15 }
0x1509   : > { %s1164_s19 = scalar_lea.vmem [#allocation30], %s3437_s26  ;;  %s4525_s26 = sshll.u32 %s4685_s22, 4  ;;  %s4526_s26 = int_to_ptr.vmem [resolvable:$false] %s4525_s26 }
0x150a   : > { %s3141_s1 = sshll.u32 %s1164_s19, 4  ;;  %s5462_s1 = int_to_ptr.vmem [resolvable:$true] %s3141_s1 }
0x150b   : > { %p4528_p4 = scmp.lt.s32.totalorder %s5462_s1, %s4526_s26 }
0x1522   : > { %v2741_v11 = vpop.f32.mrb[52].mxu0 }
0x1523   : > { %v2747_v12 = vadd.f32 %v2741_v11, %v5394_v29  ;;  %v3760_v3 = vpop.f32.mrb[53].mxu0 }
0x1524   : > { %v2744_v13 = vpop.f32.mrb[54].mxu0 }
0x1525   : > { %v3761_v14 = vpop.f32.mrb[55].mxu0 }
0x1583   : > { %v2806_v15 = vpop.xlane.xlu1 %2805 }
0x1584   : > { %4095 = vrcp.f32 %v2806_v15 }
0x1587   : > { %v2811_v16 = vpop.permute.xlu1 %2810 }
0x1588   : > { %3769 = vmatpush3.bf16.msra.mxu0 %v2811_v16  ;;  %v3507_v16 = vld [vmem:[%s4834_s9] ss:$0 sm:$0xff] }
0x1589   : > { %3780 = vmatprep.subr.bf16.mxu0 %v4680_v0 }
0x158e   : > { %v4096_v22 = vpop.eup %4095 }
0x158f   : > { %v2808_v17 = vmul.f32 %v4096_v22, %v4094_v8 }
0x1591   : > { %v2809_v18 = vpack.c.bf16 %v2808_v17, %v2808_v17  ;;  %v3508_v17 = vld [vmem:[%s5581_s5] ss:$0 sm:$0xff]  ;;  %s4527_s5 = scalar_lea.vmem %s4526_s26, 256 }
0x1593   : > { %3771 = vmatmul.mubr.msk.bf16.vlgmr.msra.gmra.mrb[56].mxu0 %vm2328_vm7, %v2809_v18 }
0x1594   : > { %3784 = vmatprep.mubr.msk.bf16.mxu0 %vm4681_vm0, %v4680_v0  ;;  %3781 = vmatpush3.bf16.msra.mxu0 %v4057_v41 }
0x1595   : > { %3782 = vmatprep.subr.bf16.mxu0 %v4680_v0 }
0x1598   : > { %3783 = vmatpush3.bf16.msra.mxu0 %v4058_v42 }
0x1666   : > { %v2850_v20 = vpop.f32.mrb[56].mxu0 }
0x1667   : > { %v2856_v21 = vpack.c.bf16 %v2850_v20, %v2850_v20  ;;  %v3772_v48 = vpop.f32.mrb[57].mxu0 }
0x1668   : > { %v2853_v23 = vpop.f32.mrb[58].mxu0 }
0x1669   : > { %v3773_v24 = vpop.f32.mrb[59].mxu0  ;;  %3777 = vmatmul.mubr.msk.bf16.vlgmr.msra.gmra.mrb[56].mxu1 %vm1532_vm3, %v2856_v21 }
0x166a   : > { %3796 = vmatprep.mubr.msk.bf16.mxu1 %vm4681_vm0, %v4680_v0 }
0x173c   : > { %v2898_v25 = vpop.f32.mrb[56].mxu1 }
0x173d   : > { %v2904_v27 = vadd.f32 %v2898_v25, %v2747_v12  ;;  %v3778_v28 = vpop.f32.mrb[57].mxu1 }
0x173e   : > { %v2901_v29 = vpop.f32.mrb[58].mxu1 }
0x173f   : > { %v2912_v30 = vadd.f32 %v3494_v26, %v2904_v27  ;;  %v3779_v32 = vpop.f32.mrb[59].mxu1 }
0x1741   : > { %v2913_v33 = vadd.f32 %v2912_v30, %v5331_v38  ;;  %v4059_v38 = vld [vmem:[%s5577_s4] sm:$0xff]   ;;  %s4521_s4 = scalar_lea.vmem %s5462_s1, 128 }
0x1742   : > { %3789 = vmatpush3.bf16.msra.mxu1 %v4059_v38  ;;  %p4522_p2 = scmp.ne.s32.totalorder %s5462_s1, %s4521_s4  ;;  %p4529_p8 = scmp.lt.s32.totalorder %s4527_s5, %s4521_s4 }
0x1743   : > { %v2916_v34 = vsel %vm1207_vm1, %v2913_v33, 0.0  ;;  %3790 = vmatprep.subr.bf16.mxu1 %v4680_v0 }
0x1744   : > { %2917 = vadd.xlane.f32.xlu1 %v2916_v34  ;;  %p4523_p5 = pnand %p4522_p2, %p5585_p3  ;;  %p4530_p10 = por %p4529_p8, %p4528_p4 }
0x1746   : > { %3791 = vmatpush3.bf16.msra.mxu1 %v4060_v43  ;;  %p4524_p6 = pneg %p4523_p5 }
0x1747   : > { %3792 = vmatprep.subr.bf16.mxu1 %v4680_v0 }
0x1748   : > { %p4531_p11 = pnand %p4530_p10, %p4524_p6 }
0x174a   : > { %3793 = vmatpush3.bf16.msra.mxu1 %v4061_v52 }
0x174b   : > { %3794 = vmatprep.subr.bf16.mxu1 %v4680_v0 }
0x174e   : > { %3795 = vmatpush3.bf16.msra.mxu1 %v4062_v54 }
0x17d1   : > { %v2918_v36 = vpop.xlane.xlu1 %2917 }
0x17d2   : > { %v2919_v37 = vmul.f32 0.03125, %v2918_v36 }
0x17d4   : > { %v2920_v39 = vsub.f32 %v2913_v33, %v2919_v37 }
0x17d6   : > { %v2921_v40 = vmul.f32 %v2920_v39, %v2920_v39 }
0x17d8   : > { %v2922_v63 = vsel %vm1207_vm1, %v2921_v40, 0.0 }
0x17d9   : > { %2923 = vadd.xlane.f32.xlu0 %v2922_v63 }
0x1866   : > { %v2924_v44 = vpop.xlane.xlu0 %2923 }
0x1867   : > { %v2925_v45 = vmul.f32 0.03125, %v2924_v44 }
0x1869   : > { %v2926_v46 = vadd.f32 1e-05, %v2925_v45 }
0x186b   : > { %4097 = vrsqrt.f32 %v2926_v46 }
0x1875   : > { %v4098_v47 = vpop.eup %4097 }
0x1876   : > { %v2928_v53 = vmul.f32 %v4098_v47, %v2920_v39 }
0x1878   : > { %v2935_v50 = vmul.f32 %v3495_v49, %v2928_v53 }
0x187a   : > { %v2942_v31 = vadd.f32 %v3496_v19, %v2935_v50 }
0x187c   : > { %v2943_v51 = vpack.c.bf16 %v2942_v31, %v2942_v31 }
0x187e   : > { %3785 = vmatmul.mubr.msk.bf16.vlgmr.msra.gmra.mrb[60].mxu0 %vm1207_vm1, %v2943_v51 }
0x1951   : > { %v3004_v56 = vpop.f32.mrb[60].mxu0 }
0x1952   : > { %v3005_v57 = vadd.f32 %v3497_v55, %v3004_v56  ;;  %v3786_v58 = vpop.f32.mrb[61].mxu0 }
0x1953   : > { %v3007_v59 = vpop.f32.mrb[62].mxu0 }
0x1954   : > { %v3010_v60 = vmax.f32 %v3005_v57, 0.0  ;;  %v3787_v61 = vpop.f32.mrb[63].mxu0 }
0x1956   : > { %v3011_v62 = vpack.c.bf16 %v3010_v60, %v3010_v60 }
0x1958   : > { %3797 = vmatmul.mubr.msk.bf16.vlgmr.msra.gmra.mrb[60].mxu1 %vm3051_vm8, %v3011_v62 }
0x1a2b   : > { %v3089_v2 = vpop.f32.mrb[60].mxu1 }
0x1a2c   : > { %v3090_v4 = vadd.f32 %v3501_v1, %v3089_v2  ;;  %v3798_v5 = vpop.f32.mrb[61].mxu1 }
0x1a2d   : > { %v3092_v6 = vpop.f32.mrb[62].mxu1 }
0x1a2e   : > { %v3799_v7 = vpop.f32.mrb[63].mxu1  ;;  %v3095_v0 = vadd.f32 %v3090_v4, %v2942_v31 }
0x1a30   : > { %v3098_v8 = vsel %vm1207_vm1, %v3095_v0, 0.0 }
0x1a31   : > { %3099 = vadd.xlane.f32.xlu0 %v3098_v8 }
0x1abe   : > { %v3100_v9 = vpop.xlane.xlu0 %3099 }
0x1abf   : > { %v3101_v10 = vmul.f32 0.03125, %v3100_v9 }
0x1ac1   : > { %v3102_v35 = vsub.f32 %v3095_v0, %v3101_v10 }
0x1ac3   : > { %v3103_v11 = vmul.f32 %v3102_v35, %v3102_v35 }
0x1ac5   : > { %v3104_v12 = vsel %vm1207_vm1, %v3103_v11, 0.0 }
0x1ac6   : > { %3105 = vadd.xlane.f32.xlu0 %v3104_v12 }
0x1b53   : > { %v3106_v3 = vpop.xlane.xlu0 %3105 }
0x1b54   : > { %v3107_v13 = vmul.f32 0.03125, %v3106_v3 }
0x1b56   : > { %v3108_v14 = vadd.f32 1e-05, %v3107_v13 }
0x1b58   : > { %4099 = vrsqrt.f32 %v3108_v14 }
0x1b62   : > { %v4100_v15 = vpop.eup %4099 }
0x1b63   : > { %v3110_v22 = vmul.f32 %v4100_v15, %v3102_v35 }
0x1b65   : > { %v3117_v18 = vmul.f32 %v3507_v16, %v3110_v22 }
0x1b67   : > { %v3124_v20 = vadd.f32 %v3508_v17, %v3117_v18 }
0x1b69   : > { %3125 = vst.msk [vmem:[%s1164_s19] sm:$0xff] %vm1207_vm1, %v3124_v20 }
0x1b6a   : > { %4534 = shalt.err (!%p4531_p11)
}
0x1b6b   : > { %s4535_s18 = scalar_lea.hbm %s5460_s2, 128  ;;  %s4539_s15 = scalar_lea.hbm %s5583_s11, 256 }
0x1b6c   : > { %p4536_p7 = scmp.ne.s32.totalorder %s5460_s2, %s4535_s18  ;;  %p4540_p0 = scmp.lt.u32.totalorder %s5460_s2, %s5583_s11 }
0x1b6d   : > { %p4541_p1 = scmp.lt.u32.totalorder %s4539_s15, %s4535_s18  ;;  %p4543_p2 = scmp.lt.u32.totalorder %s4535_s18, %s5460_s2 }
0x1b6e   : > { %p4537_p9 = pnand %p4536_p7, %p5585_p3 }
0x1b6f   : > { %p4542_p13 = por %p4541_p1, %p4540_p0 }
0x1b70   : > { %p4538_p12 = pneg %p4537_p9 }
0x1b71   : > { %p4544_p5 = por %p4543_p2, %p4542_p13 }
0x1b73   : > { %p4545_p6 = pnand %p4544_p5, %p4538_p12 }
0x1b75   : > { %4548 = shalt.err (!%p4545_p6)
}
0x1b76   : > { %3860 = dma.vmem_to_hbm [thread:$0]  (%p5585_p3), %s5462_s1, 128, %s5460_s2, %s3127_s3  }
0x1b77 PF: > { %s5586_s5 = sld [smem:[#allocation57_spill]]  ;;  %s5587_s4 = sld [smem:[#allocation62_spill]] }
0x1b78   : > { %p3942_p4 = scmp.ge.s32.totalorder %s4631_s23, 2 }
0x1b7d   : > { %s3153_s28 = sand.u32 1, %s5586_s5   ;;  %p5588_p8 = scmp.ne.s32.totalorder %s5587_s4, 0 }
0x1b7e   : > { %s3154_s19 = scalar_lea.sflag [#allocation8], %s3153_s28 }
0x1b7f   : > { %p3909_p10 = pnand %p3942_p4, %p5588_p8 }
0x1b81   : > { %4606 = dma.done.wait (!%p3909_p10), %s3154_s19, 128  }
0x1b82   : > { %4608 = vsyncadd (!%p3909_p10), %s3154_s19, 4294967168  ;;  %s82_s23 = sadd.s32 1, %s4631_s23   ;;  %s5589_s22 = sld [smem:[#allocation58_spill]] }
0x1b83   : > { %p79_p11 = scmp.ge.s32.totalorder %s82_s23, 4   ;;  %s5590_s18 = sld [smem:[#allocation63_spill]] }
0x1b84   : > { %s5591_s0 = sld [smem:[#allocation59_spill]]  ;;  %s5592_s26 = sld [smem:[#allocation60_spill]] }
0x1b85   : > { %s5593_s15 = smov %s4615_s16  ;;  %81 = sbr.rel (!%p79_p11) target bundleno = 66 (0x42), region = 276 }
0x1b88   : > { %s5594_s16 = smov %s5589_s22 }
0x1b8a   : > { %s5595_s22 = smov %s5591_s0  ;;  %s5596_s0 = smov %s5592_s26 }
0x1b8c   :  { %3159 = vsyncpa [#allocation7], 1 }
0x1b8d   :  { %3161 = vsyncpa [#allocation7 + $0x1], 1 }
0x1b8e   :  { %3162 = vsyncpa [#allocation10], 1 }
0x1b8f   :  { %3163 = vsyncpa [#allocation13], 1 }
0x1b90   :  { %3164 = vsyncpa [#allocation16], 1 }
0x1b91   :  { %3165 = vsyncpa [#allocation19], 1 }
0x1b92   :  { %3166 = vsyncpa [#allocation22], 1 }
0x1b93   :  { %3167 = vsyncpa [#allocation25], 1 }
0x1b94   :  { %3168 = vsyncpa [#allocation28], 1 }
0x1b95   :  { %3169 = vsyncpa [#allocation8], 1 }
0x1b96   :  { %3171 = vsyncpa [#allocation8 + $0x1], 1 }

// kernel: tpu_custom_call.1
= control target key start
LH: loop header
LB: loop body
LE: loop exit
PB: predicated region body
PF: predicated region fallthrough
CT: control target
= control target key end

     0   :  { %s4633_s6 = smov 1   ;;  %s4634_s10 = smov 2   ;;  %s5504_s0 = inlined_call_operand.smem [shape: u32[31], index: -1, kind: input, shape index: {}] }
   0x1   :  { %s4694_s5 = sld [smem:[%s5504_s0]]   ;;  %s4635_s14 = smov 3  }
   0x2   :  { %s4699_s9 = sld [smem:[%s5504_s0 + %s4633_s6]]   ;;  %s4636_s18 = smov 4  }
   0x3   :  { %s4704_s13 = sld [smem:[%s5504_s0 + %s4634_s10]]   ;;  %s4637_s22 = smov 5  }
   0x4   :  { %s4709_s17 = sld [smem:[%s5504_s0 + %s4635_s14]]   ;;  %s4638_s26 = smov 6  }
   0x5   :  { %s4714_s21 = sld [smem:[%s5504_s0 + %s4636_s18]]   ;;  %s4639_s30 = smov 7  }
   0x6   :  { %s4719_s25 = sld [smem:[%s5504_s0 + %s4637_s22]]   ;;  %s4640_s4 = smov 8  }
   0x7   :  { %5531 = sst [smem:[#allocation40_spill]] %s4694_s5  ;;  %s4641_s10 = smov 9  }
   0x8   :  { %5532 = sst [smem:[#allocation41_spill]] %s4699_s9  ;;  %s4642_s15 = smov 10  }
   0x9   :  { %s4724_s29 = sld [smem:[%s5504_s0 + %s4638_s26]]   ;;  %s4643_s20 = smov 11  }
   0xa   :  { %s4729_s3 = sld [smem:[%s5504_s0 + %s4639_s30]]   ;;  %s4644_s26 = smov 12  }
   0xb   :  { %s4734_s8 = sld [smem:[%s5504_s0 + %s4640_s4]]   ;;  %s4645_s1 = smov 13  }
   0xc   :  { %s4739_s14 = sld [smem:[%s5504_s0 + %s4641_s10]]   ;;  %s4646_s7 = smov 14  }
   0xd   :  { %s4744_s19 = sld [smem:[%s5504_s0 + %s4642_s15]]   ;;  %s4647_s15 = smov 15  }
   0xe   :  { %s4749_s24 = sld [smem:[%s5504_s0 + %s4643_s20]]   ;;  %s4648_s22 = smov 16  }
   0xf   :  { %s4754_s30 = sld [smem:[%s5504_s0 + %s4644_s26]]   ;;  %s4649_s28 = smov 17  }
  0x10   :  { %5533 = sst [smem:[#allocation42_spill]] %s4729_s3 }
  0x11   :  { %s4759_s6 = sld [smem:[%s5504_s0 + %s4645_s1]]  }
  0x12   :  { %s4764_s12 = sld [smem:[%s5504_s0 + %s4646_s7]]   ;;  %s4650_s7 = smov 18  }
  0x13   :  { %5534 = sst [smem:[#allocation43_spill]] %s4744_s19 }
  0x14   :  { %s4769_s20 = sld [smem:[%s5504_s0 + %s4647_s15]]   ;;  %s4651_s15 = smov 19  }
  0x15   :  { %s4774_s27 = sld [smem:[%s5504_s0 + %s4648_s22]]   ;;  %s4652_s22 = smov 20  }
  0x16   :  { %s4779_s4 = sld [smem:[%s5504_s0 + %s4649_s28]]   ;;  %s4653_s28 = smov 21  }
  0x17   :  { %s4784_s19 = sld [smem:[%s5504_s0 + %s4650_s7]]   ;;  %s4654_s7 = smov 22  }
  0x18   :  { %5535 = sst [smem:[#allocation44_spill]] %s4764_s12 }
  0x19   :  { %s4789_s12 = sld [smem:[%s5504_s0 + %s4651_s15]]   ;;  %s4655_s15 = smov 23  }
  0x1a   :  { %s4794_s9 = sld [smem:[%s5504_s0 + %s4652_s22]]   ;;  %s4656_s22 = smov 24  }
  0x1b   :  { %s4799_s5 = sld [smem:[%s5504_s0 + %s4653_s28]]   ;;  %s4657_s28 = smov 25  }
  0x1c   :  { %5536 = sst [smem:[#allocation45_spill]] %s4779_s4 }
  0x1d   :  { %5537 = sst [smem:[#allocation46_spill]] %s4784_s19 }
  0x1e   :  { %s4804_s19 = sld [smem:[%s5504_s0 + %s4654_s7]]   ;;  %s4658_s7 = smov 26  }
  0x1f   :  { %5538 = sst [smem:[#allocation47_spill]] %s4789_s12 }
  0x20   :  { %5539 = sst [smem:[#allocation48_spill]] %s4794_s9 }
  0x21   :  { %5540 = sst [smem:[#allocation49_spill]] %s4799_s5 }
  0x22   :  { %s4809_s12 = sld [smem:[%s5504_s0 + %s4655_s15]]   ;;  %s4659_s15 = smov 27  }
  0x23   :  { %s4814_s9 = sld [smem:[%s5504_s0 + %s4656_s22]]   ;;  %s4660_s22 = smov 28  }
  0x24   :  { %5541 = sst [smem:[#allocation50_spill]] %s4804_s19 }
  0x25   :  { %s4819_s5 = sld [smem:[%s5504_s0 + %s4657_s28]]   ;;  %s4661_s28 = smov 29  }
  0x26   :  { %s4824_s19 = sld [smem:[%s5504_s0 + %s4658_s7]]   ;;  %s4662_s7 = smov 30  }
  0x28   :  { %5542 = sst [smem:[#allocation51_spill]] %s4809_s12 }
  0x29   :  { %5543 = sst [smem:[#allocation52_spill]] %s4814_s9 }
  0x2a   :  { %s4829_s12 = sld [smem:[%s5504_s0 + %s4659_s15]]  }
  0x2b   :  { %5544 = sst [smem:[#allocation53_spill]] %s4819_s5 }
  0x2c   :  { %5545 = sst [smem:[#allocation54_spill]] %s4824_s19 }
  0x2d   :  { %s4834_s9 = sld [smem:[%s5504_s0 + %s4660_s22]]  }
  0x2e   :  { %s4839_s5 = sld [smem:[%s5504_s0 + %s4661_s28]]  }
  0x2f   :  { %s4844_s19 = sld [smem:[%s5504_s0 + %s4662_s7]]  }
  0x34   :  { %5546 = sst [smem:[#allocation55_spill]] %s4839_s5 }
  0x35   :  { %5547 = sst [smem:[#allocation56_spill]] %s4844_s19 }
  0x36   :  { %66 = vsyncpa [#allocation7], 0 }
  0x37   :  { %67 = vsyncpa [#allocation10], 0 }
  0x38   :  { %68 = vsyncpa [#allocation13], 0 }
  0x39   :  { %69 = vsyncpa [#allocation16], 0 }
  0x3a   :  { %70 = vsyncpa [#allocation19], 0 }
  0x3b   :  { %71 = vsyncpa [#allocation22], 0 }
  0x3c   :  { %72 = vsyncpa [#allocation25], 0 }
  0x3d   :  { %73 = vsyncpa [#allocation28], 0 }
  0x3e   :  { %74 = vsyncpa [#allocation8], 0 }
  0x3f   :  { %76 = vsyncpa [#allocation8 + $0x1], 0  ;;  %s4846_s15 = smov 0   ;;  %s4848_s16 = smov 0  }
  0x40   :  { %s4850_s18 = smov 0   ;;  %s4852_s22 = smov 0  }
  0x41   :  { %s4854_s0 = smov 0   ;;  %s4856_s23 = smov 0  }
  0x42 LB: > { %s5548_s4 = sld [smem:[#allocation45_spill]]  ;;  %s5549_s3 = sld [smem:[#allocation42_spill]]  ;;  %s4615_s16 = sphi %s4848_s16, %s5594_s16   ;;  %s4611_s15 = sphi %s4846_s15, %s5593_s15   ;;  %s4631_s23 = sphi %s4856_s23, %s82_s23   ;;  %s4627_s0 = sphi %s4854_s0, %s5596_s0   ;;  %s4623_s22 = sphi %s4852_s22, %s5595_s22   ;;  %s4619_s18 = sphi %s4850_s18, %s5590_s18  }
  0x43   : > { %5550 = sst [smem:[#allocation57_spill]] %s4611_s15  ;;  %s3402_s26 = sadd.s32 4294967295, %s4631_s23  }
  0x44   : > { %5551 = sst [smem:[#allocation58_spill]] %s4619_s18  ;;  %s3403_s28 = sadd.s32 4294967294, %s4631_s23  }
  0x45   : > { %5552 = sst [smem:[#allocation59_spill]] %s4627_s0  ;;  %s94_s1 = sadd.s32 1, %s4627_s0 }
  0x46   : > { %s753_s2 = sadd.s32 1, %s4619_s18  ;;  %p96_p0 = scmp.ge.s32.totalorder %s94_s1, 2 }
  0x47   : > { %p763_p1 = scmp.ne.s32.totalorder %s4619_s18, %s4615_s16  ;;  %p764_p2 = scmp.eq.s32.totalorder %s3402_s26, 1 }
  0x48   : > { %p769_p3 = scmp.ne.s32.totalorder %s4615_s16, %s4611_s15  ;;  %s5598_s1 = smov (%p96_p0, %s94_s1), 0 }
  0x49   : > { %5553 = sst [smem:[#allocation60_spill]] %s5598_s1  ;;  %p4886_p4 = por %p764_p2, %p763_p1 }
  0x4a   : > { %p770_p5 = scmp.eq.s32.totalorder %s3403_s28, 1  ;;  %s748_s10 = ssub.s32 %s4627_s0, %s5598_s1 }
  0x4b   : > { %s5554_s7 = scalar_select %p4886_p4, 1, 0 }
  0x4c   : > { %p3404_p6 = scmp.ge.s32.totalorder %s4631_s23, 1  ;;  %p751_p7 = scmp.eq.s32.totalorder %s748_s10, 0 }
  0x4d   : > { %5555 = sst [smem:[#allocation61_spill]] %s5554_s7  ;;  %p4893_p8 = por %p770_p5, %p769_p3 }
  0x4e   : > { %p777_p9 = scmp.lt.s32.totalorder %s4631_s23, 3  ;;  %p4905_p11 = scmp.eq.s32.totalorder %s3402_s26, 0 }
  0x4f   : > { %s5556_s11 = scalar_select %p4893_p8, 1, 0 }
  0x50   : > { %s4899_s19 = scalar_select %p751_p7, %s4619_s18, %s753_s2  }
  0x51   : > { %5557 = sst [smem:[#allocation62_spill]] %s5556_s11  ;;  %p4901_p10 = pnand %p3404_p6, %p777_p9 }
  0x52   : > { %5558 = sst [smem:[#allocation63_spill]] %s4899_s19  ;;  %s4663_s28 = smov [#allocation9]  }
  0x53   : > { %s5559_s15 = scalar_select %p4901_p10, 1, 0 }
  0x54   : > { %s5560_s7 = scalar_select %p4905_p11, 1, 0 }
  0x55   : > { %p3862_p12 = pneg %p4901_p10  ;;  %s805_s10 = sshll.u32 %s4663_s28, 4  ;;  %s806_s10 = int_to_ptr.vmem [resolvable:$true] %s805_s10 }
  0x56   : > { %s4664_s1 = smov [#allocation12]   ;;  %s4665_s26 = smov [#allocation15]  }
  0x57   : > { %s829_s0 = sshll.u32 %s4664_s1, 4  ;;  %p4913_p13 = pnand %p4905_p11, %p3862_p12  ;;  %s4917_s0 = int_to_ptr.vmem [resolvable:$true] %s829_s0 }
  0x58   : > { %s4919_s19 = sshll.u32 %s4665_s26, 4  ;;  %s4101_s18 = scalar_lea.hbm %s4709_s17, 128  ;;  %s854_s19 = int_to_ptr.vmem [resolvable:$true] %s4919_s19 }
  0x59   : > { %p4102_p0 = scmp.ne.s32.totalorder %s4709_s17, %s4101_s18  ;;  %p4925_p1 = pneg %p4913_p13 }
  0x5a   : > { %p4108_p5 = scmp.lt.u32.totalorder %s4101_s18, %s4709_s17 }
  0x5b   : > { %p4104_p2 = pnand %p4925_p1, %p4102_p0 }
  0x5d   : > { %p4105_p3 = pneg %p4104_p2 }
  0x5f   : > { %p4110_p6 = pnand %p4108_p5, %p4105_p3 }
  0x61   : > { %4113 = shalt.err (!%p4110_p6)
}
  0x62   : > { %s4114_s1 = scalar_lea.vmem %s806_s10, 128  ;;  %p4122_p8 = scmp.lt.s32.totalorder %s806_s10, %s806_s10 }
  0x63   : > { %p4115_p7 = scmp.ne.s32.totalorder %s806_s10, %s4114_s1  ;;  %p4123_p4 = scmp.lt.s32.totalorder %s4114_s1, %s4114_s1 }
  0x65   : > { %p4117_p9 = pnand %p4115_p7, %p4925_p1  ;;  %p4124_p11 = por %p4123_p4, %p4122_p8 }
  0x67   : > { %p4118_p12 = pneg %p4117_p9 }
  0x69   : > { %p4125_p10 = pnand %p4124_p11, %p4118_p12 }
  0x6b   : > { %4128 = shalt.err (!%p4125_p10)
}
  0x6c   : > { %3868 = dma.hbm_to_vmem [thread:$0]  (!%p4913_p13), %s4709_s17, 128, %s806_s10, [#allocation10]  }
  0x6d   : > { %s4129_s18 = scalar_lea.hbm %s4719_s25, 16 }
  0x6e   : > { %p4130_p0 = scmp.ne.s32.totalorder %s4719_s25, %s4129_s18  ;;  %p4136_p5 = scmp.lt.u32.totalorder %s4129_s18, %s4719_s25 }
  0x70   : > { %p4132_p2 = pnand %p4130_p0, %p4925_p1 }
  0x72   : > { %p4133_p3 = pneg %p4132_p2 }
  0x74   : > { %p4138_p6 = pnand %p4136_p5, %p4133_p3 }
  0x76   : > { %4141 = shalt.err (!%p4138_p6)
}
  0x77   : > { %s4142_s28 = scalar_lea.vmem %s4917_s0, 16  ;;  %s4149_s26 = scalar_lea.vmem %s4917_s0, 32 }
  0x78   : > { %p4143_p4 = scmp.ne.s32.totalorder %s4917_s0, %s4142_s28  ;;  %p4150_p11 = scmp.lt.s32.totalorder %s4917_s0, %s4917_s0 }
  0x79   : > { %p4151_p7 = scmp.lt.s32.totalorder %s4149_s26, %s4142_s28 }
  0x7a   : > { %p4145_p8 = pnand %p4143_p4, %p4925_p1 }
  0x7b   : > { %p4152_p9 = por %p4151_p7, %p4150_p11 }
  0x7c   : > { %p4146_p10 = pneg %p4145_p8 }
  0x7e   : > { %p4153_p12 = pnand %p4152_p9, %p4146_p10 }
  0x80   : > { %4156 = shalt.err (!%p4153_p12)
}
  0x81   : > { %3874 = dma.hbm_to_vmem [thread:$0]  (!%p4913_p13), %s4719_s25, 16, %s4917_s0, [#allocation13]  }
  0x82   : > { %s4666_s10 = smov [#allocation18]   ;;  %s4157_s18 = scalar_lea.hbm %s5549_s3, 16 }
  0x83   : > { %s877_s1 = sshll.u32 %s4666_s10, 4  ;;  %p4158_p0 = scmp.ne.s32.totalorder %s5549_s3, %s4157_s18  ;;  %s878_s1 = int_to_ptr.vmem [resolvable:$true] %s877_s1 }
  0x84   : > { %p4164_p5 = scmp.lt.u32.totalorder %s4157_s18, %s5549_s3 }
  0x85   : > { %p4160_p2 = pnand %p4158_p0, %p4925_p1 }
  0x87   : > { %p4161_p3 = pneg %p4160_p2 }
  0x89   : > { %p4166_p6 = pnand %p4164_p5, %p4161_p3 }
  0x8b   : > { %4169 = shalt.err (!%p4166_p6)
}
  0x8c   : > { %s4170_s28 = scalar_lea.vmem %s854_s19, 16  ;;  %s4177_s26 = scalar_lea.vmem %s854_s19, 32 }
  0x8d   : > { %p4171_p4 = scmp.ne.s32.totalorder %s854_s19, %s4170_s28  ;;  %p4178_p11 = scmp.lt.s32.totalorder %s854_s19, %s854_s19 }
  0x8e   : > { %p4179_p7 = scmp.lt.s32.totalorder %s4177_s26, %s4170_s28 }
  0x8f   : > { %p4173_p8 = pnand %p4171_p4, %p4925_p1 }
  0x90   : > { %p4180_p9 = por %p4179_p7, %p4178_p11 }
  0x91   : > { %p4174_p10 = pneg %p4173_p8 }
  0x93   : > { %p4181_p12 = pnand %p4180_p9, %p4174_p10 }
  0x95   : > { %4184 = shalt.err (!%p4181_p12)
}
  0x96   : > { %3880 = dma.hbm_to_vmem [thread:$0]  (!%p4913_p13), %s5549_s3, 16, %s854_s19, [#allocation16]  }
  0x97   : > { %s4185_s0 = scalar_lea.hbm %s4739_s14, 16 }
  0x98   : > { %p4186_p0 = scmp.ne.s32.totalorder %s4739_s14, %s4185_s0  ;;  %p4192_p5 = scmp.lt.u32.totalorder %s4185_s0, %s4739_s14 }
  0x9a   : > { %p4188_p2 = pnand %p4186_p0, %p4925_p1 }
  0x9c   : > { %p4189_p3 = pneg %p4188_p2 }
  0x9e   : > { %p4194_p6 = pnand %p4192_p5, %p4189_p3 }
  0xa0   : > { %4197 = shalt.err (!%p4194_p6)
}
  0xa1   : > { %s4198_s10 = scalar_lea.vmem %s878_s1, 16  ;;  %s4205_s18 = scalar_lea.vmem %s878_s1, 32 }
  0xa2   : > { %p4199_p4 = scmp.ne.s32.totalorder %s878_s1, %s4198_s10  ;;  %p4206_p11 = scmp.lt.s32.totalorder %s878_s1, %s878_s1 }
  0xa3   : > { %p4207_p7 = scmp.lt.s32.totalorder %s4205_s18, %s4198_s10 }
  0xa4   : > { %p4201_p8 = pnand %p4199_p4, %p4925_p1 }
  0xa5   : > { %p4208_p9 = por %p4207_p7, %p4206_p11 }
  0xa6   : > { %p4202_p10 = pneg %p4201_p8 }
  0xa8   : > { %p4209_p12 = pnand %p4208_p9, %p4202_p10 }
  0xaa   : > { %4212 = shalt.err (!%p4209_p12)
}
  0xab   : > { %3886 = dma.hbm_to_vmem [thread:$0]  (!%p4913_p13), %s4739_s14, 16, %s878_s1, [#allocation19]  }
  0xac   : > { %s4667_s19 = smov [#allocation21]   ;;  %s4668_s26 = smov [#allocation24]  }
  0xad   : > { %s901_s28 = sshll.u32 %s4667_s19, 4  ;;  %s929_s0 = sshll.u32 %s4668_s26, 4  ;;  %s902_s28 = int_to_ptr.vmem [resolvable:$true] %s901_s28  ;;  %s930_s0 = int_to_ptr.vmem [resolvable:$true] %s929_s0 }
  0xae   : > { %s4213_s3 = scalar_lea.hbm %s4754_s30, 256 }
  0xaf   : > { %p4214_p0 = scmp.ne.s32.totalorder %s4754_s30, %s4213_s3  ;;  %p4220_p5 = scmp.lt.u32.totalorder %s4213_s3, %s4754_s30 }
  0xb1   : > { %p4216_p2 = pnand %p4214_p0, %p4925_p1 }
  0xb3   : > { %p4217_p3 = pneg %p4216_p2 }
  0xb5   : > { %p4222_p6 = pnand %p4220_p5, %p4217_p3 }
  0xb7   : > { %4225 = shalt.err (!%p4222_p6)
}
  0xb8   : > { %s4226_s10 = scalar_lea.vmem %s902_s28, 256  ;;  %p4234_p11 = scmp.lt.s32.totalorder %s902_s28, %s902_s28 }
  0xb9   : > { %p4227_p4 = scmp.ne.s32.totalorder %s902_s28, %s4226_s10  ;;  %p4235_p7 = scmp.lt.s32.totalorder %s4226_s10, %s4226_s10 }
  0xbb   : > { %p4229_p8 = pnand %p4227_p4, %p4925_p1  ;;  %p4236_p9 = por %p4235_p7, %p4234_p11 }
  0xbd   : > { %p4230_p10 = pneg %p4229_p8 }
  0xbf   : > { %p4237_p12 = pnand %p4236_p9, %p4230_p10 }
  0xc1   : > { %4240 = shalt.err (!%p4237_p12)
}
  0xc2   : > { %s5523_s1 = smov 64   ;;  %s5525_s3 = smov 4  }
  0xc3   : > { %3892 = dma.hbm_to_vmem [thread:$0]  (!%p4913_p13), %s4754_s30, 256, %s902_s28, [#allocation22], %s5523_s1, %s5523_s1, %s5525_s3  }
  0xc4   : > { %s4241_s18 = scalar_lea.hbm %s4769_s20, 16 }
  0xc5   : > { %p4242_p0 = scmp.ne.s32.totalorder %s4769_s20, %s4241_s18  ;;  %p4248_p5 = scmp.lt.u32.totalorder %s4241_s18, %s4769_s20 }
  0xc7   : > { %p4244_p2 = pnand %p4242_p0, %p4925_p1 }
  0xc9   : > { %p4245_p3 = pneg %p4244_p2 }
  0xcb   : > { %p4250_p6 = pnand %p4248_p5, %p4245_p3 }
  0xcd   : > { %4253 = shalt.err (!%p4250_p6)
}
  0xce   : > { %s4254_s19 = scalar_lea.vmem %s930_s0, 16  ;;  %s4261_s26 = scalar_lea.vmem %s930_s0, 32 }
  0xcf   : > { %p4255_p4 = scmp.ne.s32.totalorder %s930_s0, %s4254_s19  ;;  %p4262_p11 = scmp.lt.s32.totalorder %s930_s0, %s930_s0 }
  0xd0   : > { %p4263_p7 = scmp.lt.s32.totalorder %s4261_s26, %s4254_s19 }
  0xd1   : > { %p4257_p8 = pnand %p4255_p4, %p4925_p1 }
  0xd2   : > { %p4264_p9 = por %p4263_p7, %p4262_p11 }
  0xd3   : > { %p4258_p10 = pneg %p4257_p8 }
  0xd5   : > { %p4265_p12 = pnand %p4264_p9, %p4258_p10 }
  0xd7   : > { %4268 = shalt.err (!%p4265_p12)
}
  0xd8   : > { %3898 = dma.hbm_to_vmem [thread:$0]  (!%p4913_p13), %s4769_s20, 16, %s930_s0, [#allocation25]  }
  0xd9   : > { %s4671_s28 = smov [#allocation27]   ;;  %s4269_s18 = scalar_lea.hbm %s5548_s4, 16 }
  0xda   : > { %s953_s10 = sshll.u32 %s4671_s28, 4  ;;  %p4270_p0 = scmp.ne.s32.totalorder %s5548_s4, %s4269_s18  ;;  %s954_s10 = int_to_ptr.vmem [resolvable:$true] %s953_s10 }
  0xdb   : > { %p4276_p5 = scmp.lt.u32.totalorder %s4269_s18, %s5548_s4 }
  0xdc   : > { %p4272_p2 = pnand %p4270_p0, %p4925_p1 }
  0xde   : > { %p4273_p3 = pneg %p4272_p2 }
  0xe0   : > { %p4278_p6 = pnand %p4276_p5, %p4273_p3 }
  0xe2   : > { %4281 = shalt.err (!%p4278_p6)
}
  0xe3   : > { %s4282_s19 = scalar_lea.vmem %s954_s10, 16  ;;  %s4289_s26 = scalar_lea.vmem %s954_s10, 32 }
  0xe4   : > { %p4283_p4 = scmp.ne.s32.totalorder %s954_s10, %s4282_s19  ;;  %p4290_p11 = scmp.lt.s32.totalorder %s954_s10, %s954_s10 }
  0xe5   : > { %p4291_p7 = scmp.lt.s32.totalorder %s4289_s26, %s4282_s19 }
  0xe6   : > { %p4285_p8 = pnand %p4283_p4, %p4925_p1 }
  0xe7   : > { %p4292_p9 = por %p4291_p7, %p4290_p11 }
  0xe8   : > { %p4286_p10 = pneg %p4285_p8 }
  0xea   : > { %p4293_p12 = pnand %p4292_p9, %p4286_p10 }
  0xec   : > { %4296 = shalt.err (!%p4293_p12)
}
  0xed   : > { %3904 = dma.hbm_to_vmem [thread:$0]  (!%p4913_p13), %s5548_s4, 16, %s954_s10, [#allocation28]  }
  0xee   : > { %s4672_s0 = smov [#allocation6]   ;;  %s4673_s18 = smov [#allocation11]  }
  0xef   : > { %s792_s28 = sshll.u32 %s4672_s0, 4  ;;  %s815_s1 = sshll.u32 %s4673_s18, 4  ;;  %s793_s28 = int_to_ptr.vmem [resolvable:$true] %s792_s28  ;;  %s5007_s1 = int_to_ptr.vmem [resolvable:$true] %s815_s1 }
  0xf0   : > { %s4297_s3 = scalar_lea.hbm %s4704_s13, 128 }
  0xf1   : > { %p4298_p0 = scmp.ne.s32.totalorder %s4704_s13, %s4297_s3  ;;  %p4304_p5 = scmp.lt.u32.totalorder %s4297_s3, %s4704_s13 }
  0xf3   : > { %p4300_p2 = pnand %p4298_p0, %p4925_p1 }
  0xf5   : > { %p4301_p3 = pneg %p4300_p2 }
  0xf7   : > { %p4306_p6 = pnand %p4304_p5, %p4301_p3 }
  0xf9   : > { %4309 = shalt.err (!%p4306_p6)
}
  0xfa   : > { %s4310_s19 = scalar_lea.vmem %s793_s28, 128  ;;  %p4318_p11 = scmp.lt.s32.totalorder %s793_s28, %s793_s28 }
  0xfb   : > { %p4311_p4 = scmp.ne.s32.totalorder %s793_s28, %s4310_s19  ;;  %p4319_p7 = scmp.lt.s32.totalorder %s4310_s19, %s4310_s19 }
  0xfd   : > { %p4313_p8 = pnand %p4311_p4, %p4925_p1  ;;  %p4320_p9 = por %p4319_p7, %p4318_p11 }
  0xff   : > { %p4314_p10 = pneg %p4313_p8 }
 0x101   : > { %p4321_p12 = pnand %p4320_p9, %p4314_p10 }
 0x103   : > { %4324 = shalt.err (!%p4321_p12)
}
 0x104   : > { %3865 = dma.hbm_to_vmem [thread:$0]  (!%p4913_p13), %s4704_s13, 128, %s793_s28, [#allocation7]  }
 0x105   : > { %s4325_s3 = scalar_lea.hbm %s4714_s21, 256 }
 0x106   : > { %p4326_p0 = scmp.ne.s32.totalorder %s4714_s21, %s4325_s3  ;;  %p4332_p5 = scmp.lt.u32.totalorder %s4325_s3, %s4714_s21 }
 0x108   : > { %p4328_p2 = pnand %p4326_p0, %p4925_p1 }
 0x10a   : > { %p4329_p3 = pneg %p4328_p2 }
 0x10c   : > { %p4334_p6 = pnand %p4332_p5, %p4329_p3 }
 0x10e   : > { %4337 = shalt.err (!%p4334_p6)
}
 0x10f   : > { %s4338_s10 = scalar_lea.vmem %s5007_s1, 256  ;;  %p4346_p11 = scmp.lt.s32.totalorder %s5007_s1, %s5007_s1 }
 0x110   : > { %p4339_p4 = scmp.ne.s32.totalorder %s5007_s1, %s4338_s10  ;;  %p4347_p7 = scmp.lt.s32.totalorder %s4338_s10, %s4338_s10 }
 0x112   : > { %p4341_p8 = pnand %p4339_p4, %p4925_p1  ;;  %p4348_p9 = por %p4347_p7, %p4346_p11 }
 0x114   : > { %p4342_p10 = pneg %p4341_p8 }
 0x116   : > { %p4349_p12 = pnand %p4348_p9, %p4342_p10 }
 0x118   : > { %4352 = shalt.err (!%p4349_p12)
}
 0x119   : > { %s5563_s26 = smov 4   ;;  %s5564_s0 = smov 64  }
 0x11a   : > { %3871 = dma.hbm_to_vmem [thread:$0]  (!%p4913_p13), %s4714_s21, 256, %s5007_s1, [#allocation10], %s5564_s0, %s5564_s0, %s5563_s26  }
 0x11b   : > { %s4674_s28 = smov [#allocation14]   ;;  %s4675_s19 = smov [#allocation17]  }
 0x11c   : > { %s839_s18 = sshll.u32 %s4674_s28, 4  ;;  %s863_s3 = sshll.u32 %s4675_s19, 4  ;;  %s840_s18 = int_to_ptr.vmem [resolvable:$true] %s839_s18  ;;  %s5037_s3 = int_to_ptr.vmem [resolvable:$true] %s863_s3 }
 0x11d   : > { %s4353_s10 = scalar_lea.hbm %s4724_s29, 256 }
 0x11e   : > { %p4354_p0 = scmp.ne.s32.totalorder %s4724_s29, %s4353_s10  ;;  %p4360_p5 = scmp.lt.u32.totalorder %s4353_s10, %s4724_s29 }
 0x120   : > { %p4356_p2 = pnand %p4354_p0, %p4925_p1 }
 0x122   : > { %p4357_p3 = pneg %p4356_p2 }
 0x124   : > { %p4362_p6 = pnand %p4360_p5, %p4357_p3 }
 0x126   : > { %4365 = shalt.err (!%p4362_p6)
}
 0x127   : > { %s4366_s4 = scalar_lea.vmem %s840_s18, 256  ;;  %p4374_p11 = scmp.lt.s32.totalorder %s840_s18, %s840_s18 }
 0x128   : > { %p4367_p4 = scmp.ne.s32.totalorder %s840_s18, %s4366_s4  ;;  %p4375_p7 = scmp.lt.s32.totalorder %s4366_s4, %s4366_s4 }
 0x12a   : > { %p4369_p8 = pnand %p4367_p4, %p4925_p1  ;;  %p4376_p9 = por %p4375_p7, %p4374_p11 }
 0x12c   : > { %p4370_p10 = pneg %p4369_p8 }
 0x12e   : > { %p4377_p12 = pnand %p4376_p9, %p4370_p10 }
 0x130   : > { %4380 = shalt.err (!%p4377_p12)
}
 0x131   : > { %3877 = dma.hbm_to_vmem [thread:$0]  (!%p4913_p13), %s4724_s29, 256, %s840_s18, [#allocation13], %s5564_s0, %s5564_s0, %s5563_s26  }
 0x132   : > { %s4381_s1 = scalar_lea.hbm %s4734_s8, 256 }
 0x133   : > { %p4382_p0 = scmp.ne.s32.totalorder %s4734_s8, %s4381_s1  ;;  %p4388_p5 = scmp.lt.u32.totalorder %s4381_s1, %s4734_s8 }
 0x135   : > { %p4384_p2 = pnand %p4382_p0, %p4925_p1 }
 0x137   : > { %p4385_p3 = pneg %p4384_p2 }
 0x139   : > { %p4390_p6 = pnand %p4388_p5, %p4385_p3 }
 0x13b   : > { %4393 = shalt.err (!%p4390_p6)
}
 0x13c   : > { %s4394_s4 = scalar_lea.vmem %s5037_s3, 256  ;;  %p4402_p11 = scmp.lt.s32.totalorder %s5037_s3, %s5037_s3 }
 0x13d   : > { %p4395_p4 = scmp.ne.s32.totalorder %s5037_s3, %s4394_s4  ;;  %p4403_p7 = scmp.lt.s32.totalorder %s4394_s4, %s4394_s4 }
 0x13f   : > { %p4397_p8 = pnand %p4395_p4, %p4925_p1  ;;  %p4404_p9 = por %p4403_p7, %p4402_p11 }
 0x141   : > { %p4398_p10 = pneg %p4397_p8 }
 0x143   : > { %p4405_p12 = pnand %p4404_p9, %p4398_p10 }
 0x145   : > { %4408 = shalt.err (!%p4405_p12)
}
 0x146   : > { %3883 = dma.hbm_to_vmem [thread:$0]  (!%p4913_p13), %s4734_s8, 256, %s5037_s3, [#allocation16], %s5564_s0, %s5564_s0, %s5563_s26  }
 0x147   : > { %s4676_s28 = smov [#allocation20]   ;;  %s4677_s19 = smov [#allocation23]  }
 0x148   : > { %s891_s18 = sshll.u32 %s4676_s28, 4  ;;  %s915_s10 = sshll.u32 %s4677_s19, 4  ;;  %s892_s18 = int_to_ptr.vmem [resolvable:$true] %s891_s18  ;;  %s5070_s10 = int_to_ptr.vmem [resolvable:$true] %s915_s10 }
 0x149   : > { %s4409_s1 = scalar_lea.hbm %s4749_s24, 16 }
 0x14a   : > { %p4410_p0 = scmp.ne.s32.totalorder %s4749_s24, %s4409_s1  ;;  %p4416_p5 = scmp.lt.u32.totalorder %s4409_s1, %s4749_s24 }
 0x14c   : > { %p4412_p2 = pnand %p4410_p0, %p4925_p1 }
 0x14e   : > { %p4413_p3 = pneg %p4412_p2 }
 0x150   : > { %p4418_p6 = pnand %p4416_p5, %p4413_p3 }
 0x152   : > { %4421 = shalt.err (!%p4418_p6)
}
 0x153   : > { %s4422_s4 = scalar_lea.vmem %s892_s18, 16  ;;  %s4429_s3 = scalar_lea.vmem %s892_s18, 32 }
 0x154   : > { %p4423_p4 = scmp.ne.s32.totalorder %s892_s18, %s4422_s4  ;;  %p4430_p11 = scmp.lt.s32.totalorder %s892_s18, %s892_s18 }
 0x155   : > { %p4431_p7 = scmp.lt.s32.totalorder %s4429_s3, %s4422_s4 }
 0x156   : > { %p4425_p8 = pnand %p4423_p4, %p4925_p1 }
 0x157   : > { %p4432_p9 = por %p4431_p7, %p4430_p11 }
 0x158   : > { %p4426_p10 = pneg %p4425_p8 }
 0x15a   : > { %p4433_p12 = pnand %p4432_p9, %p4426_p10 }
 0x15c   : > { %4436 = shalt.err (!%p4433_p12)
}
 0x15d   : > { %3889 = dma.hbm_to_vmem [thread:$0]  (!%p4913_p13), %s4749_s24, 16, %s892_s18, [#allocation19]  }
 0x15e   : > { %s4437_s28 = scalar_lea.hbm %s4759_s6, 16 }
 0x15f   : > { %p4438_p0 = scmp.ne.s32.totalorder %s4759_s6, %s4437_s28  ;;  %p4444_p5 = scmp.lt.u32.totalorder %s4437_s28, %s4759_s6 }
 0x161   : > { %p4440_p2 = pnand %p4438_p0, %p4925_p1 }
 0x163   : > { %p4441_p3 = pneg %p4440_p2 }
 0x165   : > { %p4446_p6 = pnand %p4444_p5, %p4441_p3 }
 0x167   : > { %4449 = shalt.err (!%p4446_p6)
}
 0x168   : > { %s4450_s19 = scalar_lea.vmem %s5070_s10, 16  ;;  %s4457_s1 = scalar_lea.vmem %s5070_s10, 32 }
 0x169   : > { %p4451_p4 = scmp.ne.s32.totalorder %s5070_s10, %s4450_s19  ;;  %p4458_p11 = scmp.lt.s32.totalorder %s5070_s10, %s5070_s10 }
 0x16a   : > { %p4459_p7 = scmp.lt.s32.totalorder %s4457_s1, %s4450_s19 }
 0x16b   : > { %p4453_p8 = pnand %p4451_p4, %p4925_p1 }
 0x16c   : > { %p4460_p9 = por %p4459_p7, %p4458_p11 }
 0x16d   : > { %p4454_p10 = pneg %p4453_p8 }
 0x16f   : > { %p4461_p12 = pnand %p4460_p9, %p4454_p10 }
 0x171   : > { %4464 = shalt.err (!%p4461_p12)
}
 0x172   : > { %3895 = dma.hbm_to_vmem [thread:$0]  (!%p4913_p13), %s4759_s6, 16, %s5070_s10, [#allocation22]  }
 0x173   : > { %s4678_s18 = smov [#allocation26]   ;;  %s4679_s3 = smov [#allocation29]  }
 0x174   : > { %s939_s4 = sshll.u32 %s4678_s18, 4  ;;  %s969_s28 = sshll.u32 %s4679_s3, 4  ;;  %s940_s4 = int_to_ptr.vmem [resolvable:$true] %s939_s4  ;;  %s5098_s28 = int_to_ptr.vmem [resolvable:$true] %s969_s28 }
 0x175   : > { %s4465_s19 = scalar_lea.hbm %s4774_s27, 256 }
 0x176   : > { %p4466_p0 = scmp.ne.s32.totalorder %s4774_s27, %s4465_s19  ;;  %p4472_p5 = scmp.lt.u32.totalorder %s4465_s19, %s4774_s27 }
 0x178   : > { %p4468_p2 = pnand %p4466_p0, %p4925_p1 }
 0x17a   : > { %p4469_p3 = pneg %p4468_p2 }
 0x17c   : > { %p4474_p6 = pnand %p4472_p5, %p4469_p3 }
 0x17e   : > { %4477 = shalt.err (!%p4474_p6)
}
 0x17f   : > { %s4478_s1 = scalar_lea.vmem %s940_s4, 256  ;;  %p4486_p11 = scmp.lt.s32.totalorder %s940_s4, %s940_s4 }
 0x180   : > { %p4479_p4 = scmp.ne.s32.totalorder %s940_s4, %s4478_s1  ;;  %p4487_p7 = scmp.lt.s32.totalorder %s4478_s1, %s4478_s1 }
 0x182   : > { %p4481_p8 = pnand %p4479_p4, %p4925_p1  ;;  %p4488_p9 = por %p4487_p7, %p4486_p11 }
 0x184   : > { %p4482_p10 = pneg %p4481_p8 }
 0x186   : > { %p4489_p12 = pnand %p4488_p9, %p4482_p10 }
 0x188   : > { %4492 = shalt.err (!%p4489_p12)
}
 0x189   : > { %s5565_s10 = sld [smem:[#allocation48_spill]] }
 0x18a   : > { %3901 = dma.hbm_to_vmem [thread:$0]  (!%p4913_p13), %s4774_s27, 256, %s940_s4, [#allocation25], %s5564_s0, %s5564_s0, %s5563_s26  }
 0x18f   : > { %s4493_s18 = scalar_lea.hbm %s5565_s10, 256 }
 0x190   : > { %p4494_p0 = scmp.ne.s32.totalorder %s5565_s10, %s4493_s18  ;;  %p4500_p5 = scmp.lt.u32.totalorder %s4493_s18, %s5565_s10 }
 0x192   : > { %p4496_p2 = pnand %p4494_p0, %p4925_p1 }
 0x194   : > { %p4497_p3 = pneg %p4496_p2 }
 0x196   : > { %p4502_p6 = pnand %p4500_p5, %p4497_p3 }
 0x198   : > { %4505 = shalt.err (!%p4502_p6)
}
 0x199   : > { %s4506_s3 = scalar_lea.vmem %s5098_s28, 256  ;;  %p4514_p11 = scmp.lt.s32.totalorder %s5098_s28, %s5098_s28 }
 0x19a   : > { %p4507_p4 = scmp.ne.s32.totalorder %s5098_s28, %s4506_s3  ;;  %p4515_p7 = scmp.lt.s32.totalorder %s4506_s3, %s4506_s3 }
 0x19c   : > { %p4509_p8 = pnand %p4507_p4, %p4925_p1  ;;  %p4516_p9 = por %p4515_p7, %p4514_p11 }
 0x19e   : > { %p4510_p10 = pneg %p4509_p8 }
 0x1a0   : > { %p4517_p12 = pnand %p4516_p9, %p4510_p10 }
 0x1a2   : > { %4520 = shalt.err (!%p4517_p12)
}
 0x1a3   : > { %3907 = dma.hbm_to_vmem [thread:$0]  (!%p4913_p13), %s5565_s10, 256, %s5098_s28, [#allocation28], %s5564_s0, %s5564_s0, %s5563_s26  }
 0x1a4   : > { %p5566_p0 = scmp.ne.s32.totalorder %s5559_s15, 0 }
 0x1a5   : > { %p5567_p1 = scmp.ne.s32.totalorder (!%p5566_p0), %s5560_s7, 0 }
 0x1a6   : > { %1027 = sbr.rel (%p5566_p0) target bundleno = 7031 (0x1b77), region = 140 }
 0x1ad   : > { %4574 = dma.done.wait (%p5567_p1), [#allocation7], 128  }
 0x1ae   : > { %4576 = vsyncadd (%p5567_p1), [#allocation7], 4294967168 }
 0x1af   : > { %4578 = dma.done.wait (%p5567_p1), [#allocation10], 384  }
 0x1b0   : > { %4580 = vsyncadd (%p5567_p1), [#allocation10], 4294966912 }
 0x1b1   : > { %4582 = dma.done.wait (%p5567_p1), [#allocation13], 272  }
 0x1b2   : > { %4584 = vsyncadd (%p5567_p1), [#allocation13], 4294967024 }
 0x1b3   : > { %4586 = dma.done.wait (%p5567_p1), [#allocation16], 272  }
 0x1b4   : > { %4588 = vsyncadd (%p5567_p1), [#allocation16], 4294967024 }
 0x1b5   : > { %4590 = dma.done.wait (%p5567_p1), [#allocation19], 32  }
 0x1b6   : > { %4592 = vsyncadd (%p5567_p1), [#allocation19], 4294967264 }
 0x1b7   : > { %4594 = dma.done.wait (%p5567_p1), [#allocation22], 272  }
 0x1b8   : > { %4596 = vsyncadd (%p5567_p1), [#allocation22], 4294967024 }
 0x1b9   : > { %4598 = dma.done.wait (%p5567_p1), [#allocation25], 272  }
 0x1ba   : > { %4600 = vsyncadd (%p5567_p1), [#allocation25], 4294967024 }
 0x1bb   : > { %4602 = dma.done.wait (%p5567_p1), [#allocation28], 272  }
 0x1bc   : > { %4604 = vsyncadd (%p5567_p1), [#allocation28], 4294967024  ;;  %s5568_s15 = sld [smem:[#allocation40_spill]]  ;;  %p1165_p13 = scmp.lt.s32.totalorder %s4623_s22, 1  ;;  %v4680_v0 = vmov 0.0   ;;  %vm4681_vm0 = vmmov 0  }
 0x1bd   : > { %s5569_s11 = sld [smem:[#allocation41_spill]]  ;;  %3588 = vmatprep.subr.bf16.mxu0 %v4680_v0  ;;  %3592 = vmatprep.mubr.msk.bf16.mxu0 %vm4681_vm0, %v4680_v0  ;;  %s5570_s2 = sld [smem:[#allocation44_spill]]  ;;  %v4043_v1 = vld [vmem:[#allocation14] sm:$0xff]   ;;  %v4044_v2 = vld [vmem:[#allocation14 + $0x8] sm:$0xff]   ;;  %vm1207_vm1 = vcmask 261120   ;;  %v4049_v6 = vld [vmem:[#allocation17] sm:$0xff]  }
 0x1be   : > { %s1166_s26 = scalar_select %p1165_p13, %s4623_s22, 1  ;;  %3596 = vmatprep.subr.bf16.mxu1 %v4680_v0  ;;  %3600 = vmatprep.mubr.msk.bf16.mxu1 %vm4681_vm0, %v4680_v0  ;;  %v4050_v10 = vld [vmem:[#allocation17 + $0x8] sm:$0xff]   ;;  %v4047_v11 = vld [vmem:[#allocation11] sm:$0xff]   ;;  %v4052_v15 = vld [vmem:[#allocation26 + $0x8] sm:$0xff]   ;;  %vm1252_vm2 = vcmask 257024   ;;  %vm1532_vm3 = vcmask 64512  }
 0x1bf   : > { %3589 = vmatpush3.bf16.msra.mxu0 %v4043_v1  ;;  %3597 = vmatpush3.bf16.msra.mxu1 %v4049_v6  ;;  %v4048_v13 = vld [vmem:[#allocation11 + $0x8] sm:$0xff]   ;;  %v3441_v16 = vld [vmem:[#allocation15] ss:$0 sm:$0xff]  ;;  %v3445_v27 = vld [vmem:[#allocation18] ss:$0 sm:$0xff]  ;;  %s4682_s19 = smov 120  }
 0x1c0   : > { %s3438_s7 = sshll.u32 %s1166_s26, 3  ;;  %s3513_s4 = sshll.u32 %s1166_s26, 4  ;;  %3590 = vmatprep.subr.bf16.mxu0 %v4680_v0  ;;  %3598 = vmatprep.subr.bf16.mxu1 %v4680_v0  ;;  %v4051_v14 = vld [vmem:[#allocation26] sm:$0xff]   ;;  %v3449_v23 = vld [vmem:[#allocation24] ss:$0 sm:$0xff]  ;;  %vm1594_vm4 = vcmask 1043456  }
 0x1c1   : > { %v3457_v41 = vld [vmem:[#allocation12] ss:$0 sm:$0xff]  ;;  %v3453_v49 = vld [vmem:[#allocation27] ss:$0 sm:$0xff]  ;;  %s4683_s1 = smov 112   ;;  %s5571_s18 = sld [smem:[#allocation43_spill]] }
 0x1c2   : > { %s1168_s0 = scalar_lea.vmem %s5568_s15, %s3438_s7  ;;  %v1459_v62 = vld [vmem:[#allocation6] sm:$0xff]  ;;  %s4684_s15 = smov 104   ;;  %vm2328_vm7 = vcmask 130048   ;;  %vm3051_vm8 = vcmask 523264  }
 0x1c3   : > { %v5174_v3 = vld [vmem:[%s1168_s0] sm:$0xff]  ;;  %s1173_s28 = scalar_lea.vmem %s5569_s11, %s3513_s4  ;;  %3591 = vmatpush3.bf16.msra.mxu0 %v4044_v2  ;;  %v4046_v7 = vld [vmem:[%s5570_s2 + $0x8] sm:$0xff]   ;;  %3599 = vmatpush3.bf16.msra.mxu1 %v4050_v10  ;;  %vm1529_vm5 = vcmp.eq.f32.partialorder %v1459_v62, 0.0  ;;  %s5573_s11 = sld [smem:[#allocation52_spill]] }
 0x1c4   : > { %v1180_v4 = vpack.c.bf16 %v5174_v3, %v5174_v3  ;;  %v4045_v5 = vld [vmem:[%s5570_s2] sm:$0xff]   ;;  %3604 = vmatprep.subr.bf16.mxu0 %v4680_v0  ;;  %v1182_v9 = vld [vmem:[%s1173_s28 + $0x8] sm:$0xff]  ;;  %3612 = vmatprep.subr.bf16.mxu1 %v4680_v0  ;;  %v5232_v63 = vsel %vm1529_vm5, -1e+09, %v4680_v0  ;;  %s5574_s26 = sld [smem:[#allocation53_spill]]  ;;  %s5575_s7 = sld [smem:[#allocation46_spill]] }
 0x1c5   : > { %v1181_v8 = vld [vmem:[%s1173_s28] sm:$0xff]  ;;  %s5576_s0 = sld [smem:[#allocation47_spill]]  ;;  %s5577_s4 = sld [smem:[#allocation50_spill]] }
 0x1c6   : > { %3593 = vmatmul.mubr.msk.bf16.vlgmr.msra.gmra.mrb[0].mxu0 %vm1207_vm1, %v1180_v4  ;;  %v1183_v12 = vpack.c.bf16 %v1182_v9, %v1181_v8  ;;  %3601 = vmatmul.mubr.msk.bf16.vlgmr.msra.gmra.mrb[0].mxu1 %vm1207_vm1, %v1180_v4  ;;  %s5578_s28 = sld [smem:[#allocation54_spill]]  ;;  %s5581_s5 = sld [smem:[#allocation55_spill]] }
 0x1c7   : > { %3605 = vmatpush3.bf16.msra.mxu0 %v4045_v5  ;;  %3608 = vmatprep.mubr.msk.bf16.mxu0 %vm4681_vm0, %v4680_v0  ;;  %s5572_s3 = smov %s5571_s18 }
 0x1c8   : > { %3606 = vmatprep.subr.bf16.mxu0 %v4680_v0  ;;  %3616 = vmatprep.mubr.msk.bf16.mxu1 %vm4681_vm0, %v4680_v0 }
 0x1c9   : > { %3613 = vmatpush3.bf16.msra.mxu1 %v4051_v14 }
 0x1ca   : > { %3614 = vmatprep.subr.bf16.mxu1 %v4680_v0 }
 0x1cb   : > { %3607 = vmatpush3.bf16.msra.mxu0 %v4046_v7 }
 0x1cc   : > { %3620 = vmatprep.subr.bf16.mxu0 %v4680_v0 }
 0x1cd   : > { %3615 = vmatpush3.bf16.msra.mxu1 %v4052_v15 }
 0x1ce   : > { %3609 = vmatmul.mubr.msk.bf16.vlgmr.msra.gmra.mrb[4].mxu0 %vm1207_vm1, %v1183_v12  ;;  %3628 = vmatprep.subr.bf16.mxu1 %v4680_v0 }
 0x1cf   : > { %3621 = vmatpush3.bf16.msra.mxu0 %v4047_v11  ;;  %3624 = vmatprep.mubr.msk.bf16.mxu0 %vm4681_vm0, %v4680_v0 }
 0x1d0   : > { %3622 = vmatprep.subr.bf16.mxu0 %v4680_v0  ;;  %3617 = vmatmul.mubr.msk.bf16.vlgmr.msra.gmra.mrb[4].mxu1 %vm1207_vm1, %v1183_v12 }
 0x1d1   : > { %3630 = vmatprep.mubr.msk.bf16.mxu1 %vm4681_vm0, %v4680_v0 }
 0x1d3   : > { %3623 = vmatpush3.bf16.msra.mxu0 %v4048_v13 }
 0x1d4   : > { %3634 = vmatprep.subr.bf16.mxu0 %v4680_v0 }
 0x1d6   : > { %3625 = vmatmul.mubr.msk.bf16.vlgmr.msra.gmra.mrb[8].mxu0 %vm1207_vm1, %v1180_v4 }
 0x1d7   : > { %3636 = vmatprep.mubr.msk.bf16.mxu0 %vm4681_vm0, %v4680_v0 }
 0x299   : > { %v1245_v17 = vpop.f32.mrb[0].mxu0  ;;  %v1311_v28 = vpop.f32.mrb[0].mxu1 }
 0x29a   : > { %v1246_v18 = vadd.f32 %v3441_v16, %v1245_v17  ;;  %v3594_v19 = vpop.f32.mrb[1].mxu0  ;;  %v1312_v32 = vadd.f32 %v3445_v27, %v1311_v28  ;;  %v3602_v33 = vpop.f32.mrb[1].mxu1 }
 0x29b   : > { %v1248_v20 = vpop.f32.mrb[2].mxu0  ;;  %v1314_v35 = vpop.f32.mrb[2].mxu1 }
 0x29c   : > { %v1251_v21 = vpack.c.bf16 %v1246_v18, %v1246_v18  ;;  %v3595_v22 = vpop.f32.mrb[3].mxu0  ;;  %v1317_v39 = vpack.c.bf16 %v1312_v32, %v1312_v32  ;;  %v3603_v40 = vpop.f32.mrb[3].mxu1  ;;  %v1639_v35 = vld [vmem:[%s5572_s3] sm:$0xf] }
 0x29e   : > { %1253 = vst.msk [vmem:[#allocation2] sm:$0xf] %vm1252_vm2, %v1251_v21  ;;  %1318 = vst.msk [vmem:[#allocation3] sm:$0xf] %vm1252_vm2, %v1317_v39  ;;  %v1809_v39 = vsel %vm1594_vm4, %v1639_v35, 0 }
 0x2a1   : > { %v1379_v24 = vpop.f32.mrb[4].mxu0 }
 0x2a2   : > { %v3610_v25 = vpop.f32.mrb[5].mxu0  ;;  %v1380_v29 = vadd.f32 %v3449_v23, %v1379_v24 }
 0x2a3   : > { %v1382_v26 = vpop.f32.mrb[6].mxu0  ;;  %v1445_v50 = vpop.f32.mrb[4].mxu1 }
 0x2a4   : > { %v1383_v30 = vadd.f32 %v3449_v23, %v1382_v26  ;;  %v3611_v31 = vpop.f32.mrb[7].mxu0  ;;  %v1446_v51 = vadd.f32 %v3453_v49, %v1445_v50  ;;  %v3618_v52 = vpop.f32.mrb[5].mxu1 }
 0x2a5   : > { %v1457_v34 = vld [vmem:[#allocation2] sm:$0xf]  ;;  %v1448_v53 = vpop.f32.mrb[6].mxu1  ;;  %v1458_v57 = vld [vmem:[#allocation3] sm:$0xf] }
 0x2a6   : > { %v1386_v36 = vpack.c.bf16 %v1383_v30, %v1380_v29  ;;  %v1537_v37 = vsel %vm1532_vm3, %v1457_v34, 0  ;;  %v5208_v38 = vcombine.low %v1457_v34, %v1457_v34  ;;  %v1449_v54 = vadd.f32 %v3453_v49, %v1448_v53  ;;  %v3619_v55 = vpop.f32.mrb[7].mxu1  ;;  %v1758_v29 = vld [vmem:[%s5571_s18 + $0x4] sm:$0xf]  ;;  %s5582_s18 = sld [smem:[#allocation56_spill]] }
 0x2a7   : > { %3629 = vmatpush3.bf16.xpose.msra.mxu1 %v1537_v37  ;;  %v1596_v58 = vsel %vm1594_vm4, %v1458_v57, 0  ;;  %v5239_v19 = vcombine.low %v1458_v57, %v1458_v57  ;;  %v1763_v30 = vsel %vm1594_vm4, %v1758_v29, 0 }
 0x2a8   : > { %1387 = vst.msk [vmem:[#allocation4] sm:$0xff] %vm1207_vm1, %v1386_v36  ;;  %1646 = vrot.lane.b32.xlu0 %v5208_v38, %s4682_s19  ;;  %3640 = vmatprep.subr.bf16.mxu1 %v4680_v0  ;;  %v1452_v56 = vpack.c.bf16 %v1449_v54, %v1446_v51 }
 0x2a9   : > { %v1522_v42 = vpop.f32.mrb[8].mxu0  ;;  %3635 = vmatpush3.bf16.msra.mxu0 %v1596_v58 }
 0x2aa   : > { %v1523_v43 = vadd.f32 %v3457_v41, %v1522_v42  ;;  %v3626_v44 = vpop.f32.mrb[9].mxu0  ;;  %1453 = vst.msk [vmem:[#allocation5] sm:$0xff] %vm1207_vm1, %v1452_v56  ;;  %3646 = vmatprep.subr.bf16.mxu0 %v4680_v0 }
 0x2ab   : > { %v1525_v45 = vpop.f32.mrb[10].mxu0 }
 0x2ac   : > { %v1528_v46 = vmul.f32 0.35355338, %v1523_v43  ;;  %v3627_v47 = vpop.f32.mrb[11].mxu0 }
 0x2ae   : > { %v5215_v48 = vpack.c.bf16 %v1528_v46, %v1528_v46 }
 0x2b0   : > { %1641 = vrot.lane.b32.xlu0 %v5215_v48, %s4682_s19  ;;  %3631 = vmatmul.mubr.msk.bf16.vlgmr.msra.gmra.mrb[8].mxu1 %vm1532_vm3, %v5215_v48 }
 0x2b1   : > { %3642 = vmatprep.mubr.msk.bf16.mxu1 %vm4681_vm0, %v4680_v0 }
 0x31a   : > { %v1647_v59 = vpop.permute.xlu0 %1646 }
 0x31b   : > { %v1652_v60 = vsel %vm1532_vm3, %v1647_v59, 0 }
 0x31c   : > { %3641 = vmatpush3.bf16.xpose.msra.mxu1 %v1652_v60 }
 0x31d   : > { %3652 = vmatprep.subr.bf16.mxu1 %v4680_v0 }
 0x322   : > { %v1642_v61 = vpop.permute.xlu0 %1641 }
 0x323   : > { %3643 = vmatmul.mubr.msk.bf16.vlgmr.msra.gmra.mrb[12].mxu1 %vm1532_vm3, %v1642_v61 }
 0x324   : > { %3654 = vmatprep.mubr.msk.bf16.mxu1 %vm4681_vm0, %v4680_v0  ;;  %3653 = vmatpush3.bf16.msra.mxu1 %v1763_v30 }
 0x325   : > { %3664 = vmatprep.subr.bf16.mxu1 %v4680_v0 }
 0x383   : > { %v1573_v1 = vpop.f32.mrb[8].mxu1 }
 0x384   : > { %v1574_v2 = vadd.f32 %v1573_v1, %v5232_v63  ;;  %v3632_v4 = vpop.f32.mrb[9].mxu1 }
 0x385   : > { %v1576_v5 = vpop.f32.mrb[10].mxu1 }
 0x386   : > { %v3633_v6 = vpop.f32.mrb[11].mxu1  ;;  %v1579_v7 = vsel %vm1532_vm3, %v1574_v2, -inf }
 0x387   : > { %1580 = vmax.xlane.f32.xlu1 %v1579_v7 }
 0x3f6   : > { %v1688_v8 = vpop.f32.mrb[12].mxu1 }
 0x3f7   : > { %v1689_v9 = vadd.f32 %v1688_v8, %v5232_v63  ;;  %v3644_v10 = vpop.f32.mrb[13].mxu1 }
 0x3f8   : > { %v1691_v11 = vpop.f32.mrb[14].mxu1 }
 0x3f9   : > { %v3645_v12 = vpop.f32.mrb[15].mxu1  ;;  %v1694_v13 = vsel %vm1532_vm3, %v1689_v9, -inf }
 0x3fa   : > { %1695 = vmax.xlane.f32.xlu1 %v1694_v13 }
 0x414   : > { %v1581_v14 = vpop.xlane.xlu1 %1580 }
 0x415   : > { %v1582_v15 = vsub.f32 %v1574_v2, %v1581_v14 }
 0x417   : > { %v1583_v16 = vmul.f32 1.442695, %v1582_v15 }
 0x419   : > { %4063 = vpow2.f32 %v1583_v16 }
 0x423   : > { %v4064_v17 = vpop.eup %4063 }
 0x424   : > { %v1585_v18 = vsel %vm1532_vm3, %v4064_v17, 0.0 }
 0x425   : > { %1586 = vadd.xlane.f32.xlu0 %v1585_v18 }
 0x43b   : > { %1913 = vrot.lane.b32.xlu0 %v5239_v19, %s4683_s1 }
 0x487   : > { %v1696_v20 = vpop.xlane.xlu1 %1695 }
 0x488   : > { %v1697_v21 = vsub.f32 %v1689_v9, %v1696_v20 }
 0x48a   : > { %v1698_v22 = vmul.f32 1.442695, %v1697_v21 }
 0x48c   : > { %4065 = vpow2.f32 %v1698_v22 }
 0x496   : > { %v4066_v23 = vpop.eup %4065 }
 0x497   : > { %v1700_v24 = vsel %vm1532_vm3, %v4066_v23, 0.0 }
 0x498   : > { %1701 = vadd.xlane.f32.xlu1 %v1700_v24 }
 0x4a9   : > { %1709 = vrot.lane.b32.xlu1 %v5239_v19, %s4682_s19 }
 0x4ad   : > { %1853 = vrot.lane.b32.xlu1 %v5208_v38, %s4683_s1 }
 0x4b1   : > { %1851 = vrot.lane.b32.xlu1 %v5215_v48, %s4683_s1 }
 0x4b2   : > { %v1587_v25 = vpop.xlane.xlu0 %1586 }
 0x4b3   : > { %4067 = vrcp.f32 %v1587_v25 }
 0x4b6   : > { %v1914_v40 = vpop.permute.xlu0 %1913 }
 0x4b7   : > { %v1919_v45 = vsel %vm1594_vm4, %v1914_v40, 0  ;;  %v2121_v40 = vld [vmem:[%s5572_s3 + $0xc] sm:$0xf] }
 0x4bd   : > { %v4068_v26 = vpop.eup %4067 }
 0x4be   : > { %v1589_v27 = vmul.f32 %v4068_v26, %v4064_v17 }
 0x4c0   : > { %v1590_v28 = vpack.c.bf16 %v1589_v27, %v1589_v27 }
 0x4c2   : > { %3637 = vmatmul.mubr.msk.bf16.vlgmr.msra.gmra.mrb[12].mxu0 %vm1532_vm3, %v1590_v28 }
 0x4c3   : > { %3648 = vmatprep.mubr.msk.bf16.mxu0 %vm4681_vm0, %v4680_v0 }
 0x525   : > { %v1702_v31 = vpop.xlane.xlu1 %1701 }
 0x526   : > { %4069 = vrcp.f32 %v1702_v31 }
 0x529   : > { %v1710_v32 = vpop.permute.xlu1 %1709 }
 0x52a   : > { %v1715_v33 = vsel %vm1594_vm4, %v1710_v32, 0 }
 0x52b   : > { %3647 = vmatpush3.bf16.msra.mxu0 %v1715_v33 }
 0x52c   : > { %3658 = vmatprep.subr.bf16.mxu0 %v4680_v0 }
 0x52d   : > { %v1854_v47 = vpop.permute.xlu1 %1853 }
 0x52e   : > { %v1859_v53 = vsel %vm1532_vm3, %v1854_v47, 0 }
 0x530   : > { %v4070_v34 = vpop.eup %4069 }
 0x531   : > { %v1704_v36 = vmul.f32 %v4070_v34, %v4066_v23  ;;  %v1852_v55 = vpop.permute.xlu1 %1851 }
 0x533   : > { %v1705_v37 = vpack.c.bf16 %v1704_v36, %v1704_v36 }
 0x535   : > { %3649 = vmatmul.mubr.msk.bf16.vlgmr.msra.gmra.mrb[16].mxu0 %vm1532_vm3, %v1705_v37 }
 0x536   : > { %3659 = vmatpush3.bf16.msra.mxu0 %v1809_v39  ;;  %3660 = vmatprep.mubr.msk.bf16.mxu0 %vm4681_vm0, %v4680_v0 }
 0x537   : > { %3670 = vmatprep.subr.bf16.mxu0 %v4680_v0 }
 0x595   : > { %v1632_v41 = vpop.f32.mrb[12].mxu0 }
 0x596   : > { %v1638_v42 = vpack.c.bf16 %v1632_v41, %v1632_v41  ;;  %v3638_v43 = vpop.f32.mrb[13].mxu0 }
 0x597   : > { %v1635_v44 = vpop.f32.mrb[14].mxu0 }
 0x598   : > { %v3639_v46 = vpop.f32.mrb[15].mxu0  ;;  %3661 = vmatmul.mubr.msk.bf16.vlgmr.msra.gmra.mrb[20].mxu0 %vm1532_vm3, %v1638_v42 }
 0x599   : > { %3671 = vmatpush3.bf16.msra.mxu0 %v1919_v45  ;;  %3672 = vmatprep.mubr.msk.bf16.mxu0 %vm4681_vm0, %v4680_v0 }
 0x59a   : > { %3682 = vmatprep.subr.bf16.mxu0 %v4680_v0 }
 0x608   : > { %v1751_v49 = vpop.f32.mrb[16].mxu0 }
 0x609   : > { %v1757_v50 = vpack.c.bf16 %v1751_v49, %v1751_v49  ;;  %v3650_v51 = vpop.f32.mrb[17].mxu0 }
 0x60a   : > { %v1754_v52 = vpop.f32.mrb[18].mxu0 }
 0x60b   : > { %v3651_v54 = vpop.f32.mrb[19].mxu0  ;;  %3655 = vmatmul.mubr.msk.bf16.vlgmr.msra.gmra.mrb[16].mxu1 %vm1532_vm3, %v1757_v50 }
 0x60c   : > { %3665 = vmatpush3.bf16.xpose.msra.mxu1 %v1859_v53  ;;  %3666 = vmatprep.mubr.msk.bf16.mxu1 %vm4681_vm0, %v4680_v0  ;;  %v5314_v53 = vld [vmem:[#allocation4] sm:$0xff] }
 0x60d   : > { %3676 = vmatprep.subr.bf16.mxu1 %v4680_v0 }
 0x613   : > { %3667 = vmatmul.mubr.msk.bf16.vlgmr.msra.gmra.mrb[20].mxu1 %vm1532_vm3, %v1852_v55 }
 0x614   : > { %3678 = vmatprep.mubr.msk.bf16.mxu1 %vm4681_vm0, %v4680_v0 }
 0x66b   : > { %v1845_v56 = vpop.f32.mrb[20].mxu0 }
 0x66c   : > { %v3662_v57 = vpop.f32.mrb[21].mxu0 }
 0x66d   : > { %v1848_v58 = vpop.f32.mrb[22].mxu0 }
 0x66e   : > { %v3663_v59 = vpop.f32.mrb[23].mxu0  ;;  %v2286_v58 = vsel %vm1532_vm3, %v5314_v53, 0 }
 0x6de   : > { %v1799_v60 = vpop.f32.mrb[16].mxu1 }
 0x6df   : > { %v5277_v61 = vadd.f32 %v1845_v56, %v1799_v60  ;;  %v3656_v62 = vpop.f32.mrb[17].mxu1  ;;  %v3475_v60 = vld [vmem:[#allocation20] ss:$0 sm:$0xff] }
 0x6e0   : > { %v1802_v1 = vpop.f32.mrb[18].mxu1 }
 0x6e1   : > { %v3657_v2 = vpop.f32.mrb[19].mxu1 }
 0x6e6   : > { %v1895_v4 = vpop.f32.mrb[20].mxu1 }
 0x6e7   : > { %v1896_v5 = vadd.f32 %v1895_v4, %v5232_v63  ;;  %v3668_v6 = vpop.f32.mrb[21].mxu1 }
 0x6e8   : > { %v1898_v7 = vpop.f32.mrb[22].mxu1 }
 0x6e9   : > { %v3669_v8 = vpop.f32.mrb[23].mxu1  ;;  %v1901_v9 = vsel %vm1532_vm3, %v1896_v5, -inf }
 0x6ea   : > { %1902 = vmax.xlane.f32.xlu1 %v1901_v9 }
 0x777   : > { %v1903_v10 = vpop.xlane.xlu1 %1902 }
 0x778   : > { %v1904_v11 = vsub.f32 %v1896_v5, %v1903_v10 }
 0x77a   : > { %v1905_v12 = vmul.f32 1.442695, %v1904_v11 }
 0x77c   : > { %4071 = vpow2.f32 %v1905_v12  ;;  %v4055_v12 = vld [vmem:[#allocation21] sm:$0xff]  }
 0x786   : > { %v4072_v13 = vpop.eup %4071 }
 0x787   : > { %v1907_v14 = vsel %vm1532_vm3, %v4072_v13, 0.0 }
 0x788   : > { %1908 = vadd.xlane.f32.xlu0 %v1907_v14 }
 0x79e   : > { %2012 = vrot.lane.b32.xlu0 %v5208_v38, %s4684_s15 }
 0x7a2   : > { %2010 = vrot.lane.b32.xlu0 %v5215_v48, %s4684_s15  ;;  %v1962_v48 = vld [vmem:[%s5572_s3 + $0x8] sm:$0xf] }
 0x7a3   : > { %v1967_v22 = vsel %vm1594_vm4, %v1962_v48, 0 }
 0x7a4   : > { %3677 = vmatpush3.bf16.msra.mxu1 %v1967_v22  ;;  %v5336_v22 = vld [vmem:[#allocation5] sm:$0xff] }
 0x7a5   : > { %3688 = vmatprep.subr.bf16.mxu1 %v4680_v0 }
 0x815   : > { %v1909_v15 = vpop.xlane.xlu0 %1908 }
 0x816   : > { %4073 = vrcp.f32 %v1909_v15 }
 0x819   : > { %v2013_v18 = vpop.permute.xlu0 %2012 }
 0x81a   : > { %v2018_v21 = vsel %vm1532_vm3, %v2013_v18, 0 }
 0x81d   : > { %v2011_v38 = vpop.permute.xlu0 %2010 }
 0x820   : > { %v4074_v16 = vpop.eup %4073 }
 0x821   : > { %v1911_v17 = vmul.f32 %v4074_v16, %v4072_v13 }
 0x823   : > { %v1912_v20 = vpack.c.bf16 %v1911_v17, %v1911_v17  ;;  %v3476_v17 = vld [vmem:[%s5573_s11] ss:$0 sm:$0xff]  ;;  %s5583_s11 = smov %s5582_s18 }
 0x825   : > { %3673 = vmatmul.mubr.msk.bf16.vlgmr.msra.gmra.mrb[24].mxu0 %vm1532_vm3, %v1912_v20  ;;  %v3477_v20 = vld [vmem:[%s5574_s26] ss:$0 sm:$0xff] }
 0x826   : > { %3683 = vmatpush3.bf16.xpose.msra.mxu0 %v2018_v21  ;;  %3684 = vmatprep.mubr.msk.bf16.mxu0 %vm4681_vm0, %v4680_v0 }
 0x827   : > { %3694 = vmatprep.subr.bf16.mxu0 %v4680_v0 }
 0x82d   : > { %3685 = vmatmul.mubr.msk.bf16.vlgmr.msra.gmra.mrb[28].mxu0 %vm1532_vm3, %v2011_v38 }
 0x82e   : > { %3696 = vmatprep.mubr.msk.bf16.mxu0 %vm4681_vm0, %v4680_v0 }
 0x8f8   : > { %v1955_v23 = vpop.f32.mrb[24].mxu0 }
 0x8f9   : > { %v1961_v24 = vpack.c.bf16 %v1955_v23, %v1955_v23  ;;  %v3674_v25 = vpop.f32.mrb[25].mxu0  ;;  %v3478_v23 = vld [vmem:[#allocation23] ss:$0 sm:$0xff] }
 0x8fa   : > { %v1958_v26 = vpop.f32.mrb[26].mxu0 }
 0x8fb   : > { %v3675_v27 = vpop.f32.mrb[27].mxu0  ;;  %3679 = vmatmul.mubr.msk.bf16.vlgmr.msra.gmra.mrb[24].mxu1 %vm1532_vm3, %v1961_v24 }
 0x8fc   : > { %3690 = vmatprep.mubr.msk.bf16.mxu1 %vm4681_vm0, %v4680_v0 }
 0x900   : > { %v2054_v28 = vpop.f32.mrb[28].mxu0 }
 0x901   : > { %v2055_v29 = vadd.f32 %v2054_v28, %v5232_v63  ;;  %v3686_v30 = vpop.f32.mrb[29].mxu0  ;;  %v2126_v63 = vsel %vm1594_vm4, %v2121_v40, 0 }
 0x902   : > { %v2057_v31 = vpop.f32.mrb[30].mxu0  ;;  %3695 = vmatpush3.bf16.msra.mxu0 %v2126_v63 }
 0x903   : > { %v3687_v32 = vpop.f32.mrb[31].mxu0  ;;  %v2060_v33 = vsel %vm1532_vm3, %v2055_v29, -inf  ;;  %3708 = vmatprep.subr.bf16.mxu0 %v4680_v0 }
 0x904   : > { %2061 = vmax.xlane.f32.xlu0 %v2060_v33 }
 0x991   : > { %v2062_v34 = vpop.xlane.xlu0 %2061 }
 0x992   : > { %v2063_v35 = vsub.f32 %v2055_v29, %v2062_v34  ;;  %v2210_v34 = vld [vmem:[#allocation9] sm:$0xff] }
 0x993   : > { %vm2279_vm6 = vcmp.eq.f32.partialorder %v2210_v34, 0.0 }
 0x994   : > { %v2064_v36 = vmul.f32 1.442695, %v2063_v35  ;;  %v5356_v35 = vsel %vm2279_vm6, -1e+09, %v4680_v0 }
 0x996   : > { %4075 = vpow2.f32 %v2064_v36 }
 0x9a0   : > { %v4076_v37 = vpop.eup %4075 }
 0x9a1   : > { %v2066_v39 = vsel %vm1532_vm3, %v4076_v37, 0.0 }
 0x9a2   : > { %2067 = vadd.xlane.f32.xlu1 %v2066_v39 }
 0x9b3   : > { %2072 = vrot.lane.b32.xlu1 %v5239_v19, %s4684_s15 }
 0x9ce   : > { %v2003_v41 = vpop.f32.mrb[24].mxu1 }
 0x9cf   : > { %v2009_v42 = vadd.f32 %v2003_v41, %v5277_v61  ;;  %v3680_v43 = vpop.f32.mrb[25].mxu1 }
 0x9d0   : > { %v2006_v44 = vpop.f32.mrb[26].mxu1 }
 0x9d1   : > { %v3681_v45 = vpop.f32.mrb[27].mxu1 }
 0xa2f   : > { %v2068_v46 = vpop.xlane.xlu1 %2067 }
 0xa30   : > { %4077 = vrcp.f32 %v2068_v46 }
 0xa33   : > { %v2073_v47 = vpop.permute.xlu1 %2072 }
 0xa34   : > { %v2078_v49 = vsel %vm1594_vm4, %v2073_v47, 0 }
 0xa35   : > { %3689 = vmatpush3.bf16.msra.mxu1 %v2078_v49 }
 0xa36   : > { %3700 = vmatprep.subr.bf16.mxu1 %v4680_v0 }
 0xa3a   : > { %v4078_v19 = vpop.eup %4077 }
 0xa3b   : > { %v2070_v50 = vmul.f32 %v4078_v19, %v4076_v37 }
 0xa3d   : > { %v2071_v51 = vpack.c.bf16 %v2070_v50, %v2070_v50 }
 0xa3f   : > { %3691 = vmatmul.mubr.msk.bf16.vlgmr.msra.gmra.mrb[28].mxu1 %vm1532_vm3, %v2071_v51 }
 0xa40   : > { %3704 = vmatprep.mubr.msk.bf16.mxu1 %vm4681_vm0, %v4680_v0  ;;  %3701 = vmatpush3.bf16.msra.mxu1 %v4055_v12 }
 0xa41   : > { %3702 = vmatprep.subr.bf16.mxu1 %v4680_v0 }
 0xb12   : > { %v2114_v52 = vpop.f32.mrb[28].mxu1 }
 0xb13   : > { %v2120_v54 = vpack.c.bf16 %v2114_v52, %v2114_v52  ;;  %v3692_v55 = vpop.f32.mrb[29].mxu1 }
 0xb14   : > { %v2117_v56 = vpop.f32.mrb[30].mxu1 }
 0xb15   : > { %v3693_v57 = vpop.f32.mrb[31].mxu1  ;;  %3697 = vmatmul.mubr.msk.bf16.vlgmr.msra.gmra.mrb[32].mxu0 %vm1532_vm3, %v2120_v54 }
 0xb16   : > { %3709 = vmatpush3.bf16.xpose.msra.mxu0 %v2286_v58  ;;  %3710 = vmatprep.mubr.msk.bf16.mxu0 %vm4681_vm0, %v4680_v0 }
 0xb17   : > { %3720 = vmatprep.subr.bf16.mxu0 %v4680_v0 }
 0xbe8   : > { %v2162_v59 = vpop.f32.mrb[32].mxu0 }
 0xbe9   : > { %v2168_v61 = vadd.f32 %v2162_v59, %v2009_v42  ;;  %v3698_v62 = vpop.f32.mrb[33].mxu0 }
 0xbea   : > { %v2165_v1 = vpop.f32.mrb[34].mxu0 }
 0xbeb   : > { %v2176_v2 = vadd.f32 %v3475_v60, %v2168_v61  ;;  %v3699_v4 = vpop.f32.mrb[35].mxu0  ;;  %v2498_v1 = vld [vmem:[%s5575_s7 + $0x4] sm:$0xf] }
 0xbed   : > { %v2177_v5 = vadd.f32 %v2176_v2, %v5174_v3  ;;  %v4056_v3 = vld [vmem:[#allocation21 + $0x8] sm:$0xff]   ;;  %v2503_v2 = vsel %vm1594_vm4, %v2498_v1, 0 }
 0xbee   : > { %3703 = vmatpush3.bf16.msra.mxu1 %v4056_v3 }
 0xbef   : > { %v2180_v6 = vsel %vm1207_vm1, %v2177_v5, 0.0  ;;  %3714 = vmatprep.subr.bf16.mxu1 %v4680_v0 }
 0xbf0   : > { %2181 = vadd.xlane.f32.xlu1 %v2180_v6 }
 0xc7d   : > { %v2182_v7 = vpop.xlane.xlu1 %2181 }
 0xc7e   : > { %v2184_v8 = vmul.f32 0.03125, %v2182_v7  ;;  %v2385_v7 = vld [vmem:[%s5575_s7] sm:$0xf] }
 0xc80   : > { %v2185_v9 = vsub.f32 %v2177_v5, %v2184_v8 }
 0xc82   : > { %v2186_v10 = vmul.f32 %v2185_v9, %v2185_v9 }
 0xc84   : > { %v2187_v11 = vsel %vm1207_vm1, %v2186_v10, 0.0  ;;  %v2549_v10 = vsel %vm1594_vm4, %v2385_v7, 0 }
 0xc85   : > { %2188 = vadd.xlane.f32.xlu0 %v2187_v11 }
 0xc9b   : > { %2390 = vrot.lane.b32.xlu0 %v5314_v53, %s4682_s19 }
 0xd12   : > { %v2189_v13 = vpop.xlane.xlu0 %2188 }
 0xd13   : > { %v2190_v14 = vmul.f32 0.03125, %v2189_v13 }
 0xd15   : > { %v2191_v15 = vadd.f32 1e-05, %v2190_v14 }
 0xd16   : > { %v2391_v30 = vpop.permute.xlu0 %2390 }
 0xd17   : > { %4079 = vrsqrt.f32 %v2191_v15  ;;  %v2396_v32 = vsel %vm1532_vm3, %v2391_v30, 0 }
 0xd21   : > { %v4080_v16 = vpop.eup %4079 }
 0xd22   : > { %v2193_v18 = vmul.f32 %v4080_v16, %v2185_v9 }
 0xd24   : > { %v2200_v21 = vmul.f32 %v3476_v17, %v2193_v18 }
 0xd26   : > { %v5331_v38 = vadd.f32 %v3477_v20, %v2200_v21 }
 0xd28   : > { %v2211_v48 = vpack.c.bf16 %v5331_v38, %v5331_v38 }
 0xd2a   : > { %3705 = vmatmul.mubr.msk.bf16.vlgmr.msra.gmra.mrb[32].mxu1 %vm1207_vm1, %v2211_v48 }
 0xd2b   : > { %3715 = vmatpush3.bf16.msra.mxu1 %v5336_v22  ;;  %3716 = vmatprep.mubr.msk.bf16.mxu1 %vm4681_vm0, %v4680_v0 }
 0xd2c   : > { %3726 = vmatprep.subr.bf16.mxu1 %v4680_v0 }
 0xdfd   : > { %v2272_v24 = vpop.f32.mrb[32].mxu1 }
 0xdfe   : > { %v2273_v25 = vadd.f32 %v3478_v23, %v2272_v24  ;;  %v3706_v26 = vpop.f32.mrb[33].mxu1 }
 0xdff   : > { %v2275_v27 = vpop.f32.mrb[34].mxu1 }
 0xe00   : > { %v2278_v28 = vmul.f32 0.35355338, %v2273_v25  ;;  %v3707_v29 = vpop.f32.mrb[35].mxu1 }
 0xe02   : > { %v5342_v31 = vpack.c.bf16 %v2278_v28, %v2278_v28 }
 0xe04   : > { %2387 = vrot.lane.b32.xlu0 %v5342_v31, %s4682_s19  ;;  %3711 = vmatmul.mubr.msk.bf16.vlgmr.msra.gmra.mrb[36].mxu0 %vm1532_vm3, %v5342_v31 }
 0xe05   : > { %3721 = vmatpush3.bf16.xpose.msra.mxu0 %v2396_v32  ;;  %3722 = vmatprep.mubr.msk.bf16.mxu0 %vm4681_vm0, %v4680_v0 }
 0xe06   : > { %3732 = vmatprep.subr.bf16.mxu0 %v4680_v0 }
 0xe76   : > { %v2388_v33 = vpop.permute.xlu0 %2387 }
 0xe77   : > { %3723 = vmatmul.mubr.msk.bf16.vlgmr.msra.gmra.mrb[40].mxu0 %vm1532_vm3, %v2388_v33 }
 0xe78   : > { %3734 = vmatprep.mubr.msk.bf16.mxu0 %vm4681_vm0, %v4680_v0  ;;  %3733 = vmatpush3.bf16.msra.mxu0 %v2503_v2 }
 0xe79   : > { %3744 = vmatprep.subr.bf16.mxu0 %v4680_v0 }
 0xed7   : > { %v2322_v36 = vpop.f32.mrb[36].mxu0 }
 0xed8   : > { %v2323_v37 = vadd.f32 %v2322_v36, %v5356_v35  ;;  %v3712_v39 = vpop.f32.mrb[37].mxu0 }
 0xed9   : > { %v2325_v40 = vpop.f32.mrb[38].mxu0 }
 0xeda   : > { %v3713_v63 = vpop.f32.mrb[39].mxu0  ;;  %v2329_v41 = vsel %vm2328_vm7, %v2323_v37, -inf }
 0xedb   : > { %2330 = vmax.xlane.f32.xlu1 %v2329_v41 }
 0xf4a   : > { %v2432_v42 = vpop.f32.mrb[40].mxu0 }
 0xf4b   : > { %v2433_v43 = vadd.f32 %v2432_v42, %v5356_v35  ;;  %v3724_v44 = vpop.f32.mrb[41].mxu0 }
 0xf4c   : > { %v2435_v45 = vpop.f32.mrb[42].mxu0 }
 0xf4d   : > { %v3725_v46 = vpop.f32.mrb[43].mxu0  ;;  %v2438_v47 = vsel %vm2328_vm7, %v2433_v43, -inf }
 0xf4e   : > { %2439 = vmax.xlane.f32.xlu0 %v2438_v47 }
 0xf68   : > { %v2331_v49 = vpop.xlane.xlu1 %2330 }
 0xf69   : > { %v2332_v19 = vsub.f32 %v2323_v37, %v2331_v49 }
 0xf6b   : > { %v2333_v50 = vmul.f32 1.442695, %v2332_v19 }
 0xf6d   : > { %4081 = vpow2.f32 %v2333_v50 }
 0xf77   : > { %v4082_v51 = vpop.eup %4081 }
 0xf78   : > { %v2335_v52 = vsel %vm2328_vm7, %v4082_v51, 0.0 }
 0xf79   : > { %2336 = vadd.xlane.f32.xlu1 %v2335_v52  ;;  %v2700_v52 = vld [vmem:[%s5575_s7 + $0x8] sm:$0xf] }
 0xfdb   : > { %v2440_v54 = vpop.xlane.xlu0 %2439 }
 0xfdc   : > { %v2441_v55 = vsub.f32 %v2433_v43, %v2440_v54  ;;  %v2705_v54 = vsel %vm1594_vm4, %v2700_v52, 0  ;;  %v4061_v52 = vld [vmem:[%s5577_s4 + $0x10] sm:$0xff]  }
 0xfde   : > { %v2442_v56 = vmul.f32 1.442695, %v2441_v55 }
 0xfe0   : > { %4083 = vpow2.f32 %v2442_v56 }
 0xfea   : > { %v4084_v57 = vpop.eup %4083 }
 0xfeb   : > { %v2444_v58 = vsel %vm2328_vm7, %v4084_v57, 0.0 }
 0xfec   : > { %2445 = vadd.xlane.f32.xlu1 %v2444_v58 }
 0xffd   : > { %2451 = vrot.lane.b32.xlu1 %v5336_v22, %s4682_s19  ;;  %s5579_s19 = sld [smem:[#allocation49_spill]] }
0x1001   : > { %2593 = vrot.lane.b32.xlu1 %v5314_v53, %s4683_s1 }
0x1005   : > { %2591 = vrot.lane.b32.xlu1 %v5342_v31, %s4683_s1 }
0x1006   : > { %v2337_v59 = vpop.xlane.xlu1 %2336 }
0x1007   : > { %4085 = vrcp.f32 %v2337_v59 }
0x1011   : > { %v4086_v60 = vpop.eup %4085 }
0x1012   : > { %v2339_v61 = vmul.f32 %v4086_v60, %v4082_v51 }
0x1014   : > { %v2340_v62 = vpack.c.bf16 %v2339_v61, %v2339_v61 }
0x1016   : > { %3717 = vmatmul.mubr.msk.bf16.vlgmr.msra.gmra.mrb[36].mxu1 %vm2328_vm7, %v2340_v62 }
0x1017   : > { %3728 = vmatprep.mubr.msk.bf16.mxu1 %vm4681_vm0, %v4680_v0 }
0x1079   : > { %v2446_v4 = vpop.xlane.xlu1 %2445 }
0x107a   : > { %4087 = vrcp.f32 %v2446_v4 }
0x107d   : > { %v2452_v5 = vpop.permute.xlu1 %2451 }
0x107e   : > { %3727 = vmatpush3.bf16.msra.mxu1 %v2452_v5 }
0x107f   : > { %3738 = vmatprep.subr.bf16.mxu1 %v4680_v0 }
0x1081   : > { %v2594_v15 = vpop.permute.xlu1 %2593 }
0x1082   : > { %v2599_v21 = vsel %vm1532_vm3, %v2594_v15, 0 }
0x1084   : > { %v4088_v6 = vpop.eup %4087 }
0x1085   : > { %v2448_v8 = vmul.f32 %v4088_v6, %v4084_v57  ;;  %v2592_v23 = vpop.permute.xlu1 %2591 }
0x1087   : > { %v2449_v9 = vpack.c.bf16 %v2448_v8, %v2448_v8 }
0x1089   : > { %3729 = vmatmul.mubr.msk.bf16.vlgmr.msra.gmra.mrb[40].mxu1 %vm2328_vm7, %v2449_v9 }
0x108a   : > { %3739 = vmatpush3.bf16.msra.mxu1 %v2549_v10  ;;  %3740 = vmatprep.mubr.msk.bf16.mxu1 %vm4681_vm0, %v4680_v0  ;;  %v2857_v10 = vld [vmem:[%s5575_s7 + $0xc] sm:$0xf] }
0x108b   : > { %3750 = vmatprep.subr.bf16.mxu1 %v4680_v0 }
0x10e9   : > { %v2378_v11 = vpop.f32.mrb[36].mxu1 }
0x10ea   : > { %v2384_v12 = vpack.c.bf16 %v2378_v11, %v2378_v11  ;;  %v3718_v3 = vpop.f32.mrb[37].mxu1 }
0x10eb   : > { %v2381_v13 = vpop.f32.mrb[38].mxu1 }
0x10ec   : > { %v3719_v14 = vpop.f32.mrb[39].mxu1  ;;  %3741 = vmatmul.mubr.msk.bf16.vlgmr.msra.gmra.mrb[44].mxu1 %vm1532_vm3, %v2384_v12 }
0x10ed   : > { %3752 = vmatprep.mubr.msk.bf16.mxu1 %vm4681_vm0, %v4680_v0 }
0x115c   : > { %v2491_v16 = vpop.f32.mrb[40].mxu1 }
0x115d   : > { %v2497_v17 = vpack.c.bf16 %v2491_v16, %v2491_v16  ;;  %v3730_v18 = vpop.f32.mrb[41].mxu1 }
0x115e   : > { %v2494_v20 = vpop.f32.mrb[42].mxu1 }
0x115f   : > { %v3731_v48 = vpop.f32.mrb[43].mxu1  ;;  %3735 = vmatmul.mubr.msk.bf16.vlgmr.msra.gmra.mrb[44].mxu0 %vm1532_vm3, %v2497_v17 }
0x1160   : > { %3745 = vmatpush3.bf16.xpose.msra.mxu0 %v2599_v21  ;;  %3746 = vmatprep.mubr.msk.bf16.mxu0 %vm4681_vm0, %v4680_v0 }
0x1161   : > { %3756 = vmatprep.subr.bf16.mxu0 %v4680_v0 }
0x1167   : > { %3747 = vmatmul.mubr.msk.bf16.vlgmr.msra.gmra.mrb[48].mxu0 %vm1532_vm3, %v2592_v23 }
0x1168   : > { %3758 = vmatprep.mubr.msk.bf16.mxu0 %vm4681_vm0, %v4680_v0  ;;  %3757 = vmatpush3.bf16.msra.mxu0 %v2705_v54  ;;  %v4062_v54 = vld [vmem:[%s5577_s4 + $0x18] sm:$0xff]  }
0x1169   : > { %3768 = vmatprep.subr.bf16.mxu0 %v4680_v0 }
0x11bf   : > { %v2585_v24 = vpop.f32.mrb[44].mxu1 }
0x11c0   : > { %v3742_v25 = vpop.f32.mrb[45].mxu1 }
0x11c1   : > { %v2588_v26 = vpop.f32.mrb[46].mxu1 }
0x11c2   : > { %v3743_v27 = vpop.f32.mrb[47].mxu1  ;;  %v3494_v26 = vld [vmem:[%s5576_s0] ss:$0 sm:$0xff]  ;;  %s5584_s0 = sld [smem:[#allocation61_spill]] }
0x11c8   : > { %p5585_p3 = scmp.ne.s32.totalorder %s5584_s0, 0 }
0x1232   : > { %v2539_v28 = vpop.f32.mrb[44].mxu0 }
0x1233   : > { %v5394_v29 = vadd.f32 %v2585_v24, %v2539_v28  ;;  %v3736_v30 = vpop.f32.mrb[45].mxu0 }
0x1234   : > { %v2542_v32 = vpop.f32.mrb[46].mxu0 }
0x1235   : > { %v3737_v33 = vpop.f32.mrb[47].mxu0 }
0x123a   : > { %v2635_v34 = vpop.f32.mrb[48].mxu0 }
0x123b   : > { %v2636_v36 = vadd.f32 %v2635_v34, %v5356_v35  ;;  %v3748_v37 = vpop.f32.mrb[49].mxu0 }
0x123c   : > { %v2638_v39 = vpop.f32.mrb[50].mxu0 }
0x123d   : > { %v3749_v40 = vpop.f32.mrb[51].mxu0  ;;  %v2641_v63 = vsel %vm2328_vm7, %v2636_v36, -inf }
0x123e   : > { %2642 = vmax.xlane.f32.xlu0 %v2641_v63 }
0x1254   : > { %2653 = vrot.lane.b32.xlu0 %v5336_v22, %s4683_s1  ;;  %s5580_s1 = sld [smem:[#allocation51_spill]] }
0x1258   : > { %2750 = vrot.lane.b32.xlu0 %v5314_v53, %s4684_s15 }
0x125c   : > { %2748 = vrot.lane.b32.xlu0 %v5342_v31, %s4684_s15 }
0x12cb   : > { %v2643_v41 = vpop.xlane.xlu0 %2642 }
0x12cc   : > { %v2644_v42 = vsub.f32 %v2636_v36, %v2643_v41  ;;  %v4057_v41 = vld [vmem:[#allocation29] sm:$0xff]  }
0x12ce   : > { %v2645_v43 = vmul.f32 1.442695, %v2644_v42  ;;  %v4058_v42 = vld [vmem:[#allocation29 + $0x8] sm:$0xff]  }
0x12cf   : > { %v2654_v44 = vpop.permute.xlu0 %2653 }
0x12d0   : > { %4089 = vpow2.f32 %v2645_v43  ;;  %3751 = vmatpush3.bf16.msra.mxu1 %v2654_v44  ;;  %v4060_v43 = vld [vmem:[%s5577_s4 + $0x8] sm:$0xff]  }
0x12d1   : > { %3762 = vmatprep.subr.bf16.mxu1 %v4680_v0 }
0x12d3   : > { %v2751_v19 = vpop.permute.xlu0 %2750 }
0x12d4   : > { %v2756_v31 = vsel %vm1532_vm3, %v2751_v19, 0  ;;  %v3496_v19 = vld [vmem:[%s4829_s12] ss:$0 sm:$0xff] }
0x12d7   : > { %v2749_v51 = vpop.permute.xlu0 %2748 }
0x12da   : > { %v4090_v45 = vpop.eup %4089 }
0x12db   : > { %v2647_v46 = vsel %vm2328_vm7, %v4090_v45, 0.0 }
0x12dc   : > { %2648 = vadd.xlane.f32.xlu1 %v2647_v46 }
0x1369   : > { %v2649_v47 = vpop.xlane.xlu1 %2648 }
0x136a   : > { %4091 = vrcp.f32 %v2649_v47 }
0x1374   : > { %v4092_v49 = vpop.eup %4091 }
0x1375   : > { %v2651_v53 = vmul.f32 %v4092_v49, %v4090_v45  ;;  %v3495_v49 = vld [vmem:[%s5578_s28] ss:$0 sm:$0xff]  ;;  %s3510_s28 = sshll.u32 %s4623_s22, 7  ;;  %s4685_s22 = smov [#allocation30]  }
0x1376   : > { %s5460_s2 = scalar_lea.hbm %s5582_s18, %s3510_s28 }
0x1377   : > { %v2652_v50 = vpack.c.bf16 %v2651_v53, %v2651_v53 }
0x1379   : > { %3753 = vmatmul.mubr.msk.bf16.vlgmr.msra.gmra.mrb[48].mxu1 %vm2328_vm7, %v2652_v50 }
0x137a   : > { %3763 = vmatpush3.bf16.xpose.msra.mxu1 %v2756_v31  ;;  %3764 = vmatprep.mubr.msk.bf16.mxu1 %vm4681_vm0, %v4680_v0 }
0x137b   : > { %3774 = vmatprep.subr.bf16.mxu1 %v4680_v0 }
0x1381   : > { %3765 = vmatmul.mubr.msk.bf16.vlgmr.msra.gmra.mrb[52].mxu1 %vm1532_vm3, %v2749_v51 }
0x1382   : > { %3776 = vmatprep.mubr.msk.bf16.mxu1 %vm4681_vm0, %v4680_v0 }
0x144c   : > { %v2693_v55 = vpop.f32.mrb[48].mxu1 }
0x144d   : > { %v2699_v56 = vpack.c.bf16 %v2693_v55, %v2693_v55  ;;  %v3754_v57 = vpop.f32.mrb[49].mxu1  ;;  %v3497_v55 = vld [vmem:[%s5579_s19] ss:$0 sm:$0xff] }
0x144e   : > { %v2696_v58 = vpop.f32.mrb[50].mxu1 }
0x144f   : > { %v3755_v59 = vpop.f32.mrb[51].mxu1  ;;  %3759 = vmatmul.mubr.msk.bf16.vlgmr.msra.gmra.mrb[52].mxu0 %vm1532_vm3, %v2699_v56 }
0x1450   : > { %3770 = vmatprep.mubr.msk.bf16.mxu0 %vm4681_vm0, %v4680_v0 }
0x1454   : > { %v2792_v60 = vpop.f32.mrb[52].mxu1 }
0x1455   : > { %v2793_v61 = vadd.f32 %v2792_v60, %v5356_v35  ;;  %v3766_v62 = vpop.f32.mrb[53].mxu1  ;;  %v2862_v35 = vsel %vm1594_vm4, %v2857_v10, 0 }
0x1456   : > { %v2795_v1 = vpop.f32.mrb[54].mxu1  ;;  %3775 = vmatpush3.bf16.msra.mxu1 %v2862_v35 }
0x1457   : > { %v3767_v2 = vpop.f32.mrb[55].mxu1  ;;  %v2798_v4 = vsel %vm2328_vm7, %v2793_v61, -inf  ;;  %3788 = vmatprep.subr.bf16.mxu1 %v4680_v0  ;;  %v3501_v1 = vld [vmem:[%s5580_s1] ss:$0 sm:$0xff] }
0x1458   : > { %2799 = vmax.xlane.f32.xlu0 %v2798_v4 }
0x14e5   : > { %v2800_v5 = vpop.xlane.xlu0 %2799 }
0x14e6   : > { %v2801_v6 = vsub.f32 %v2793_v61, %v2800_v5 }
0x14e8   : > { %v2802_v7 = vmul.f32 1.442695, %v2801_v6 }
0x14ea   : > { %4093 = vpow2.f32 %v2802_v7 }
0x14f4   : > { %v4094_v8 = vpop.eup %4093 }
0x14f5   : > { %v2804_v9 = vsel %vm2328_vm7, %v4094_v8, 0.0 }
0x14f6   : > { %2805 = vadd.xlane.f32.xlu1 %v2804_v9 }
0x1507   : > { %2810 = vrot.lane.b32.xlu1 %v5336_v22, %s4684_s15  ;;  %s1162_s15 = sand.u32 1, %s4615_s16  }
0x1508   : > { %s3437_s26 = sshll.u32 %s1162_s15, 3  ;;  %s3127_s3 = scalar_lea.sflag [#allocation8], %s1162_s15 }
0x1509   : > { %s1164_s19 = scalar_lea.vmem [#allocation30], %s3437_s26  ;;  %s4525_s26 = sshll.u32 %s4685_s22, 4  ;;  %s4526_s26 = int_to_ptr.vmem [resolvable:$false] %s4525_s26 }
0x150a   : > { %s3141_s1 = sshll.u32 %s1164_s19, 4  ;;  %s5462_s1 = int_to_ptr.vmem [resolvable:$true] %s3141_s1 }
0x150b   : > { %p4528_p4 = scmp.lt.s32.totalorder %s5462_s1, %s4526_s26 }
0x1522   : > { %v2741_v11 = vpop.f32.mrb[52].mxu0 }
0x1523   : > { %v2747_v12 = vadd.f32 %v2741_v11, %v5394_v29  ;;  %v3760_v3 = vpop.f32.mrb[53].mxu0 }
0x1524   : > { %v2744_v13 = vpop.f32.mrb[54].mxu0 }
0x1525   : > { %v3761_v14 = vpop.f32.mrb[55].mxu0 }
0x1583   : > { %v2806_v15 = vpop.xlane.xlu1 %2805 }
0x1584   : > { %4095 = vrcp.f32 %v2806_v15 }
0x1587   : > { %v2811_v16 = vpop.permute.xlu1 %2810 }
0x1588   : > { %3769 = vmatpush3.bf16.msra.mxu0 %v2811_v16  ;;  %v3507_v16 = vld [vmem:[%s4834_s9] ss:$0 sm:$0xff] }
0x1589   : > { %3780 = vmatprep.subr.bf16.mxu0 %v4680_v0 }
0x158e   : > { %v4096_v22 = vpop.eup %4095 }
0x158f   : > { %v2808_v17 = vmul.f32 %v4096_v22, %v4094_v8 }
0x1591   : > { %v2809_v18 = vpack.c.bf16 %v2808_v17, %v2808_v17  ;;  %v3508_v17 = vld [vmem:[%s5581_s5] ss:$0 sm:$0xff]  ;;  %s4527_s5 = scalar_lea.vmem %s4526_s26, 256 }
0x1593   : > { %3771 = vmatmul.mubr.msk.bf16.vlgmr.msra.gmra.mrb[56].mxu0 %vm2328_vm7, %v2809_v18 }
0x1594   : > { %3784 = vmatprep.mubr.msk.bf16.mxu0 %vm4681_vm0, %v4680_v0  ;;  %3781 = vmatpush3.bf16.msra.mxu0 %v4057_v41 }
0x1595   : > { %3782 = vmatprep.subr.bf16.mxu0 %v4680_v0 }
0x1598   : > { %3783 = vmatpush3.bf16.msra.mxu0 %v4058_v42 }
0x1666   : > { %v2850_v20 = vpop.f32.mrb[56].mxu0 }
0x1667   : > { %v2856_v21 = vpack.c.bf16 %v2850_v20, %v2850_v20  ;;  %v3772_v48 = vpop.f32.mrb[57].mxu0 }
0x1668   : > { %v2853_v23 = vpop.f32.mrb[58].mxu0 }
0x1669   : > { %v3773_v24 = vpop.f32.mrb[59].mxu0  ;;  %3777 = vmatmul.mubr.msk.bf16.vlgmr.msra.gmra.mrb[56].mxu1 %vm1532_vm3, %v2856_v21 }
0x166a   : > { %3796 = vmatprep.mubr.msk.bf16.mxu1 %vm4681_vm0, %v4680_v0 }
0x173c   : > { %v2898_v25 = vpop.f32.mrb[56].mxu1 }
0x173d   : > { %v2904_v27 = vadd.f32 %v2898_v25, %v2747_v12  ;;  %v3778_v28 = vpop.f32.mrb[57].mxu1 }
0x173e   : > { %v2901_v29 = vpop.f32.mrb[58].mxu1 }
0x173f   : > { %v2912_v30 = vadd.f32 %v3494_v26, %v2904_v27  ;;  %v3779_v32 = vpop.f32.mrb[59].mxu1 }
0x1741   : > { %v2913_v33 = vadd.f32 %v2912_v30, %v5331_v38  ;;  %v4059_v38 = vld [vmem:[%s5577_s4] sm:$0xff]   ;;  %s4521_s4 = scalar_lea.vmem %s5462_s1, 128 }
0x1742   : > { %3789 = vmatpush3.bf16.msra.mxu1 %v4059_v38  ;;  %p4522_p2 = scmp.ne.s32.totalorder %s5462_s1, %s4521_s4  ;;  %p4529_p8 = scmp.lt.s32.totalorder %s4527_s5, %s4521_s4 }
0x1743   : > { %v2916_v34 = vsel %vm1207_vm1, %v2913_v33, 0.0  ;;  %3790 = vmatprep.subr.bf16.mxu1 %v4680_v0 }
0x1744   : > { %2917 = vadd.xlane.f32.xlu1 %v2916_v34  ;;  %p4523_p5 = pnand %p4522_p2, %p5585_p3  ;;  %p4530_p10 = por %p4529_p8, %p4528_p4 }
0x1746   : > { %3791 = vmatpush3.bf16.msra.mxu1 %v4060_v43  ;;  %p4524_p6 = pneg %p4523_p5 }
0x1747   : > { %3792 = vmatprep.subr.bf16.mxu1 %v4680_v0 }
0x1748   : > { %p4531_p11 = pnand %p4530_p10, %p4524_p6 }
0x174a   : > { %3793 = vmatpush3.bf16.msra.mxu1 %v4061_v52 }
0x174b   : > { %3794 = vmatprep.subr.bf16.mxu1 %v4680_v0 }
0x174e   : > { %3795 = vmatpush3.bf16.msra.mxu1 %v4062_v54 }
0x17d1   : > { %v2918_v36 = vpop.xlane.xlu1 %2917 }
0x17d2   : > { %v2919_v37 = vmul.f32 0.03125, %v2918_v36 }
0x17d4   : > { %v2920_v39 = vsub.f32 %v2913_v33, %v2919_v37 }
0x17d6   : > { %v2921_v40 = vmul.f32 %v2920_v39, %v2920_v39 }
0x17d8   : > { %v2922_v63 = vsel %vm1207_vm1, %v2921_v40, 0.0 }
0x17d9   : > { %2923 = vadd.xlane.f32.xlu0 %v2922_v63 }
0x1866   : > { %v2924_v44 = vpop.xlane.xlu0 %2923 }
0x1867   : > { %v2925_v45 = vmul.f32 0.03125, %v2924_v44 }
0x1869   : > { %v2926_v46 = vadd.f32 1e-05, %v2925_v45 }
0x186b   : > { %4097 = vrsqrt.f32 %v2926_v46 }
0x1875   : > { %v4098_v47 = vpop.eup %4097 }
0x1876   : > { %v2928_v53 = vmul.f32 %v4098_v47, %v2920_v39 }
0x1878   : > { %v2935_v50 = vmul.f32 %v3495_v49, %v2928_v53 }
0x187a   : > { %v2942_v31 = vadd.f32 %v3496_v19, %v2935_v50 }
0x187c   : > { %v2943_v51 = vpack.c.bf16 %v2942_v31, %v2942_v31 }
0x187e   : > { %3785 = vmatmul.mubr.msk.bf16.vlgmr.msra.gmra.mrb[60].mxu0 %vm1207_vm1, %v2943_v51 }
0x1951   : > { %v3004_v56 = vpop.f32.mrb[60].mxu0 }
0x1952   : > { %v3005_v57 = vadd.f32 %v3497_v55, %v3004_v56  ;;  %v3786_v58 = vpop.f32.mrb[61].mxu0 }
0x1953   : > { %v3007_v59 = vpop.f32.mrb[62].mxu0 }
0x1954   : > { %v3010_v60 = vmax.f32 %v3005_v57, 0.0  ;;  %v3787_v61 = vpop.f32.mrb[63].mxu0 }
0x1956   : > { %v3011_v62 = vpack.c.bf16 %v3010_v60, %v3010_v60 }
0x1958   : > { %3797 = vmatmul.mubr.msk.bf16.vlgmr.msra.gmra.mrb[60].mxu1 %vm3051_vm8, %v3011_v62 }
0x1a2b   : > { %v3089_v2 = vpop.f32.mrb[60].mxu1 }
0x1a2c   : > { %v3090_v4 = vadd.f32 %v3501_v1, %v3089_v2  ;;  %v3798_v5 = vpop.f32.mrb[61].mxu1 }
0x1a2d   : > { %v3092_v6 = vpop.f32.mrb[62].mxu1 }
0x1a2e   : > { %v3799_v7 = vpop.f32.mrb[63].mxu1  ;;  %v3095_v0 = vadd.f32 %v3090_v4, %v2942_v31 }
0x1a30   : > { %v3098_v8 = vsel %vm1207_vm1, %v3095_v0, 0.0 }
0x1a31   : > { %3099 = vadd.xlane.f32.xlu0 %v3098_v8 }
0x1abe   : > { %v3100_v9 = vpop.xlane.xlu0 %3099 }
0x1abf   : > { %v3101_v10 = vmul.f32 0.03125, %v3100_v9 }
0x1ac1   : > { %v3102_v35 = vsub.f32 %v3095_v0, %v3101_v10 }
0x1ac3   : > { %v3103_v11 = vmul.f32 %v3102_v35, %v3102_v35 }
0x1ac5   : > { %v3104_v12 = vsel %vm1207_vm1, %v3103_v11, 0.0 }
0x1ac6   : > { %3105 = vadd.xlane.f32.xlu0 %v3104_v12 }
0x1b53   : > { %v3106_v3 = vpop.xlane.xlu0 %3105 }
0x1b54   : > { %v3107_v13 = vmul.f32 0.03125, %v3106_v3 }
0x1b56   : > { %v3108_v14 = vadd.f32 1e-05, %v3107_v13 }
0x1b58   : > { %4099 = vrsqrt.f32 %v3108_v14 }
0x1b62   : > { %v4100_v15 = vpop.eup %4099 }
0x1b63   : > { %v3110_v22 = vmul.f32 %v4100_v15, %v3102_v35 }
0x1b65   : > { %v3117_v18 = vmul.f32 %v3507_v16, %v3110_v22 }
0x1b67   : > { %v3124_v20 = vadd.f32 %v3508_v17, %v3117_v18 }
0x1b69   : > { %3125 = vst.msk [vmem:[%s1164_s19] sm:$0xff] %vm1207_vm1, %v3124_v20 }
0x1b6a   : > { %4534 = shalt.err (!%p4531_p11)
}
0x1b6b   : > { %s4535_s18 = scalar_lea.hbm %s5460_s2, 128  ;;  %s4539_s15 = scalar_lea.hbm %s5583_s11, 256 }
0x1b6c   : > { %p4536_p7 = scmp.ne.s32.totalorder %s5460_s2, %s4535_s18  ;;  %p4540_p0 = scmp.lt.u32.totalorder %s5460_s2, %s5583_s11 }
0x1b6d   : > { %p4541_p1 = scmp.lt.u32.totalorder %s4539_s15, %s4535_s18  ;;  %p4543_p2 = scmp.lt.u32.totalorder %s4535_s18, %s5460_s2 }
0x1b6e   : > { %p4537_p9 = pnand %p4536_p7, %p5585_p3 }
0x1b6f   : > { %p4542_p13 = por %p4541_p1, %p4540_p0 }
0x1b70   : > { %p4538_p12 = pneg %p4537_p9 }
0x1b71   : > { %p4544_p5 = por %p4543_p2, %p4542_p13 }
0x1b73   : > { %p4545_p6 = pnand %p4544_p5, %p4538_p12 }
0x1b75   : > { %4548 = shalt.err (!%p4545_p6)
}
0x1b76   : > { %3860 = dma.vmem_to_hbm [thread:$0]  (%p5585_p3), %s5462_s1, 128, %s5460_s2, %s3127_s3  }
0x1b77 PF: > { %s5586_s5 = sld [smem:[#allocation57_spill]]  ;;  %s5587_s4 = sld [smem:[#allocation62_spill]] }
0x1b78   : > { %p3942_p4 = scmp.ge.s32.totalorder %s4631_s23, 2 }
0x1b7d   : > { %s3153_s28 = sand.u32 1, %s5586_s5   ;;  %p5588_p8 = scmp.ne.s32.totalorder %s5587_s4, 0 }
0x1b7e   : > { %s3154_s19 = scalar_lea.sflag [#allocation8], %s3153_s28 }
0x1b7f   : > { %p3909_p10 = pnand %p3942_p4, %p5588_p8 }
0x1b81   : > { %4606 = dma.done.wait (!%p3909_p10), %s3154_s19, 128  }
0x1b82   : > { %4608 = vsyncadd (!%p3909_p10), %s3154_s19, 4294967168  ;;  %s82_s23 = sadd.s32 1, %s4631_s23   ;;  %s5589_s22 = sld [smem:[#allocation58_spill]] }
0x1b83   : > { %p79_p11 = scmp.ge.s32.totalorder %s82_s23, 4   ;;  %s5590_s18 = sld [smem:[#allocation63_spill]] }
0x1b84   : > { %s5591_s0 = sld [smem:[#allocation59_spill]]  ;;  %s5592_s26 = sld [smem:[#allocation60_spill]] }
0x1b85   : > { %s5593_s15 = smov %s4615_s16  ;;  %81 = sbr.rel (!%p79_p11) target bundleno = 66 (0x42), region = 276 }
0x1b88   : > { %s5594_s16 = smov %s5589_s22 }
0x1b8a   : > { %s5595_s22 = smov %s5591_s0  ;;  %s5596_s0 = smov %s5592_s26 }
0x1b8c   :  { %3159 = vsyncpa [#allocation7], 1 }
0x1b8d   :  { %3161 = vsyncpa [#allocation7 + $0x1], 1 }
0x1b8e   :  { %3162 = vsyncpa [#allocation10], 1 }
0x1b8f   :  { %3163 = vsyncpa [#allocation13], 1 }
0x1b90   :  { %3164 = vsyncpa [#allocation16], 1 }
0x1b91   :  { %3165 = vsyncpa [#allocation19], 1 }
0x1b92   :  { %3166 = vsyncpa [#allocation22], 1 }
0x1b93   :  { %3167 = vsyncpa [#allocation25], 1 }
0x1b94   :  { %3168 = vsyncpa [#allocation28], 1 }
0x1b95   :  { %3169 = vsyncpa [#allocation8], 1 }
0x1b96   :  { %3171 = vsyncpa [#allocation8 + $0x1], 1 }

</bundles_post_ra>
